<compile_context>
chip_gen: v7x
topology: tpu7x:2x2x1
jax: 0.10.0
libtpu: 0.0.40
codegen_flags: <defaults>
</compile_context>

<pallas_src>
import numpy as np
import jax
import jax.numpy as jnp
from jax.experimental import pallas as pl
from jax.experimental.pallas import tpu as pltpu  # noqa: F401  (TPU backend)

C_TCN = 100   # TCN channel width from the module spec
C_PAD = 128   # padded to one full lane width


# --------------------------------------------------------------------------
# The fused Pallas kernel: full TCN + folded decoder/word_weight epilogue.
# --------------------------------------------------------------------------
def _crfa_fused_kernel(
    x_ref, s1_ref, s2_ref, s4_ref,
    # temporal block 0 (dilation 1, E -> 128, with 1x1 downsample residual)
    w10a_ref, w10b_ref, b10_ref, w20a_ref, w20b_ref, b20_ref, dw_ref, db_ref,
    # temporal block 1 (dilation 2, 128 -> 128, identity residual)
    w11a_ref, w11b_ref, b11_ref, w21a_ref, w21b_ref, b21_ref,
    # temporal block 2 (dilation 4, 128 -> 128, identity residual)
    w12a_ref, w12b_ref, b12_ref, w22a_ref, w22b_ref, b22_ref,
    # folded decoder Linear @ word_weight  (128,1) + scalar bias
    attw_ref, attb_ref,
    o_ref,
):
    f32 = jnp.float32
    bf16 = jnp.bfloat16

    def conv_k2_relu(h, s_ref, wa_ref, wb_ref, b_ref):
        # causal dilated conv, kernel size 2:
        #   out[t] = relu(Wb @ h[t] + Wa @ h[t-d] + b)
        # The per-sequence causal shift is a 0/1 shift-matrix matmul (MXU);
        # rows whose in-sequence position < d are zeroed (== left zero-pad).
        hb = h.astype(bf16)
        h_prev = jnp.dot(s_ref[...], hb, preferred_element_type=f32).astype(bf16)
        acc = jnp.dot(hb, wb_ref[...], preferred_element_type=f32)
        acc = acc + jnp.dot(h_prev, wa_ref[...], preferred_element_type=f32)
        acc = acc + b_ref[...]
        return jnp.maximum(acc, 0.0)

    x = x_ref[...]                                            # (M, E) f32

    # ---- temporal block 0 (dilation 1) -----------------------------------
    h1 = conv_k2_relu(x, s1_ref, w10a_ref, w10b_ref, b10_ref)
    h2 = conv_k2_relu(h1, s1_ref, w20a_ref, w20b_ref, b20_ref)
    res = jnp.dot(x.astype(bf16), dw_ref[...],
                  preferred_element_type=f32) + db_ref[...]
    h = jnp.maximum(h2 + res, 0.0)

    # ---- temporal block 1 (dilation 2) -----------------------------------
    h1 = conv_k2_relu(h, s2_ref, w11a_ref, w11b_ref, b11_ref)
    h2 = conv_k2_relu(h1, s2_ref, w21a_ref, w21b_ref, b21_ref)
    h = jnp.maximum(h2 + h, 0.0)

    # ---- temporal block 2 (dilation 4) -----------------------------------
    h1 = conv_k2_relu(h, s4_ref, w12a_ref, w12b_ref, b12_ref)
    h2 = conv_k2_relu(h1, s4_ref, w22a_ref, w22b_ref, b22_ref)
    h = jnp.maximum(h2 + h, 0.0)

    # ---- folded decoder Linear(100->hidden) @ word_weight(hidden->1) ------
    att = jnp.dot(h.astype(bf16), attw_ref[...], preferred_element_type=f32)
    o_ref[...] = att + attb_ref[...]


def fused_tcn_attention(x_stacked, s1, s2, s4, params):
    """x_stacked: (M, E) f32 -> per-row attention logit (M, 1) f32."""
    M = x_stacked.shape[0]
    b0, b1, b2 = params["blocks"]
    args = (
        x_stacked, s1, s2, s4,
        b0["w1a"], b0["w1b"], b0["b1"], b0["w2a"], b0["w2b"], b0["b2"],
        b0["down_w"], b0["down_b"],
        b1["w1a"], b1["w1b"], b1["b1"], b1["w2a"], b1["w2b"], b1["b2"],
        b2["w1a"], b2["w1b"], b2["b1"], b2["w2a"], b2["w2b"], b2["b2"],
        params["att_w"], params["att_b"],
    )
    # Single invocation (no grid): every operand is a full-array VMEM block.
    return pl.pallas_call(
        _crfa_fused_kernel,
        out_shape=jax.ShapeDtypeStruct((M, 1), jnp.float32),
    )(*args)


# --------------------------------------------------------------------------
# JAX glue (embedding gather, con1 chain, stacking, final fc -> plain XLA)
# --------------------------------------------------------------------------
def build_shift_matrices(pos, dilations=(1, 2, 4), dtype=jnp.bfloat16):
    # pos[i] = position of flattened row i within its own sequence.
    M = pos.shape[0]
    i = np.arange(M)[:, None]
    j = np.arange(M)[None, :]
    mats = []
    for d in dilations:
        m = (j == (i - d)) & (pos[:, None] >= d)
        mats.append(jnp.asarray(m, dtype=dtype))
    return mats


def crfa_na_forward(x_ids, cpt_ids, params):
    E = params["word_embed"].shape[1]
    x_emb = params["word_embed"][x_ids]          # (B, L,  E)
    c_emb = params["cpt_embed"][cpt_ids]         # (B, Lc, E)
    B, L, _ = x_emb.shape
    Lc = c_emb.shape[1]

    # pointwise (k=1) Conv1d emb->emb chain; dropout == identity (inference).
    def con1(h):
        return jnp.einsum("ble,eo->blo", h, params["con1_w"]) + params["con1_b"]

    r0, c0 = x_emb, c_emb
    r1, c1 = con1(r0), con1(c0)
    r2, c2 = con1(r1), con1(c1)

    pieces = [r0, r1, r2, c0, c1, c2]
    x_stacked = jnp.concatenate([p.reshape(-1, E) for p in pieces], axis=0)

    pos = np.concatenate([np.tile(np.arange(L), B)] * 3
                         + [np.tile(np.arange(Lc), B)] * 3)
    s1, s2, s4 = build_shift_matrices(pos)

    att = fused_tcn_attention(x_stacked, s1, s2, s4, params)   # (M, 1)

    # un-stack in the PyTorch torch.cat order, then final fc (left to XLA).
    sizes = [B * L] * 3 + [B * Lc] * 3
    outs, off = [], 0
    for sz in sizes:
        outs.append(att[off:off + sz, 0].reshape(B, -1))
        off += sz
    A = jnp.concatenate(outs, axis=-1)                         # (B, 3L+3Lc)
    return A @ params["fc_w"] + params["fc_b"]


# --------------------------------------------------------------------------
# Deterministic parameter init (synthetic; shapes match the module spec).
# Weights are pre-padded to 128 lanes and pre-cast to bf16; biases are
# pre-shaped (1, 128) f32 so no reshape/convert ops sit on the launch path.
# --------------------------------------------------------------------------
def init_params(key, emb_dim, hidden, out_size, txt_vocab, cpt_vocab, total_seq):
    keys = iter(jax.random.split(key, 64))

    def rn(shape, scale=0.1):
        return jax.random.normal(next(keys), shape, dtype=jnp.float32) * scale

    def pad_to(x, shape):
        return jnp.pad(x, [(0, t - s) for s, t in zip(x.shape, shape)])

    def w_mm(x, shape):             # matmul operand: zero-pad + bf16
        return pad_to(x, shape).astype(jnp.bfloat16)

    def bias(x):                    # (C,) -> (1, C_PAD) f32
        return pad_to(x.reshape(1, -1), (1, C_PAD)).astype(jnp.float32)

    num_channels = [C_TCN, C_TCN, C_TCN]
    blocks = []
    in_c = emb_dim
    for i, out_c in enumerate(num_channels):
        in_p = in_c if i == 0 else C_PAD
        blk = dict(
            w1a=w_mm(rn((in_c, out_c)), (in_p, C_PAD)),   # x[t-d] tap
            w1b=w_mm(rn((in_c, out_c)), (in_p, C_PAD)),   # x[t]   tap
            b1=bias(rn((out_c,))),
            w2a=w_mm(rn((out_c, out_c)), (C_PAD, C_PAD)),
            w2b=w_mm(rn((out_c, out_c)), (C_PAD, C_PAD)),
            b2=bias(rn((out_c,))),
        )
        if i == 0:
            if in_c != out_c:
                blk["down_w"] = w_mm(rn((in_c, out_c)), (in_p, C_PAD))
                blk["down_b"] = bias(rn((out_c,)))
            else:  # channels match -> identity residual expressed as 1x1 conv
                blk["down_w"] = w_mm(jnp.eye(in_c, dtype=jnp.float32),
                                     (in_p, C_PAD))
                blk["down_b"] = bias(jnp.zeros((out_c,), jnp.float32))
        blocks.append(blk)
        in_c = out_c

    # decoder Linear(100 -> hidden) folded with word_weight (hidden -> 1)
    dec_w = rn((num_channels[-1], hidden))
    dec_b = rn((hidden,))
    word_weight = rn((hidden, 1))
    att_w = w_mm(dec_w @ word_weight, (C_PAD, 1))
    att_b = (dec_b @ word_weight).reshape(1, 1).astype(jnp.float32)

    return dict(
        word_embed=rn((txt_vocab, emb_dim), 1.0),
        cpt_embed=rn((cpt_vocab, emb_dim), 1.0),
        blocks=blocks,
        att_w=att_w, att_b=att_b,
        con1_w=rn((emb_dim, emb_dim)), con1_b=rn((emb_dim,)),
        fc_w=rn((total_seq, out_size)), fc_b=rn((out_size,)),
    )


# --------------------------------------------------------------------------
if __name__ == "__main__":
    B = 2
    L_txt, L_cpt = 20, 20          # 3*L_txt + 3*L_cpt == 120 == fc in_features
    emb_dim, hidden, out_size = 32, 32, 4
    txt_vocab, cpt_vocab = 50, 40

    params = init_params(jax.random.PRNGKey(1), emb_dim, hidden, out_size,
                         txt_vocab, cpt_vocab, total_seq=3 * (L_txt + L_cpt))

    key = jax.random.PRNGKey(0)
    kx, kc = jax.random.split(key)
    x_ids = jax.random.randint(kx, (B, L_txt), 0, txt_vocab)
    cpt_ids = jax.random.randint(kc, (B, L_cpt), 0, cpt_vocab)

    forward = jax.jit(crfa_na_forward)
    logits = forward(x_ids, cpt_ids, params)
    logits = jax.block_until_ready(logits)

    assert logits.shape == (B, out_size), logits.shape
    assert jnp.all(jnp.isfinite(logits))
    print("KERNEL_OK")
</pallas_src>

<mosaic_0001>
module attributes {stable_mosaic.version = 11 : i64} {
  func.func @_crfa_fused_kernel(%arg0: memref<240x32xf32, #tpu.memory_space<vmem>>, %arg1: memref<240x240xbf16, #tpu.memory_space<vmem>>, %arg2: memref<240x240xbf16, #tpu.memory_space<vmem>>, %arg3: memref<240x240xbf16, #tpu.memory_space<vmem>>, %arg4: memref<32x128xbf16, #tpu.memory_space<vmem>>, %arg5: memref<32x128xbf16, #tpu.memory_space<vmem>>, %arg6: memref<1x128xf32, #tpu.memory_space<vmem>>, %arg7: memref<128x128xbf16, #tpu.memory_space<vmem>>, %arg8: memref<128x128xbf16, #tpu.memory_space<vmem>>, %arg9: memref<1x128xf32, #tpu.memory_space<vmem>>, %arg10: memref<32x128xbf16, #tpu.memory_space<vmem>>, %arg11: memref<1x128xf32, #tpu.memory_space<vmem>>, %arg12: memref<128x128xbf16, #tpu.memory_space<vmem>>, %arg13: memref<128x128xbf16, #tpu.memory_space<vmem>>, %arg14: memref<1x128xf32, #tpu.memory_space<vmem>>, %arg15: memref<128x128xbf16, #tpu.memory_space<vmem>>, %arg16: memref<128x128xbf16, #tpu.memory_space<vmem>>, %arg17: memref<1x128xf32, #tpu.memory_space<vmem>>, %arg18: memref<128x128xbf16, #tpu.memory_space<vmem>>, %arg19: memref<128x128xbf16, #tpu.memory_space<vmem>>, %arg20: memref<1x128xf32, #tpu.memory_space<vmem>>, %arg21: memref<128x128xbf16, #tpu.memory_space<vmem>>, %arg22: memref<128x128xbf16, #tpu.memory_space<vmem>>, %arg23: memref<1x128xf32, #tpu.memory_space<vmem>>, %arg24: memref<128x1xbf16, #tpu.memory_space<vmem>>, %arg25: memref<1x1xf32, #tpu.memory_space<vmem>>, %arg26: memref<240x1xf32, #tpu.memory_space<vmem>>) attributes {dimension_semantics = [], scalar_prefetch = 0 : i64, scratch_operands = 0 : i64, tpu.core_type = #tpu.core_type<tc>} {
    %c0 = arith.constant 0 : index
    %c0_0 = arith.constant 0 : index
    %0 = vector.load %arg0[%c0, %c0_0] : memref<240x32xf32, #tpu.memory_space<vmem>>, vector<240x32xf32>
    %1 = arith.truncf %0 : vector<240x32xf32> to vector<240x32xbf16>
    %c0_1 = arith.constant 0 : index
    %c0_2 = arith.constant 0 : index
    %2 = vector.load %arg1[%c0_1, %c0_2] : memref<240x240xbf16, #tpu.memory_space<vmem>>, vector<240x240xbf16>
    %cst = arith.constant dense<0.000000e+00> : vector<240x32xf32>
    %3 = tpu.matmul %2, %1, %cst {dimension_numbers = #tpu.dot_dimension_numbers<[1], [0], [0], [1], [0, 0, 1, 1], [], []>} : vector<240x240xbf16>, vector<240x32xbf16>, vector<240x32xf32> -> vector<240x32xf32>
    %4 = arith.truncf %3 : vector<240x32xf32> to vector<240x32xbf16>
    %c0_3 = arith.constant 0 : index
    %c0_4 = arith.constant 0 : index
    %5 = vector.load %arg5[%c0_3, %c0_4] : memref<32x128xbf16, #tpu.memory_space<vmem>>, vector<32x128xbf16>
    %cst_5 = arith.constant dense<0.000000e+00> : vector<240x128xf32>
    %6 = tpu.matmul %1, %5, %cst_5 {dimension_numbers = #tpu.dot_dimension_numbers<[1], [0], [0], [1], [0, 0, 1, 1], [], []>} : vector<240x32xbf16>, vector<32x128xbf16>, vector<240x128xf32> -> vector<240x128xf32>
    %c0_6 = arith.constant 0 : index
    %c0_7 = arith.constant 0 : index
    %7 = vector.load %arg4[%c0_6, %c0_7] : memref<32x128xbf16, #tpu.memory_space<vmem>>, vector<32x128xbf16>
    %cst_8 = arith.constant dense<0.000000e+00> : vector<240x128xf32>
    %8 = tpu.matmul %4, %7, %cst_8 {dimension_numbers = #tpu.dot_dimension_numbers<[1], [0], [0], [1], [0, 0, 1, 1], [], []>} : vector<240x32xbf16>, vector<32x128xbf16>, vector<240x128xf32> -> vector<240x128xf32>
    %9 = arith.addf %6, %8 : vector<240x128xf32>
    %c0_9 = arith.constant 0 : index
    %c0_10 = arith.constant 0 : index
    %10 = vector.load %arg6[%c0_9, %c0_10] : memref<1x128xf32, #tpu.memory_space<vmem>>, vector<1x128xf32>
    %11 = vector.broadcast %10 : vector<1x128xf32> to vector<240x128xf32>
    %12 = arith.addf %9, %11 : vector<240x128xf32>
    %cst_11 = arith.constant 0.000000e+00 : f32
    %13 = vector.broadcast %cst_11 : f32 to vector<240x128xf32>
    %14 = arith.maximumf %12, %13 : vector<240x128xf32>
    %15 = arith.truncf %14 : vector<240x128xf32> to vector<240x128xbf16>
    %c0_12 = arith.constant 0 : index
    %c0_13 = arith.constant 0 : index
    %16 = vector.load %arg1[%c0_12, %c0_13] : memref<240x240xbf16, #tpu.memory_space<vmem>>, vector<240x240xbf16>
    %cst_14 = arith.constant dense<0.000000e+00> : vector<240x128xf32>
    %17 = tpu.matmul %16, %15, %cst_14 {dimension_numbers = #tpu.dot_dimension_numbers<[1], [0], [0], [1], [0, 0, 1, 1], [], []>} : vector<240x240xbf16>, vector<240x128xbf16>, vector<240x128xf32> -> vector<240x128xf32>
    %18 = arith.truncf %17 : vector<240x128xf32> to vector<240x128xbf16>
    %c0_15 = arith.constant 0 : index
    %c0_16 = arith.constant 0 : index
    %19 = vector.load %arg8[%c0_15, %c0_16] : memref<128x128xbf16, #tpu.memory_space<vmem>>, vector<128x128xbf16>
    %cst_17 = arith.constant dense<0.000000e+00> : vector<240x128xf32>
    %20 = tpu.matmul %15, %19, %cst_17 {dimension_numbers = #tpu.dot_dimension_numbers<[1], [0], [0], [1], [0, 0, 1, 1], [], []>} : vector<240x128xbf16>, vector<128x128xbf16>, vector<240x128xf32> -> vector<240x128xf32>
    %c0_18 = arith.constant 0 : index
    %c0_19 = arith.constant 0 : index
    %21 = vector.load %arg7[%c0_18, %c0_19] : memref<128x128xbf16, #tpu.memory_space<vmem>>, vector<128x128xbf16>
    %cst_20 = arith.constant dense<0.000000e+00> : vector<240x128xf32>
    %22 = tpu.matmul %18, %21, %cst_20 {dimension_numbers = #tpu.dot_dimension_numbers<[1], [0], [0], [1], [0, 0, 1, 1], [], []>} : vector<240x128xbf16>, vector<128x128xbf16>, vector<240x128xf32> -> vector<240x128xf32>
    %23 = arith.addf %20, %22 : vector<240x128xf32>
    %c0_21 = arith.constant 0 : index
    %c0_22 = arith.constant 0 : index
    %24 = vector.load %arg9[%c0_21, %c0_22] : memref<1x128xf32, #tpu.memory_space<vmem>>, vector<1x128xf32>
    %25 = vector.broadcast %24 : vector<1x128xf32> to vector<240x128xf32>
    %26 = arith.addf %23, %25 : vector<240x128xf32>
    %cst_23 = arith.constant 0.000000e+00 : f32
    %27 = vector.broadcast %cst_23 : f32 to vector<240x128xf32>
    %28 = arith.maximumf %26, %27 : vector<240x128xf32>
    %29 = arith.truncf %0 : vector<240x32xf32> to vector<240x32xbf16>
    %c0_24 = arith.constant 0 : index
    %c0_25 = arith.constant 0 : index
    %30 = vector.load %arg10[%c0_24, %c0_25] : memref<32x128xbf16, #tpu.memory_space<vmem>>, vector<32x128xbf16>
    %cst_26 = arith.constant dense<0.000000e+00> : vector<240x128xf32>
    %31 = tpu.matmul %29, %30, %cst_26 {dimension_numbers = #tpu.dot_dimension_numbers<[1], [0], [0], [1], [0, 0, 1, 1], [], []>} : vector<240x32xbf16>, vector<32x128xbf16>, vector<240x128xf32> -> vector<240x128xf32>
    %c0_27 = arith.constant 0 : index
    %c0_28 = arith.constant 0 : index
    %32 = vector.load %arg11[%c0_27, %c0_28] : memref<1x128xf32, #tpu.memory_space<vmem>>, vector<1x128xf32>
    %33 = vector.broadcast %32 : vector<1x128xf32> to vector<240x128xf32>
    %34 = arith.addf %31, %33 : vector<240x128xf32>
    %35 = arith.addf %28, %34 : vector<240x128xf32>
    %cst_29 = arith.constant 0.000000e+00 : f32
    %36 = vector.broadcast %cst_29 : f32 to vector<240x128xf32>
    %37 = arith.maximumf %35, %36 : vector<240x128xf32>
    %38 = arith.truncf %37 : vector<240x128xf32> to vector<240x128xbf16>
    %c0_30 = arith.constant 0 : index
    %c0_31 = arith.constant 0 : index
    %39 = vector.load %arg2[%c0_30, %c0_31] : memref<240x240xbf16, #tpu.memory_space<vmem>>, vector<240x240xbf16>
    %cst_32 = arith.constant dense<0.000000e+00> : vector<240x128xf32>
    %40 = tpu.matmul %39, %38, %cst_32 {dimension_numbers = #tpu.dot_dimension_numbers<[1], [0], [0], [1], [0, 0, 1, 1], [], []>} : vector<240x240xbf16>, vector<240x128xbf16>, vector<240x128xf32> -> vector<240x128xf32>
    %41 = arith.truncf %40 : vector<240x128xf32> to vector<240x128xbf16>
    %c0_33 = arith.constant 0 : index
    %c0_34 = arith.constant 0 : index
    %42 = vector.load %arg13[%c0_33, %c0_34] : memref<128x128xbf16, #tpu.memory_space<vmem>>, vector<128x128xbf16>
    %cst_35 = arith.constant dense<0.000000e+00> : vector<240x128xf32>
    %43 = tpu.matmul %38, %42, %cst_35 {dimension_numbers = #tpu.dot_dimension_numbers<[1], [0], [0], [1], [0, 0, 1, 1], [], []>} : vector<240x128xbf16>, vector<128x128xbf16>, vector<240x128xf32> -> vector<240x128xf32>
    %c0_36 = arith.constant 0 : index
    %c0_37 = arith.constant 0 : index
    %44 = vector.load %arg12[%c0_36, %c0_37] : memref<128x128xbf16, #tpu.memory_space<vmem>>, vector<128x128xbf16>
    %cst_38 = arith.constant dense<0.000000e+00> : vector<240x128xf32>
    %45 = tpu.matmul %41, %44, %cst_38 {dimension_numbers = #tpu.dot_dimension_numbers<[1], [0], [0], [1], [0, 0, 1, 1], [], []>} : vector<240x128xbf16>, vector<128x128xbf16>, vector<240x128xf32> -> vector<240x128xf32>
    %46 = arith.addf %43, %45 : vector<240x128xf32>
    %c0_39 = arith.constant 0 : index
    %c0_40 = arith.constant 0 : index
    %47 = vector.load %arg14[%c0_39, %c0_40] : memref<1x128xf32, #tpu.memory_space<vmem>>, vector<1x128xf32>
    %48 = vector.broadcast %47 : vector<1x128xf32> to vector<240x128xf32>
    %49 = arith.addf %46, %48 : vector<240x128xf32>
    %cst_41 = arith.constant 0.000000e+00 : f32
    %50 = vector.broadcast %cst_41 : f32 to vector<240x128xf32>
    %51 = arith.maximumf %49, %50 : vector<240x128xf32>
    %52 = arith.truncf %51 : vector<240x128xf32> to vector<240x128xbf16>
    %c0_42 = arith.constant 0 : index
    %c0_43 = arith.constant 0 : index
    %53 = vector.load %arg2[%c0_42, %c0_43] : memref<240x240xbf16, #tpu.memory_space<vmem>>, vector<240x240xbf16>
    %cst_44 = arith.constant dense<0.000000e+00> : vector<240x128xf32>
    %54 = tpu.matmul %53, %52, %cst_44 {dimension_numbers = #tpu.dot_dimension_numbers<[1], [0], [0], [1], [0, 0, 1, 1], [], []>} : vector<240x240xbf16>, vector<240x128xbf16>, vector<240x128xf32> -> vector<240x128xf32>
    %55 = arith.truncf %54 : vector<240x128xf32> to vector<240x128xbf16>
    %c0_45 = arith.constant 0 : index
    %c0_46 = arith.constant 0 : index
    %56 = vector.load %arg16[%c0_45, %c0_46] : memref<128x128xbf16, #tpu.memory_space<vmem>>, vector<128x128xbf16>
    %cst_47 = arith.constant dense<0.000000e+00> : vector<240x128xf32>
    %57 = tpu.matmul %52, %56, %cst_47 {dimension_numbers = #tpu.dot_dimension_numbers<[1], [0], [0], [1], [0, 0, 1, 1], [], []>} : vector<240x128xbf16>, vector<128x128xbf16>, vector<240x128xf32> -> vector<240x128xf32>
    %c0_48 = arith.constant 0 : index
    %c0_49 = arith.constant 0 : index
    %58 = vector.load %arg15[%c0_48, %c0_49] : memref<128x128xbf16, #tpu.memory_space<vmem>>, vector<128x128xbf16>
    %cst_50 = arith.constant dense<0.000000e+00> : vector<240x128xf32>
    %59 = tpu.matmul %55, %58, %cst_50 {dimension_numbers = #tpu.dot_dimension_numbers<[1], [0], [0], [1], [0, 0, 1, 1], [], []>} : vector<240x128xbf16>, vector<128x128xbf16>, vector<240x128xf32> -> vector<240x128xf32>
    %60 = arith.addf %57, %59 : vector<240x128xf32>
    %c0_51 = arith.constant 0 : index
    %c0_52 = arith.constant 0 : index
    %61 = vector.load %arg17[%c0_51, %c0_52] : memref<1x128xf32, #tpu.memory_space<vmem>>, vector<1x128xf32>
    %62 = vector.broadcast %61 : vector<1x128xf32> to vector<240x128xf32>
    %63 = arith.addf %60, %62 : vector<240x128xf32>
    %cst_53 = arith.constant 0.000000e+00 : f32
    %64 = vector.broadcast %cst_53 : f32 to vector<240x128xf32>
    %65 = arith.maximumf %63, %64 : vector<240x128xf32>
    %66 = arith.addf %65, %37 : vector<240x128xf32>
    %cst_54 = arith.constant 0.000000e+00 : f32
    %67 = vector.broadcast %cst_54 : f32 to vector<240x128xf32>
    %68 = arith.maximumf %66, %67 : vector<240x128xf32>
    %69 = arith.truncf %68 : vector<240x128xf32> to vector<240x128xbf16>
    %c0_55 = arith.constant 0 : index
    %c0_56 = arith.constant 0 : index
    %70 = vector.load %arg3[%c0_55, %c0_56] : memref<240x240xbf16, #tpu.memory_space<vmem>>, vector<240x240xbf16>
    %cst_57 = arith.constant dense<0.000000e+00> : vector<240x128xf32>
    %71 = tpu.matmul %70, %69, %cst_57 {dimension_numbers = #tpu.dot_dimension_numbers<[1], [0], [0], [1], [0, 0, 1, 1], [], []>} : vector<240x240xbf16>, vector<240x128xbf16>, vector<240x128xf32> -> vector<240x128xf32>
    %72 = arith.truncf %71 : vector<240x128xf32> to vector<240x128xbf16>
    %c0_58 = arith.constant 0 : index
    %c0_59 = arith.constant 0 : index
    %73 = vector.load %arg19[%c0_58, %c0_59] : memref<128x128xbf16, #tpu.memory_space<vmem>>, vector<128x128xbf16>
    %cst_60 = arith.constant dense<0.000000e+00> : vector<240x128xf32>
    %74 = tpu.matmul %69, %73, %cst_60 {dimension_numbers = #tpu.dot_dimension_numbers<[1], [0], [0], [1], [0, 0, 1, 1], [], []>} : vector<240x128xbf16>, vector<128x128xbf16>, vector<240x128xf32> -> vector<240x128xf32>
    %c0_61 = arith.constant 0 : index
    %c0_62 = arith.constant 0 : index
    %75 = vector.load %arg18[%c0_61, %c0_62] : memref<128x128xbf16, #tpu.memory_space<vmem>>, vector<128x128xbf16>
    %cst_63 = arith.constant dense<0.000000e+00> : vector<240x128xf32>
    %76 = tpu.matmul %72, %75, %cst_63 {dimension_numbers = #tpu.dot_dimension_numbers<[1], [0], [0], [1], [0, 0, 1, 1], [], []>} : vector<240x128xbf16>, vector<128x128xbf16>, vector<240x128xf32> -> vector<240x128xf32>
    %77 = arith.addf %74, %76 : vector<240x128xf32>
    %c0_64 = arith.constant 0 : index
    %c0_65 = arith.constant 0 : index
    %78 = vector.load %arg20[%c0_64, %c0_65] : memref<1x128xf32, #tpu.memory_space<vmem>>, vector<1x128xf32>
    %79 = vector.broadcast %78 : vector<1x128xf32> to vector<240x128xf32>
    %80 = arith.addf %77, %79 : vector<240x128xf32>
    %cst_66 = arith.constant 0.000000e+00 : f32
    %81 = vector.broadcast %cst_66 : f32 to vector<240x128xf32>
    %82 = arith.maximumf %80, %81 : vector<240x128xf32>
    %83 = arith.truncf %82 : vector<240x128xf32> to vector<240x128xbf16>
    %c0_67 = arith.constant 0 : index
    %c0_68 = arith.constant 0 : index
    %84 = vector.load %arg3[%c0_67, %c0_68] : memref<240x240xbf16, #tpu.memory_space<vmem>>, vector<240x240xbf16>
    %cst_69 = arith.constant dense<0.000000e+00> : vector<240x128xf32>
    %85 = tpu.matmul %84, %83, %cst_69 {dimension_numbers = #tpu.dot_dimension_numbers<[1], [0], [0], [1], [0, 0, 1, 1], [], []>} : vector<240x240xbf16>, vector<240x128xbf16>, vector<240x128xf32> -> vector<240x128xf32>
    %86 = arith.truncf %85 : vector<240x128xf32> to vector<240x128xbf16>
    %c0_70 = arith.constant 0 : index
    %c0_71 = arith.constant 0 : index
    %87 = vector.load %arg22[%c0_70, %c0_71] : memref<128x128xbf16, #tpu.memory_space<vmem>>, vector<128x128xbf16>
    %cst_72 = arith.constant dense<0.000000e+00> : vector<240x128xf32>
    %88 = tpu.matmul %83, %87, %cst_72 {dimension_numbers = #tpu.dot_dimension_numbers<[1], [0], [0], [1], [0, 0, 1, 1], [], []>} : vector<240x128xbf16>, vector<128x128xbf16>, vector<240x128xf32> -> vector<240x128xf32>
    %c0_73 = arith.constant 0 : index
    %c0_74 = arith.constant 0 : index
    %89 = vector.load %arg21[%c0_73, %c0_74] : memref<128x128xbf16, #tpu.memory_space<vmem>>, vector<128x128xbf16>
    %cst_75 = arith.constant dense<0.000000e+00> : vector<240x128xf32>
    %90 = tpu.matmul %86, %89, %cst_75 {dimension_numbers = #tpu.dot_dimension_numbers<[1], [0], [0], [1], [0, 0, 1, 1], [], []>} : vector<240x128xbf16>, vector<128x128xbf16>, vector<240x128xf32> -> vector<240x128xf32>
    %91 = arith.addf %88, %90 : vector<240x128xf32>
    %c0_76 = arith.constant 0 : index
    %c0_77 = arith.constant 0 : index
    %92 = vector.load %arg23[%c0_76, %c0_77] : memref<1x128xf32, #tpu.memory_space<vmem>>, vector<1x128xf32>
    %93 = vector.broadcast %92 : vector<1x128xf32> to vector<240x128xf32>
    %94 = arith.addf %91, %93 : vector<240x128xf32>
    %cst_78 = arith.constant 0.000000e+00 : f32
    %95 = vector.broadcast %cst_78 : f32 to vector<240x128xf32>
    %96 = arith.maximumf %94, %95 : vector<240x128xf32>
    %97 = arith.addf %96, %68 : vector<240x128xf32>
    %cst_79 = arith.constant 0.000000e+00 : f32
    %98 = vector.broadcast %cst_79 : f32 to vector<240x128xf32>
    %99 = arith.maximumf %97, %98 : vector<240x128xf32>
    %100 = arith.truncf %99 : vector<240x128xf32> to vector<240x128xbf16>
    %c0_80 = arith.constant 0 : index
    %c0_81 = arith.constant 0 : index
    %101 = vector.load %arg24[%c0_80, %c0_81] : memref<128x1xbf16, #tpu.memory_space<vmem>>, vector<128x1xbf16>
    %cst_82 = arith.constant dense<0.000000e+00> : vector<240x1xf32>
    %102 = tpu.matmul %100, %101, %cst_82 {dimension_numbers = #tpu.dot_dimension_numbers<[1], [0], [0], [1], [0, 0, 1, 1], [], []>} : vector<240x128xbf16>, vector<128x1xbf16>, vector<240x1xf32> -> vector<240x1xf32>
    %c0_83 = arith.constant 0 : index
    %c0_84 = arith.constant 0 : index
    %103 = vector.load %arg25[%c0_83, %c0_84] : memref<1x1xf32, #tpu.memory_space<vmem>>, vector<1x1xf32>
    %104 = vector.broadcast %103 : vector<1x1xf32> to vector<240x1xf32>
    %105 = arith.addf %102, %104 : vector<240x1xf32>
    %c0_85 = arith.constant 0 : index
    %c0_86 = arith.constant 0 : index
    %106 = vector.load %arg26[%c0_85, %c0_86] : memref<240x1xf32, #tpu.memory_space<vmem>>, vector<240x1xf32>
    tpu.vector_store %arg26[%c0_85, %c0_86], %105 {strides = array<i32>} : memref<240x1xf32, #tpu.memory_space<vmem>>, vector<240x1xf32>,
    return
  }
}

</mosaic_0001>

<bundles_post_ra>
// kernel: squeeze.11
= control target key start
LH: loop header
LB: loop body
LE: loop exit
PB: predicated region body
PF: predicated region fallthrough
CT: control target
= control target key end

     0   :  { %vm19_vm0 = vcmask 162816   ;;  %v38_v6 = vmov 0.0   ;;  %s55_s0 = inlined_call_operand.vmem [shape: bf16[40], index: 0, kind: input, shape index: {}]   ;;  %s56_s1 = inlined_call_operand.vmem [shape: bf16[2,20], index: 1, kind: output, shape index: {}]  }
   0x1   :  { %v14_v0 = vld [vmem:[%s55_s0] sm:$0x1]  ;;  %s37_s0 = smov 108  }
   0x2   :  { %v15_v1 = vunpack.c.l.bf16 %v14_v0 }
   0x4   :  { %17 = vst [vmem:[#allocation1] sm:$0x3] %v15_v1 }
   0xb   :  { %v21_v2 = vld [vmem:[#allocation1] sm:$0x1]  }
   0xc   :  { %v18_v3 = vld [vmem:[#allocation1] sm:$0x1]   ;;  %22 = vrot.lane.b32.xlu0 %v21_v2, %s37_s0 }
   0xd   :  { %20 = vst.msk [vmem:[#allocation0] sm:$0x1] %vm19_vm0, %v18_v3  }
  0x7e   :  { %v23_v4 = vpop.permute.xlu0 %22  }
  0x7f   :  { %26 = vst.msk [vmem:[#allocation0 + $0x1] sm:$0x1] %vm19_vm0, %v23_v4  }
  0x86   :  { %v31_v5 = vld [vmem:[#allocation0] sm:$0x3] }
  0x87   :  { %v32_v7 = vpack.c.bf16 %v38_v6, %v31_v5 }
  0x89   :  { %34 = vst [vmem:[%s56_s1] sm:$0x1] %v32_v7 }

// kernel: crfa_na_forward.1
= control target key start
LH: loop header
LB: loop body
LE: loop exit
PB: predicated region body
PF: predicated region fallthrough
CT: control target
= control target key end

     0   :  { %v11149_v0 = vmov 0   ;;  %vm296_vm0 = vcmask 916480   ;;  %v11117_v42 = vmov 0.0   ;;  %vm7458_vm1 = vmmov 0   ;;  %s11082_s0 = inlined_call_operand.vmem [shape: f32[240,32], index: 0, kind: input, shape index: {}]   ;;  %s11083_s1 = inlined_call_operand.vmem [shape: bf16[240,240], index: 1, kind: input, shape index: {}]   ;;  %s11084_s4 = inlined_call_operand.vmem [shape: bf16[32,128], index: 4, kind: input, shape index: {}]   ;;  %s11085_s5 = inlined_call_operand.vmem [shape: bf16[32,128], index: 5, kind: input, shape index: {}]   ;;  %s11086_s6 = inlined_call_operand.vmem [shape: f32[1,128], index: 6, kind: input, shape index: {}]   ;;  %s11087_s8 = inlined_call_operand.vmem [shape: bf16[128,128], index: 8, kind: input, shape index: {}]   ;;  %s11088_s7 = inlined_call_operand.vmem [shape: bf16[128,128], index: 7, kind: input, shape index: {}]   ;;  %s11089_s10 = inlined_call_operand.vmem [shape: bf16[32,128], index: 10, kind: input, shape index: {}]   ;;  %s11090_s9 = inlined_call_operand.vmem [shape: f32[1,128], index: 9, kind: input, shape index: {}]   ;;  %s11091_s2 = inlined_call_operand.vmem [shape: bf16[240,240], index: 2, kind: input, shape index: {}]   ;;  %s11092_s11 = inlined_call_operand.vmem [shape: f32[1,128], index: 11, kind: input, shape index: {}]   ;;  %s11093_s13 = inlined_call_operand.vmem [shape: bf16[128,128], index: 13, kind: input, shape index: {}]   ;;  %s11094_s12 = inlined_call_operand.vmem [shape: bf16[128,128], index: 12, kind: input, shape index: {}]   ;;  %s11095_s14 = inlined_call_operand.vmem [shape: f32[1,128], index: 14, kind: input, shape index: {}]   ;;  %s11096_s16 = inlined_call_operand.vmem [shape: bf16[128,128], index: 16, kind: input, shape index: {}]   ;;  %s11097_s15 = inlined_call_operand.vmem [shape: bf16[128,128], index: 15, kind: input, shape index: {}]   ;;  %s11098_s17 = inlined_call_operand.vmem [shape: f32[1,128], index: 17, kind: input, shape index: {}]   ;;  %s11099_s3 = inlined_call_operand.vmem [shape: bf16[240,240], index: 3, kind: input, shape index: {}]   ;;  %s11100_s19 = inlined_call_operand.vmem [shape: bf16[128,128], index: 19, kind: input, shape index: {}]   ;;  %s11101_s18 = inlined_call_operand.vmem [shape: bf16[128,128], index: 18, kind: input, shape index: {}]   ;;  %s11102_s20 = inlined_call_operand.vmem [shape: f32[1,128], index: 20, kind: input, shape index: {}]   ;;  %s11103_s22 = inlined_call_operand.vmem [shape: bf16[128,128], index: 22, kind: input, shape index: {}]   ;;  %s11104_s21 = inlined_call_operand.vmem [shape: bf16[128,128], index: 21, kind: input, shape index: {}]   ;;  %s11105_s24 = inlined_call_operand.vmem [shape: bf16[128,1], index: 24, kind: input, shape index: {}]   ;;  %s11106_s23 = inlined_call_operand.vmem [shape: f32[1,128], index: 23, kind: input, shape index: {}]   ;;  %s11107_s25 = inlined_call_operand.<no memory space> [shape: f32[1,1], index: 25, kind: input, shape index: {}]   ;;  %s11108_s26 = inlined_call_operand.vmem [shape: f32[240,1], index: 26, kind: output, shape index: {}]  }
   0x1   :  { %11216 = sst [smem:[#allocation21_spill]] %s11082_s0  ;;  %342 = vmatprep.subr.bf16.mxu0 %v11149_v0  ;;  %6107 = vmatprep.subr.bf16.mxu1 %v11117_v42  ;;  %vm530_vm2 = vcmask 261120   ;;  %vm5441_vm3 = vcmask 7168  }
   0x2   :  { %11217 = sst [smem:[#allocation22_spill]] %s11083_s1  ;;  %6111 = vmatprep.mubr.msk.bf16.mxu1 %vm7458_vm1, %v11117_v42 }
   0x3   :  { %11218 = sst [smem:[#allocation23_spill]] %s11084_s4 }
   0x4   :  { %11219 = sst [smem:[#allocation24_spill]] %s11085_s5  ;;  %s11229_s0 = sld [smem:[#allocation23_spill]] }
   0x5   :  { %11220 = sst [smem:[#allocation25_spill]] %s11086_s6  ;;  %s11228_s6 = sld [smem:[#allocation22_spill]] }
   0x6   :  { %11221 = sst [smem:[#allocation26_spill]] %s11087_s8  ;;  %s11230_s4 = sld [smem:[#allocation24_spill]] }
   0x7   :  { %11222 = sst [smem:[#allocation27_spill]] %s11088_s7  ;;  %s11231_s1 = sld [smem:[#allocation25_spill]] }
   0x8   :  { %11223 = sst [smem:[#allocation28_spill]] %s11089_s10  ;;  %s11227_s10 = sld [smem:[#allocation21_spill]] }
   0x9   :  { %11224 = sst [smem:[#allocation29_spill]] %s11090_s9  ;;  %s11232_s28 = sld [smem:[#allocation27_spill]] }
   0xa   :  { %11225 = sst [smem:[#allocation30_spill]] %s11091_s2  ;;  %v7199_v43 = vld [vmem:[%s11229_s0] sm:$0xff]   ;;  %s11234_s30 = sld [smem:[#allocation26_spill]] }
   0xb   :  { %11226 = sst [smem:[#allocation31_spill]] %s11092_s11  ;;  %v7635_v13 = vld [vmem:[%s11228_s6 + $0x4] ss:$8 sps:$4 sm:$0xff]   ;;  %6108 = vmatpush3.bf16.msra.mxu1 %v7199_v43  ;;  %v7758_v49 = vld [vmem:[%s11228_s6] ss:$8 sps:$4 sm:$0xff]   ;;  %s11237_s2 = sld [smem:[#allocation30_spill]] }
   0xc   :  { %5506 = vmatprep.mubr.msk.bf16.mxu0 %vm296_vm0, %v7635_v13  ;;  %6109 = vmatprep.subr.bf16.mxu1 %v11117_v42  ;;  %v7764_v50 = vld [vmem:[%s11228_s6 + $0x14] ss:$8 sps:$4 sm:$0xff]   ;;  %v7159_v51 = vld [vmem:[%s11228_s6 + $0x10] ss:$8 sps:$4 sm:$0xff]   ;;  %v7160_v52 = vld [vmem:[%s11228_s6 + $0x24] ss:$8 sps:$4 sm:$0xff]  }
   0xd   :  { %v7162_v53 = vld [vmem:[%s11228_s6 + $0x20] ss:$8 sps:$4 sm:$0xff]   ;;  %v7163_v54 = vld [vmem:[%s11228_s6 + $0x34] ss:$8 sps:$4 sm:$0xff]   ;;  %v7165_v55 = vld [vmem:[%s11228_s6 + $0x30] ss:$8 sps:$4 sm:$0xff]  }
   0xe   :  { %v86_v1 = vld [vmem:[%s11227_s10] sm:$0xff]  ;;  %v87_v2 = vld [vmem:[%s11227_s10 + $0x8] sm:$0xff]  ;;  %v88_v3 = vld [vmem:[%s11227_s10 + $0x10] sm:$0xff]  ;;  %s11238_s8 = sld [smem:[#allocation31_spill]] }
   0xf   :  { %v7604_v4 = vpack.c.bf16 %v87_v2, %v86_v1  ;;  %v89_v5 = vld [vmem:[%s11227_s10 + $0x18] sm:$0xff]  ;;  %v90_v7 = vld [vmem:[%s11227_s10 + $0x20] sm:$0xff]  ;;  %v91_v8 = vld [vmem:[%s11227_s10 + $0x28] sm:$0xff] }
  0x10   :  { %v7610_v6 = vpack.c.bf16 %v89_v5, %v88_v3  ;;  %v7620_v9 = vpack.c.bf16 %v91_v8, %v90_v7  ;;  %v92_v10 = vld [vmem:[%s11227_s10 + $0x30] sm:$0xff]  ;;  %v93_v11 = vld [vmem:[%s11227_s10 + $0x38] sm:$0xff]  ;;  %v94_v14 = vld [vmem:[%s11227_s10 + $0x40] sm:$0xff] }
  0x11   :  { %343 = vmatpush1.bf16.msra.mxu0 %v7604_v4  ;;  %v7630_v12 = vpack.c.bf16 %v93_v11, %v92_v10  ;;  %v95_v15 = vld [vmem:[%s11227_s10 + $0x48] sm:$0xff]  ;;  %v96_v17 = vld [vmem:[%s11227_s10 + $0x50] sm:$0xff]  ;;  %v97_v18 = vld [vmem:[%s11227_s10 + $0x58] sm:$0xff] }
  0x12   :  { %344 = vmatprep.subr.bf16.mxu0 %v11149_v0  ;;  %v7647_v16 = vpack.c.bf16 %v95_v15, %v94_v14  ;;  %v7657_v19 = vpack.c.bf16 %v97_v18, %v96_v17  ;;  %v98_v20 = vld [vmem:[%s11227_s10 + $0x60] sm:$0xff]  ;;  %v99_v21 = vld [vmem:[%s11227_s10 + $0x68] sm:$0xff]  ;;  %v100_v23 = vld [vmem:[%s11227_s10 + $0x70] sm:$0xff] }
  0x13   :  { %v7667_v22 = vpack.c.bf16 %v99_v21, %v98_v20  ;;  %v101_v24 = vld [vmem:[%s11227_s10 + $0x78] sm:$0xff]  ;;  %v102_v26 = vld [vmem:[%s11227_s10 + $0x80] sm:$0xff]  ;;  %v103_v27 = vld [vmem:[%s11227_s10 + $0x88] sm:$0xff] }
  0x14   :  { %v7677_v25 = vpack.c.bf16 %v101_v24, %v100_v23  ;;  %v7687_v28 = vpack.c.bf16 %v103_v27, %v102_v26  ;;  %v104_v29 = vld [vmem:[%s11227_s10 + $0x90] sm:$0xff]  ;;  %v105_v30 = vld [vmem:[%s11227_s10 + $0x98] sm:$0xff]  ;;  %v106_v32 = vld [vmem:[%s11227_s10 + $0xa0] sm:$0xff] }
  0x15   :  { %345 = vmatpush1.bf16.msra.mxu0 %v7610_v6  ;;  %v7697_v31 = vpack.c.bf16 %v105_v30, %v104_v29  ;;  %v107_v33 = vld [vmem:[%s11227_s10 + $0xa8] sm:$0xff]  ;;  %v108_v35 = vld [vmem:[%s11227_s10 + $0xb0] sm:$0xff]  ;;  %v109_v36 = vld [vmem:[%s11227_s10 + $0xb8] sm:$0xff] }
  0x16   :  { %346 = vmatprep.subr.bf16.mxu0 %v11149_v0  ;;  %v7707_v34 = vpack.c.bf16 %v107_v33, %v106_v32  ;;  %v7717_v37 = vpack.c.bf16 %v109_v36, %v108_v35  ;;  %v110_v38 = vld [vmem:[%s11227_s10 + $0xc0] sm:$0xff]  ;;  %v111_v39 = vld [vmem:[%s11227_s10 + $0xc8] sm:$0xff]  ;;  %v112_v40 = vld [vmem:[%s11227_s10 + $0xd0] sm:$0xff] }
  0x17   :  { %v7730_v41 = vpack.c.bf16 %v111_v39, %v110_v38  ;;  %v113_v44 = vld [vmem:[%s11227_s10 + $0xd8] sm:$0xff]  ;;  %v114_v46 = vld [vmem:[%s11227_s10 + $0xe0] sm:$0xff]  ;;  %v115_v47 = vld [vmem:[%s11227_s10 + $0xe8] sm:$0xff]  ;;  %s11236_s10 = sld [smem:[#allocation29_spill]] }
  0x18   :  { %v7742_v45 = vpack.c.bf16 %v113_v44, %v112_v40  ;;  %v7752_v48 = vpack.c.bf16 %v115_v47, %v114_v46  ;;  %v7166_v56 = vld [vmem:[%s11228_s6 + $0x44] ss:$8 sps:$4 sm:$0xff]   ;;  %v7168_v57 = vld [vmem:[%s11228_s6 + $0x40] ss:$8 sps:$4 sm:$0xff]   ;;  %v7169_v58 = vld [vmem:[%s11228_s6 + $0x54] ss:$8 sps:$4 sm:$0xff]  }
  0x19   :  { %347 = vmatpush1.bf16.msra.mxu0 %v7620_v9  ;;  %v7171_v59 = vld [vmem:[%s11228_s6 + $0x50] ss:$8 sps:$4 sm:$0xff]   ;;  %v7172_v60 = vld [vmem:[%s11228_s6 + $0x64] ss:$8 sps:$4 sm:$0xff]   ;;  %v7174_v61 = vld [vmem:[%s11228_s6 + $0x60] ss:$8 sps:$4 sm:$0xff]  }
  0x1a   :  { %348 = vmatprep.subr.bf16.mxu0 %v11149_v0  ;;  %v7175_v62 = vld [vmem:[%s11228_s6 + $0x74] ss:$8 sps:$4 sm:$0xff]   ;;  %v7177_v63 = vld [vmem:[%s11228_s6 + $0x70] ss:$8 sps:$4 sm:$0xff]   ;;  %v7178_v1 = vld [vmem:[%s11228_s6 + $0x84] ss:$8 sps:$4 sm:$0xff]  }
  0x1b   :  { %v7180_v2 = vld [vmem:[%s11228_s6 + $0x80] ss:$8 sps:$4 sm:$0xff]   ;;  %v7181_v3 = vld [vmem:[%s11228_s6 + $0x94] ss:$8 sps:$4 sm:$0xff]   ;;  %v7183_v5 = vld [vmem:[%s11228_s6 + $0x90] ss:$8 sps:$4 sm:$0xff]  }
  0x1c   :  { %v7184_v7 = vld [vmem:[%s11228_s6 + $0xa4] ss:$8 sps:$4 sm:$0xff]   ;;  %v7186_v8 = vld [vmem:[%s11228_s6 + $0xa0] ss:$8 sps:$4 sm:$0xff]   ;;  %v7187_v10 = vld [vmem:[%s11228_s6 + $0xb4] ss:$8 sps:$4 sm:$0xff]  }
  0x1d   :  { %349 = vmatpush1.bf16.msra.mxu0 %v7630_v12  ;;  %v7200_v11 = vld [vmem:[%s11229_s0 + $0x8] sm:$0xff]   ;;  %v7189_v14 = vld [vmem:[%s11228_s6 + $0xb0] ss:$8 sps:$4 sm:$0xff]   ;;  %v7193_v18 = vld [vmem:[%s11228_s6 + $0xd4] ss:$8 sps:$4 sm:$0xff]   ;;  %s11235_s0 = sld [smem:[#allocation28_spill]] }
  0x1e   :  { %350 = vmatprep.subr.bf16.mxu0 %v11149_v0  ;;  %v7190_v15 = vld [vmem:[%s11228_s6 + $0xc4] ss:$8 sps:$4 sm:$0xff]   ;;  %6110 = vmatpush3.bf16.msra.mxu1 %v7200_v11  ;;  %v7192_v17 = vld [vmem:[%s11228_s6 + $0xc0] ss:$8 sps:$4 sm:$0xff]   ;;  %v7195_v20 = vld [vmem:[%s11228_s6 + $0xd0] ss:$8 sps:$4 sm:$0xff]  }
  0x1f   :  { %6171 = vmatprep.subr.bf16.mxu1 %v11117_v42  ;;  %v7196_v21 = vld [vmem:[%s11228_s6 + $0xe4] ss:$8 sps:$4 sm:$0xff]   ;;  %v7198_v23 = vld [vmem:[%s11228_s6 + $0xe0] ss:$8 sps:$4 sm:$0xff]  }
  0x20   :  { %v7201_v29 = vld [vmem:[%s11230_s4] sm:$0xff]  }
  0x21   :  { %351 = vmatpush1.bf16.msra.mxu0 %v7647_v16 }
  0x22   :  { %352 = vmatprep.subr.bf16.mxu0 %v11149_v0 }
  0x25   :  { %353 = vmatpush1.bf16.msra.mxu0 %v7657_v19 }
  0x26   :  { %354 = vmatprep.subr.bf16.mxu0 %v11149_v0 }
  0x29   :  { %355 = vmatpush1.bf16.msra.mxu0 %v7667_v22 }
  0x2a   :  { %356 = vmatprep.subr.bf16.mxu0 %v11149_v0 }
  0x2d   :  { %357 = vmatpush1.bf16.msra.mxu0 %v7677_v25 }
  0x2e   :  { %358 = vmatprep.subr.bf16.mxu0 %v11149_v0 }
  0x31   :  { %359 = vmatpush1.bf16.msra.mxu0 %v7687_v28 }
  0x32   :  { %360 = vmatprep.subr.bf16.mxu0 %v11149_v0 }
  0x35   :  { %361 = vmatpush1.bf16.msra.mxu0 %v7697_v31 }
  0x36   :  { %362 = vmatprep.subr.bf16.mxu0 %v11149_v0 }
  0x39   :  { %363 = vmatpush1.bf16.msra.mxu0 %v7707_v34 }
  0x3a   :  { %364 = vmatprep.subr.bf16.mxu0 %v11149_v0 }
  0x3d   :  { %365 = vmatpush1.bf16.msra.mxu0 %v7717_v37 }
  0x3e   :  { %366 = vmatprep.subr.bf16.mxu0 %v11149_v0 }
  0x41   :  { %367 = vmatpush1.bf16.msra.mxu0 %v7730_v41 }
  0x42   :  { %368 = vmatprep.subr.bf16.mxu0 %v11149_v0 }
  0x45   :  { %369 = vmatpush1.bf16.msra.mxu0 %v7742_v45 }
  0x46   :  { %370 = vmatprep.subr.bf16.mxu0 %v11149_v0 }
  0x49   :  { %371 = vmatpush1.bf16.msra.mxu0 %v7752_v48 }
  0x4a   :  { %1021 = vmatprep.subr.bf16.mxu0 %v11149_v0 }
  0x4c   :  { %375 = vmatmul.mubr.bf16.vlgmr.msra.gmra.mrb[0].mxu0 %v7758_v49 }
  0x4d   :  { %5507 = vmatprep.mubr.msk.bf16.mxu0 %vm296_vm0, %v7764_v50 }
  0x54   :  { %383 = vmatmul.mubr.bf16.gmra.mrb[4].mxu0 %v7159_v51 }
  0x55   :  { %5508 = vmatprep.mubr.msk.bf16.mxu0 %vm296_vm0, %v7160_v52 }
  0x5c   :  { %391 = vmatmul.mubr.bf16.gmra.mrb[8].mxu0 %v7162_v53 }
  0x5d   :  { %5509 = vmatprep.mubr.msk.bf16.mxu0 %vm296_vm0, %v7163_v54 }
  0x64   :  { %399 = vmatmul.mubr.bf16.gmra.mrb[12].mxu0 %v7165_v55 }
  0x65   :  { %5510 = vmatprep.mubr.msk.bf16.mxu0 %vm296_vm0, %v7166_v56 }
  0x6c   :  { %407 = vmatmul.mubr.bf16.gmra.mrb[16].mxu0 %v7168_v57 }
  0x6d   :  { %5511 = vmatprep.mubr.msk.bf16.mxu0 %vm296_vm0, %v7169_v58 }
  0x74   :  { %415 = vmatmul.mubr.bf16.gmra.mrb[20].mxu0 %v7171_v59 }
  0x75   :  { %5512 = vmatprep.mubr.msk.bf16.mxu0 %vm296_vm0, %v7172_v60 }
  0x7c   :  { %423 = vmatmul.mubr.bf16.gmra.mrb[24].mxu0 %v7174_v61 }
  0x7d   :  { %5513 = vmatprep.mubr.msk.bf16.mxu0 %vm296_vm0, %v7175_v62 }
  0x84   :  { %431 = vmatmul.mubr.bf16.gmra.mrb[28].mxu0 %v7177_v63 }
  0x85   :  { %5514 = vmatprep.mubr.msk.bf16.mxu0 %vm296_vm0, %v7178_v1 }
  0x8c   :  { %439 = vmatmul.mubr.bf16.gmra.mrb[32].mxu0 %v7180_v2 }
  0x8d   :  { %5515 = vmatprep.mubr.msk.bf16.mxu0 %vm296_vm0, %v7181_v3 }
  0x94   :  { %447 = vmatmul.mubr.bf16.gmra.mrb[36].mxu0 %v7183_v5 }
  0x95   :  { %5516 = vmatprep.mubr.msk.bf16.mxu0 %vm296_vm0, %v7184_v7 }
  0x9c   :  { %455 = vmatmul.mubr.bf16.gmra.mrb[40].mxu0 %v7186_v8 }
  0x9d   :  { %5517 = vmatprep.mubr.msk.bf16.mxu0 %vm296_vm0, %v7187_v10 }
  0xa4   :  { %463 = vmatmul.mubr.bf16.gmra.mrb[44].mxu0 %v7189_v14 }
  0xa5   :  { %5518 = vmatprep.mubr.msk.bf16.mxu0 %vm296_vm0, %v7190_v15 }
  0xac   :  { %471 = vmatmul.mubr.bf16.gmra.mrb[48].mxu0 %v7192_v17 }
  0xad   :  { %5519 = vmatprep.mubr.msk.bf16.mxu0 %vm296_vm0, %v7193_v18 }
  0xb4   :  { %479 = vmatmul.mubr.bf16.gmra.mrb[52].mxu0 %v7195_v20 }
  0xb5   :  { %5520 = vmatprep.mubr.msk.bf16.mxu0 %vm296_vm0, %v7196_v21 }
  0xbc   :  { %487 = vmatmul.mubr.bf16.gmra.mrb[56].mxu0 %v7198_v23 }
  0xbd   :  { %5556 = vmatprep.mubr.msk.bf16.mxu0 %vm296_vm0, %v7635_v13  ;;  %v7202_v13 = vld [vmem:[%s11230_s4 + $0x8] sm:$0xff]  }
 0x11f   :  { %v376_v24 = vpop.f32.mrb[0].mxu0 }
 0x120   :  { %v378_v26 = vpop.f32.mrb[1].mxu0 }
 0x121   :  { %v379_v27 = vpop.f32.mrb[2].mxu0 }
 0x122   :  { %v495_v30 = vpack.c.bf16 %v379_v27, %v376_v24  ;;  %v381_v32 = vpop.f32.mrb[3].mxu0 }
 0x124   :  { %6112 = vmatmul.mubr.msk.bf16.vlgmr.msra.gmra.mrb[0].mxu1 %vm530_vm2, %v495_v30 }
 0x125   :  { %6172 = vmatpush3.bf16.msra.mxu1 %v7201_v29  ;;  %6115 = vmatprep.mubr.msk.bf16.mxu1 %vm7458_vm1, %v11117_v42 }
 0x126   :  { %6173 = vmatprep.subr.bf16.mxu1 %v11117_v42 }
 0x127   :  { %v384_v33 = vpop.f32.mrb[4].mxu0 }
 0x128   :  { %v386_v35 = vpop.f32.mrb[5].mxu0 }
 0x129   :  { %v387_v36 = vpop.f32.mrb[6].mxu0  ;;  %6174 = vmatpush3.bf16.msra.mxu1 %v7202_v13 }
 0x12a   :  { %v496_v38 = vpack.c.bf16 %v387_v36, %v384_v33  ;;  %v389_v39 = vpop.f32.mrb[7].mxu0  ;;  %6235 = vmatprep.subr.bf16.mxu1 %v11117_v42 }
 0x12c   :  { %6116 = vmatmul.mubr.msk.bf16.gmra.mrb[4].mxu1 %vm530_vm2, %v496_v38 }
 0x12d   :  { %6119 = vmatprep.mubr.msk.bf16.mxu1 %vm7458_vm1, %v11117_v42 }
 0x12f   :  { %v392_v40 = vpop.f32.mrb[8].mxu0 }
 0x130   :  { %v394_v43 = vpop.f32.mrb[9].mxu0 }
 0x131   :  { %v395_v44 = vpop.f32.mrb[10].mxu0 }
 0x132   :  { %v497_v46 = vpack.c.bf16 %v395_v44, %v392_v40  ;;  %v397_v47 = vpop.f32.mrb[11].mxu0 }
 0x134   :  { %6120 = vmatmul.mubr.msk.bf16.gmra.mrb[8].mxu1 %vm530_vm2, %v497_v46 }
 0x135   :  { %6123 = vmatprep.mubr.msk.bf16.mxu1 %vm7458_vm1, %v11117_v42 }
 0x137   :  { %v400_v51 = vpop.f32.mrb[12].mxu0 }
 0x138   :  { %v402_v52 = vpop.f32.mrb[13].mxu0 }
 0x139   :  { %v403_v53 = vpop.f32.mrb[14].mxu0 }
 0x13a   :  { %v498_v54 = vpack.c.bf16 %v403_v53, %v400_v51  ;;  %v405_v55 = vpop.f32.mrb[15].mxu0 }
 0x13c   :  { %6124 = vmatmul.mubr.msk.bf16.gmra.mrb[12].mxu1 %vm530_vm2, %v498_v54 }
 0x13d   :  { %6127 = vmatprep.mubr.msk.bf16.mxu1 %vm7458_vm1, %v11117_v42 }
 0x13f   :  { %v408_v56 = vpop.f32.mrb[16].mxu0 }
 0x140   :  { %v410_v57 = vpop.f32.mrb[17].mxu0 }
 0x141   :  { %v411_v58 = vpop.f32.mrb[18].mxu0 }
 0x142   :  { %v499_v59 = vpack.c.bf16 %v411_v58, %v408_v56  ;;  %v413_v60 = vpop.f32.mrb[19].mxu0 }
 0x144   :  { %6128 = vmatmul.mubr.msk.bf16.gmra.mrb[16].mxu1 %vm530_vm2, %v499_v59 }
 0x145   :  { %6131 = vmatprep.mubr.msk.bf16.mxu1 %vm7458_vm1, %v11117_v42 }
 0x147   :  { %v416_v61 = vpop.f32.mrb[20].mxu0 }
 0x148   :  { %v418_v62 = vpop.f32.mrb[21].mxu0 }
 0x149   :  { %v419_v63 = vpop.f32.mrb[22].mxu0 }
 0x14a   :  { %v500_v1 = vpack.c.bf16 %v419_v63, %v416_v61  ;;  %v421_v2 = vpop.f32.mrb[23].mxu0 }
 0x14c   :  { %6132 = vmatmul.mubr.msk.bf16.gmra.mrb[20].mxu1 %vm530_vm2, %v500_v1 }
 0x14d   :  { %6135 = vmatprep.mubr.msk.bf16.mxu1 %vm7458_vm1, %v11117_v42 }
 0x14f   :  { %v424_v3 = vpop.f32.mrb[24].mxu0 }
 0x150   :  { %v426_v5 = vpop.f32.mrb[25].mxu0 }
 0x151   :  { %v427_v7 = vpop.f32.mrb[26].mxu0 }
 0x152   :  { %v501_v8 = vpack.c.bf16 %v427_v7, %v424_v3  ;;  %v429_v10 = vpop.f32.mrb[27].mxu0 }
 0x154   :  { %6136 = vmatmul.mubr.msk.bf16.gmra.mrb[24].mxu1 %vm530_vm2, %v501_v8 }
 0x155   :  { %6139 = vmatprep.mubr.msk.bf16.mxu1 %vm7458_vm1, %v11117_v42 }
 0x157   :  { %v432_v11 = vpop.f32.mrb[28].mxu0 }
 0x158   :  { %v434_v14 = vpop.f32.mrb[29].mxu0 }
 0x159   :  { %v435_v15 = vpop.f32.mrb[30].mxu0 }
 0x15a   :  { %v502_v17 = vpack.c.bf16 %v435_v15, %v432_v11  ;;  %v437_v18 = vpop.f32.mrb[31].mxu0 }
 0x15c   :  { %6140 = vmatmul.mubr.msk.bf16.gmra.mrb[28].mxu1 %vm530_vm2, %v502_v17 }
 0x15d   :  { %6143 = vmatprep.mubr.msk.bf16.mxu1 %vm7458_vm1, %v11117_v42 }
 0x15f   :  { %v440_v20 = vpop.f32.mrb[32].mxu0 }
 0x160   :  { %v442_v21 = vpop.f32.mrb[33].mxu0 }
 0x161   :  { %v443_v23 = vpop.f32.mrb[34].mxu0 }
 0x162   :  { %v503_v24 = vpack.c.bf16 %v443_v23, %v440_v20  ;;  %v445_v26 = vpop.f32.mrb[35].mxu0 }
 0x164   :  { %6144 = vmatmul.mubr.msk.bf16.gmra.mrb[32].mxu1 %vm530_vm2, %v503_v24 }
 0x165   :  { %6147 = vmatprep.mubr.msk.bf16.mxu1 %vm7458_vm1, %v11117_v42 }
 0x167   :  { %v448_v27 = vpop.f32.mrb[36].mxu0 }
 0x168   :  { %v450_v29 = vpop.f32.mrb[37].mxu0 }
 0x169   :  { %v451_v30 = vpop.f32.mrb[38].mxu0 }
 0x16a   :  { %v504_v32 = vpack.c.bf16 %v451_v30, %v448_v27  ;;  %v453_v13 = vpop.f32.mrb[39].mxu0 }
 0x16c   :  { %6148 = vmatmul.mubr.msk.bf16.gmra.mrb[36].mxu1 %vm530_vm2, %v504_v32 }
 0x16d   :  { %6151 = vmatprep.mubr.msk.bf16.mxu1 %vm7458_vm1, %v11117_v42 }
 0x16f   :  { %v456_v33 = vpop.f32.mrb[40].mxu0 }
 0x170   :  { %v458_v35 = vpop.f32.mrb[41].mxu0 }
 0x171   :  { %v459_v36 = vpop.f32.mrb[42].mxu0 }
 0x172   :  { %v505_v38 = vpack.c.bf16 %v459_v36, %v456_v33  ;;  %v461_v39 = vpop.f32.mrb[43].mxu0 }
 0x174   :  { %6152 = vmatmul.mubr.msk.bf16.gmra.mrb[40].mxu1 %vm530_vm2, %v505_v38 }
 0x175   :  { %6155 = vmatprep.mubr.msk.bf16.mxu1 %vm7458_vm1, %v11117_v42 }
 0x177   :  { %v464_v40 = vpop.f32.mrb[44].mxu0 }
 0x178   :  { %v466_v43 = vpop.f32.mrb[45].mxu0 }
 0x179   :  { %v467_v44 = vpop.f32.mrb[46].mxu0 }
 0x17a   :  { %v506_v46 = vpack.c.bf16 %v467_v44, %v464_v40  ;;  %v469_v47 = vpop.f32.mrb[47].mxu0 }
 0x17c   :  { %6156 = vmatmul.mubr.msk.bf16.gmra.mrb[44].mxu1 %vm530_vm2, %v506_v46 }
 0x17d   :  { %6159 = vmatprep.mubr.msk.bf16.mxu1 %vm7458_vm1, %v11117_v42 }
 0x17f   :  { %v472_v51 = vpop.f32.mrb[48].mxu0 }
 0x180   :  { %v474_v52 = vpop.f32.mrb[49].mxu0 }
 0x181   :  { %v475_v53 = vpop.f32.mrb[50].mxu0 }
 0x182   :  { %v507_v54 = vpack.c.bf16 %v475_v53, %v472_v51  ;;  %v477_v55 = vpop.f32.mrb[51].mxu0 }
 0x184   :  { %6160 = vmatmul.mubr.msk.bf16.gmra.mrb[48].mxu1 %vm530_vm2, %v507_v54 }
 0x185   :  { %6163 = vmatprep.mubr.msk.bf16.mxu1 %vm7458_vm1, %v11117_v42 }
 0x187   :  { %v480_v56 = vpop.f32.mrb[52].mxu0 }
 0x188   :  { %v482_v57 = vpop.f32.mrb[53].mxu0 }
 0x189   :  { %v483_v58 = vpop.f32.mrb[54].mxu0 }
 0x18a   :  { %v508_v59 = vpack.c.bf16 %v483_v58, %v480_v56  ;;  %v485_v60 = vpop.f32.mrb[55].mxu0 }
 0x18c   :  { %6164 = vmatmul.mubr.msk.bf16.gmra.mrb[52].mxu1 %vm530_vm2, %v508_v59 }
 0x18d   :  { %6167 = vmatprep.mubr.msk.bf16.mxu1 %vm7458_vm1, %v11117_v42 }
 0x18f   :  { %v488_v61 = vpop.f32.mrb[56].mxu0 }
 0x190   :  { %v490_v62 = vpop.f32.mrb[57].mxu0 }
 0x191   :  { %v491_v63 = vpop.f32.mrb[58].mxu0 }
 0x192   :  { %v509_v1 = vpack.c.bf16 %v491_v63, %v488_v61  ;;  %v493_v2 = vpop.f32.mrb[59].mxu0 }
 0x194   :  { %6168 = vmatmul.mubr.msk.bf16.gmra.mrb[56].mxu1 %vm530_vm2, %v509_v1 }
 0x195   :  { %6175 = vmatprep.mubr.msk.bf16.mxu1 %vm7458_vm1, %v11117_v42 }
 0x19c   :  { %6176 = vmatmul.mubr.msk.bf16.vlgmr.msra.gmra.mrb[60].mxu1 %vm530_vm2, %v7604_v4 }
 0x19d   :  { %6179 = vmatprep.mubr.msk.bf16.mxu1 %vm7458_vm1, %v11117_v42 }
 0x1a4   :  { %6180 = vmatmul.mubr.msk.bf16.gmra.mrb[64].mxu1 %vm530_vm2, %v7610_v6 }
 0x1a5   :  { %6183 = vmatprep.mubr.msk.bf16.mxu1 %vm7458_vm1, %v11117_v42 }
 0x1ac   :  { %6184 = vmatmul.mubr.msk.bf16.gmra.mrb[68].mxu1 %vm530_vm2, %v7620_v9 }
 0x1ad   :  { %6187 = vmatprep.mubr.msk.bf16.mxu1 %vm7458_vm1, %v11117_v42 }
 0x1b4   :  { %6188 = vmatmul.mubr.msk.bf16.gmra.mrb[72].mxu1 %vm530_vm2, %v7630_v12 }
 0x1b5   :  { %6191 = vmatprep.mubr.msk.bf16.mxu1 %vm7458_vm1, %v11117_v42 }
 0x1bc   :  { %6192 = vmatmul.mubr.msk.bf16.gmra.mrb[76].mxu1 %vm530_vm2, %v7647_v16 }
 0x1bd   :  { %6195 = vmatprep.mubr.msk.bf16.mxu1 %vm7458_vm1, %v11117_v42 }
 0x1c4   :  { %6196 = vmatmul.mubr.msk.bf16.gmra.mrb[80].mxu1 %vm530_vm2, %v7657_v19 }
 0x1c5   :  { %6199 = vmatprep.mubr.msk.bf16.mxu1 %vm7458_vm1, %v11117_v42 }
 0x1cc   :  { %6200 = vmatmul.mubr.msk.bf16.gmra.mrb[84].mxu1 %vm530_vm2, %v7667_v22 }
 0x1cd   :  { %6203 = vmatprep.mubr.msk.bf16.mxu1 %vm7458_vm1, %v11117_v42 }
 0x1d4   :  { %6204 = vmatmul.mubr.msk.bf16.gmra.mrb[88].mxu1 %vm530_vm2, %v7677_v25 }
 0x1d5   :  { %6207 = vmatprep.mubr.msk.bf16.mxu1 %vm7458_vm1, %v11117_v42 }
 0x1dc   :  { %6208 = vmatmul.mubr.msk.bf16.gmra.mrb[92].mxu1 %vm530_vm2, %v7687_v28 }
 0x1dd   :  { %6211 = vmatprep.mubr.msk.bf16.mxu1 %vm7458_vm1, %v11117_v42 }
 0x1e4   :  { %6212 = vmatmul.mubr.msk.bf16.gmra.mrb[96].mxu1 %vm530_vm2, %v7697_v31 }
 0x1e5   :  { %6215 = vmatprep.mubr.msk.bf16.mxu1 %vm7458_vm1, %v11117_v42 }
 0x1ec   :  { %6216 = vmatmul.mubr.msk.bf16.gmra.mrb[100].mxu1 %vm530_vm2, %v7707_v34 }
 0x1ed   :  { %6219 = vmatprep.mubr.msk.bf16.mxu1 %vm7458_vm1, %v11117_v42 }
 0x1f4   :  { %6220 = vmatmul.mubr.msk.bf16.gmra.mrb[104].mxu1 %vm530_vm2, %v7717_v37 }
 0x1f5   :  { %6223 = vmatprep.mubr.msk.bf16.mxu1 %vm7458_vm1, %v11117_v42 }
 0x1f7   :  { %v7973_v3 = vpop.f32.mrb[0].mxu1 }
 0x1f8   :  { %v6113_v5 = vpop.f32.mrb[1].mxu1 }
 0x1f9   :  { %v7975_v7 = vpop.f32.mrb[2].mxu1 }
 0x1fa   :  { %v6114_v8 = vpop.f32.mrb[3].mxu1 }
 0x1fc   :  { %6224 = vmatmul.mubr.msk.bf16.gmra.mrb[108].mxu1 %vm530_vm2, %v7730_v41 }
 0x1fd   :  { %6227 = vmatprep.mubr.msk.bf16.mxu1 %vm7458_vm1, %v11117_v42 }
 0x1ff   :  { %v7981_v10 = vpop.f32.mrb[4].mxu1 }
 0x200   :  { %v6117_v11 = vpop.f32.mrb[5].mxu1 }
 0x201   :  { %v7983_v14 = vpop.f32.mrb[6].mxu1 }
 0x202   :  { %v6118_v15 = vpop.f32.mrb[7].mxu1 }
 0x204   :  { %6228 = vmatmul.mubr.msk.bf16.gmra.mrb[112].mxu1 %vm530_vm2, %v7742_v45 }
 0x205   :  { %6231 = vmatprep.mubr.msk.bf16.mxu1 %vm7458_vm1, %v11117_v42 }
 0x207   :  { %v7989_v17 = vpop.f32.mrb[8].mxu1 }
 0x208   :  { %v6121_v18 = vpop.f32.mrb[9].mxu1 }
 0x209   :  { %v7991_v20 = vpop.f32.mrb[10].mxu1 }
 0x20a   :  { %v6122_v21 = vpop.f32.mrb[11].mxu1 }
 0x20c   :  { %6232 = vmatmul.mubr.msk.bf16.gmra.mrb[116].mxu1 %vm530_vm2, %v7752_v48 }
 0x20d   :  { %6251 = vmatprep.mubr.msk.bf16.mxu1 %vm7458_vm1, %v11117_v42 }
 0x20f   :  { %v7997_v23 = vpop.f32.mrb[12].mxu1 }
 0x210   :  { %v6125_v24 = vpop.f32.mrb[13].mxu1 }
 0x211   :  { %v7999_v26 = vpop.f32.mrb[14].mxu1 }
 0x212   :  { %v6126_v27 = vpop.f32.mrb[15].mxu1 }
 0x217   :  { %v8001_v29 = vpop.f32.mrb[16].mxu1 }
 0x218   :  { %v6129_v30 = vpop.f32.mrb[17].mxu1 }
 0x219   :  { %v8003_v32 = vpop.f32.mrb[18].mxu1 }
 0x21a   :  { %v6130_v13 = vpop.f32.mrb[19].mxu1 }
 0x21f   :  { %v8005_v33 = vpop.f32.mrb[20].mxu1 }
 0x220   :  { %v6133_v35 = vpop.f32.mrb[21].mxu1 }
 0x221   :  { %v8007_v36 = vpop.f32.mrb[22].mxu1 }
 0x222   :  { %v6134_v38 = vpop.f32.mrb[23].mxu1 }
 0x227   :  { %v8009_v39 = vpop.f32.mrb[24].mxu1 }
 0x228   :  { %v6137_v40 = vpop.f32.mrb[25].mxu1 }
 0x229   :  { %v8011_v43 = vpop.f32.mrb[26].mxu1 }
 0x22a   :  { %v6138_v44 = vpop.f32.mrb[27].mxu1 }
 0x22f   :  { %v8013_v46 = vpop.f32.mrb[28].mxu1 }
 0x230   :  { %v6141_v47 = vpop.f32.mrb[29].mxu1 }
 0x231   :  { %v8015_v51 = vpop.f32.mrb[30].mxu1 }
 0x232   :  { %v6142_v52 = vpop.f32.mrb[31].mxu1 }
 0x237   :  { %v8017_v53 = vpop.f32.mrb[32].mxu1 }
 0x238   :  { %v6145_v54 = vpop.f32.mrb[33].mxu1 }
 0x239   :  { %v8019_v55 = vpop.f32.mrb[34].mxu1  ;;  %v8048_v54 = vld [vmem:[%s11231_s1] ss:$0 sm:$0xff] }
 0x23a   :  { %v6146_v56 = vpop.f32.mrb[35].mxu1 }
 0x23f   :  { %v8021_v57 = vpop.f32.mrb[36].mxu1 }
 0x240   :  { %v6149_v58 = vpop.f32.mrb[37].mxu1 }
 0x241   :  { %v8023_v59 = vpop.f32.mrb[38].mxu1 }
 0x242   :  { %v6150_v60 = vpop.f32.mrb[39].mxu1 }
 0x247   :  { %v8025_v61 = vpop.f32.mrb[40].mxu1 }
 0x248   :  { %v6153_v62 = vpop.f32.mrb[41].mxu1 }
 0x249   :  { %v8027_v63 = vpop.f32.mrb[42].mxu1 }
 0x24a   :  { %v6154_v1 = vpop.f32.mrb[43].mxu1 }
 0x24f   :  { %v8029_v2 = vpop.f32.mrb[44].mxu1 }
 0x250   :  { %v6157_v5 = vpop.f32.mrb[45].mxu1 }
 0x251   :  { %v8031_v8 = vpop.f32.mrb[46].mxu1 }
 0x252   :  { %v6158_v11 = vpop.f32.mrb[47].mxu1 }
 0x257   :  { %v8033_v15 = vpop.f32.mrb[48].mxu1 }
 0x258   :  { %v6161_v18 = vpop.f32.mrb[49].mxu1 }
 0x259   :  { %v8035_v21 = vpop.f32.mrb[50].mxu1 }
 0x25a   :  { %v6162_v24 = vpop.f32.mrb[51].mxu1 }
 0x25f   :  { %v8037_v27 = vpop.f32.mrb[52].mxu1 }
 0x260   :  { %v6165_v30 = vpop.f32.mrb[53].mxu1 }
 0x261   :  { %v8039_v13 = vpop.f32.mrb[54].mxu1 }
 0x262   :  { %v6166_v35 = vpop.f32.mrb[55].mxu1 }
 0x267   :  { %v8041_v38 = vpop.f32.mrb[56].mxu1 }
 0x268   :  { %v6169_v40 = vpop.f32.mrb[57].mxu1 }
 0x269   :  { %v8043_v44 = vpop.f32.mrb[58].mxu1 }
 0x26a   :  { %v6170_v47 = vpop.f32.mrb[59].mxu1 }
 0x26f   :  { %v820_v52 = vpop.f32.mrb[60].mxu1 }
 0x270   :  { %v821_v56 = vadd.f32 %v820_v52, %v7973_v3  ;;  %v6177_v58 = vpop.f32.mrb[61].mxu1 }
 0x271   :  { %v823_v60 = vpop.f32.mrb[62].mxu1 }
 0x272   :  { %v946_v62 = vadd.f32 %v8048_v54, %v821_v56  ;;  %v824_v1 = vadd.f32 %v823_v60, %v7975_v7  ;;  %v6178_v5 = vpop.f32.mrb[63].mxu1 }
 0x274   :  { %v947_v11 = vadd.f32 %v8048_v54, %v824_v1  ;;  %v976_v18 = vmax.f32 %v946_v62, 0.0 }
 0x276   :  { %v977_v24 = vmax.f32 %v947_v11, 0.0 }
 0x277   :  { %v828_v30 = vpop.f32.mrb[64].mxu1 }
 0x278   :  { %v829_v35 = vadd.f32 %v828_v30, %v7981_v10  ;;  %v6181_v40 = vpop.f32.mrb[65].mxu1  ;;  %v8055_v47 = vpack.c.bf16 %v977_v24, %v976_v18 }
 0x279   :  { %v831_v42 = vpop.f32.mrb[66].mxu1 }
 0x27a   :  { %v948_v3 = vadd.f32 %v8048_v54, %v829_v35  ;;  %v832_v52 = vadd.f32 %v831_v42, %v7983_v14  ;;  %v6182_v58 = vpop.f32.mrb[67].mxu1  ;;  %1022 = vmatpush1.bf16.msra.mxu0 %v8055_v47 }
 0x27b   :  { %1023 = vmatprep.subr.bf16.mxu0 %v11149_v0 }
 0x27c   :  { %v949_v7 = vadd.f32 %v8048_v54, %v832_v52  ;;  %v978_v56 = vmax.f32 %v948_v3, 0.0 }
 0x27e   :  { %v979_v60 = vmax.f32 %v949_v7, 0.0 }
 0x27f   :  { %v836_v62 = vpop.f32.mrb[68].mxu1 }
 0x280   :  { %v837_v10 = vadd.f32 %v836_v62, %v7989_v17  ;;  %v6185_v1 = vpop.f32.mrb[69].mxu1  ;;  %v8063_v5 = vpack.c.bf16 %v979_v60, %v978_v56 }
 0x281   :  { %v839_v11 = vpop.f32.mrb[70].mxu1 }
 0x282   :  { %v950_v18 = vadd.f32 %v8048_v54, %v837_v10  ;;  %v840_v42 = vadd.f32 %v839_v11, %v7991_v20  ;;  %v6186_v14 = vpop.f32.mrb[71].mxu1  ;;  %1024 = vmatpush1.bf16.msra.mxu0 %v8063_v5 }
 0x283   :  { %1025 = vmatprep.subr.bf16.mxu0 %v11149_v0 }
 0x284   :  { %v951_v24 = vadd.f32 %v8048_v54, %v840_v42  ;;  %v980_v30 = vmax.f32 %v950_v18, 0.0 }
 0x286   :  { %v981_v35 = vmax.f32 %v951_v24, 0.0 }
 0x287   :  { %v844_v40 = vpop.f32.mrb[72].mxu1 }
 0x288   :  { %v845_v17 = vadd.f32 %v844_v40, %v7997_v23  ;;  %v6189_v3 = vpop.f32.mrb[73].mxu1  ;;  %v8071_v52 = vpack.c.bf16 %v981_v35, %v980_v30 }
 0x289   :  { %v847_v58 = vpop.f32.mrb[74].mxu1 }
 0x28a   :  { %v952_v7 = vadd.f32 %v8048_v54, %v845_v17  ;;  %v848_v20 = vadd.f32 %v847_v58, %v7999_v26  ;;  %v6190_v56 = vpop.f32.mrb[75].mxu1  ;;  %1026 = vmatpush1.bf16.msra.mxu0 %v8071_v52 }
 0x28b   :  { %1027 = vmatprep.subr.bf16.mxu0 %v11149_v0 }
 0x28c   :  { %v953_v60 = vadd.f32 %v8048_v54, %v848_v20  ;;  %v982_v62 = vmax.f32 %v952_v7, 0.0 }
 0x28e   :  { %v983_v10 = vmax.f32 %v953_v60, 0.0 }
 0x28f   :  { %v852_v1 = vpop.f32.mrb[76].mxu1 }
 0x290   :  { %v853_v23 = vadd.f32 %v852_v1, %v8001_v29  ;;  %v6193_v11 = vpop.f32.mrb[77].mxu1  ;;  %v8079_v18 = vpack.c.bf16 %v983_v10, %v982_v62 }
 0x291   :  { %v855_v42 = vpop.f32.mrb[78].mxu1 }
 0x292   :  { %v954_v14 = vadd.f32 %v8048_v54, %v853_v23  ;;  %v856_v26 = vadd.f32 %v855_v42, %v8003_v32  ;;  %v6194_v24 = vpop.f32.mrb[79].mxu1  ;;  %1028 = vmatpush1.bf16.msra.mxu0 %v8079_v18 }
 0x293   :  { %1029 = vmatprep.subr.bf16.mxu0 %v11149_v0 }
 0x294   :  { %v955_v30 = vadd.f32 %v8048_v54, %v856_v26  ;;  %v984_v35 = vmax.f32 %v954_v14, 0.0 }
 0x296   :  { %v985_v40 = vmax.f32 %v955_v30, 0.0 }
 0x297   :  { %v860_v17 = vpop.f32.mrb[80].mxu1 }
 0x298   :  { %v861_v29 = vadd.f32 %v860_v17, %v8005_v33  ;;  %v6197_v3 = vpop.f32.mrb[81].mxu1  ;;  %v8087_v58 = vpack.c.bf16 %v985_v40, %v984_v35 }
 0x299   :  { %v863_v7 = vpop.f32.mrb[82].mxu1 }
 0x29a   :  { %v956_v20 = vadd.f32 %v8048_v54, %v861_v29  ;;  %v864_v32 = vadd.f32 %v863_v7, %v8007_v36  ;;  %v6198_v56 = vpop.f32.mrb[83].mxu1  ;;  %1030 = vmatpush1.bf16.msra.mxu0 %v8087_v58 }
 0x29b   :  { %1031 = vmatprep.subr.bf16.mxu0 %v11149_v0 }
 0x29c   :  { %v957_v60 = vadd.f32 %v8048_v54, %v864_v32  ;;  %v986_v62 = vmax.f32 %v956_v20, 0.0 }
 0x29e   :  { %v987_v10 = vmax.f32 %v957_v60, 0.0 }
 0x29f   :  { %v868_v1 = vpop.f32.mrb[84].mxu1 }
 0x2a0   :  { %v869_v33 = vadd.f32 %v868_v1, %v8009_v39  ;;  %v6201_v23 = vpop.f32.mrb[85].mxu1  ;;  %v8095_v11 = vpack.c.bf16 %v987_v10, %v986_v62 }
 0x2a1   :  { %v871_v42 = vpop.f32.mrb[86].mxu1 }
 0x2a2   :  { %v958_v14 = vadd.f32 %v8048_v54, %v869_v33  ;;  %v872_v36 = vadd.f32 %v871_v42, %v8011_v43  ;;  %v6202_v26 = vpop.f32.mrb[87].mxu1  ;;  %1032 = vmatpush1.bf16.msra.mxu0 %v8095_v11 }
 0x2a3   :  { %1033 = vmatprep.subr.bf16.mxu0 %v11149_v0 }
 0x2a4   :  { %v959_v24 = vadd.f32 %v8048_v54, %v872_v36  ;;  %v988_v30 = vmax.f32 %v958_v14, 0.0 }
 0x2a6   :  { %v989_v35 = vmax.f32 %v959_v24, 0.0 }
 0x2a7   :  { %v876_v40 = vpop.f32.mrb[88].mxu1 }
 0x2a8   :  { %v877_v39 = vadd.f32 %v876_v40, %v8013_v46  ;;  %v6205_v17 = vpop.f32.mrb[89].mxu1  ;;  %v8103_v29 = vpack.c.bf16 %v989_v35, %v988_v30 }
 0x2a9   :  { %v879_v3 = vpop.f32.mrb[90].mxu1 }
 0x2aa   :  { %v960_v7 = vadd.f32 %v8048_v54, %v877_v39  ;;  %v880_v43 = vadd.f32 %v879_v3, %v8015_v51  ;;  %v6206_v20 = vpop.f32.mrb[91].mxu1  ;;  %1034 = vmatpush1.bf16.msra.mxu0 %v8103_v29 }
 0x2ab   :  { %1035 = vmatprep.subr.bf16.mxu0 %v11149_v0 }
 0x2ac   :  { %v961_v32 = vadd.f32 %v8048_v54, %v880_v43  ;;  %v990_v56 = vmax.f32 %v960_v7, 0.0 }
 0x2ae   :  { %v991_v60 = vmax.f32 %v961_v32, 0.0 }
 0x2af   :  { %v884_v62 = vpop.f32.mrb[92].mxu1 }
 0x2b0   :  { %v885_v46 = vadd.f32 %v884_v62, %v8017_v53  ;;  %v6209_v10 = vpop.f32.mrb[93].mxu1  ;;  %v8111_v1 = vpack.c.bf16 %v991_v60, %v990_v56 }
 0x2b1   :  { %v887_v33 = vpop.f32.mrb[94].mxu1 }
 0x2b2   :  { %v962_v23 = vadd.f32 %v8048_v54, %v885_v46  ;;  %v888_v51 = vadd.f32 %v887_v33, %v8019_v55  ;;  %v6210_v42 = vpop.f32.mrb[95].mxu1  ;;  %1036 = vmatpush1.bf16.msra.mxu0 %v8111_v1 }
 0x2b3   :  { %1037 = vmatprep.subr.bf16.mxu0 %v11149_v0 }
 0x2b4   :  { %v963_v14 = vadd.f32 %v8048_v54, %v888_v51  ;;  %v992_v36 = vmax.f32 %v962_v23, 0.0 }
 0x2b6   :  { %v993_v26 = vmax.f32 %v963_v14, 0.0 }
 0x2b7   :  { %v892_v24 = vpop.f32.mrb[96].mxu1 }
 0x2b8   :  { %v893_v53 = vadd.f32 %v892_v24, %v8021_v57  ;;  %v6213_v30 = vpop.f32.mrb[97].mxu1  ;;  %v8119_v35 = vpack.c.bf16 %v993_v26, %v992_v36 }
 0x2b9   :  { %v895_v40 = vpop.f32.mrb[98].mxu1 }
 0x2ba   :  { %v964_v39 = vadd.f32 %v8048_v54, %v893_v53  ;;  %v896_v55 = vadd.f32 %v895_v40, %v8023_v59  ;;  %v6214_v17 = vpop.f32.mrb[99].mxu1  ;;  %1038 = vmatpush1.bf16.msra.mxu0 %v8119_v35 }
 0x2bb   :  { %1039 = vmatprep.subr.bf16.mxu0 %v11149_v0 }
 0x2bc   :  { %v965_v3 = vadd.f32 %v8048_v54, %v896_v55  ;;  %v994_v7 = vmax.f32 %v964_v39, 0.0 }
 0x2be   :  { %v995_v43 = vmax.f32 %v965_v3, 0.0 }
 0x2bf   :  { %v900_v20 = vpop.f32.mrb[100].mxu1 }
 0x2c0   :  { %v901_v57 = vadd.f32 %v900_v20, %v8025_v61  ;;  %v6217_v32 = vpop.f32.mrb[101].mxu1  ;;  %v8127_v56 = vpack.c.bf16 %v995_v43, %v994_v7  ;;  %v11233_v7 = vmov 0.0  }
 0x2c1   :  { %v903_v60 = vpop.f32.mrb[102].mxu1 }
 0x2c2   :  { %v966_v62 = vadd.f32 %v8048_v54, %v901_v57  ;;  %v904_v59 = vadd.f32 %v903_v60, %v8027_v63  ;;  %v6218_v46 = vpop.f32.mrb[103].mxu1  ;;  %1040 = vmatpush1.bf16.msra.mxu0 %v8127_v56 }
 0x2c3   :  { %1041 = vmatprep.subr.bf16.mxu0 %v11149_v0 }
 0x2c4   :  { %v967_v10 = vadd.f32 %v8048_v54, %v904_v59  ;;  %v996_v33 = vmax.f32 %v966_v62, 0.0 }
 0x2c6   :  { %v997_v23 = vmax.f32 %v967_v10, 0.0 }
 0x2c7   :  { %v908_v51 = vpop.f32.mrb[104].mxu1 }
 0x2c8   :  { %v909_v61 = vadd.f32 %v908_v51, %v8029_v2  ;;  %v6221_v42 = vpop.f32.mrb[105].mxu1  ;;  %v8135_v14 = vpack.c.bf16 %v997_v23, %v996_v33  ;;  %v7206_v2 = vld [vmem:[%s11232_s28] sm:$0xff]  }
 0x2c9   :  { %v911_v36 = vpop.f32.mrb[106].mxu1  ;;  %6236 = vmatpush3.bf16.msra.mxu1 %v7206_v2  ;;  %v7211_v42 = vld [vmem:[%s11232_s28 + $0x8] sm:$0xff]  }
 0x2ca   :  { %v968_v26 = vadd.f32 %v8048_v54, %v909_v61  ;;  %v912_v63 = vadd.f32 %v911_v36, %v8031_v8  ;;  %v6222_v24 = vpop.f32.mrb[107].mxu1  ;;  %1042 = vmatpush1.bf16.msra.mxu0 %v8135_v14  ;;  %6237 = vmatprep.subr.bf16.mxu1 %v11233_v7 }
 0x2cb   :  { %1043 = vmatprep.subr.bf16.mxu0 %v11149_v0 }
 0x2cc   :  { %v969_v53 = vadd.f32 %v8048_v54, %v912_v63  ;;  %v998_v30 = vmax.f32 %v968_v26, 0.0 }
 0x2cd   :  { %6238 = vmatpush3.bf16.msra.mxu1 %v7211_v42  ;;  %v7391_v42 = vld [vmem:[%s11228_s6 + $0x50] ss:$8 sps:$4 sm:$0xff]  }
 0x2ce   :  { %v999_v40 = vmax.f32 %v969_v53, 0.0  ;;  %6239 = vmatprep.subr.bf16.mxu1 %v11233_v7 }
 0x2cf   :  { %v916_v39 = vpop.f32.mrb[108].mxu1 }
 0x2d0   :  { %v917_v55 = vadd.f32 %v916_v39, %v8033_v15  ;;  %v6225_v17 = vpop.f32.mrb[109].mxu1  ;;  %v8146_v3 = vpack.c.bf16 %v999_v40, %v998_v30 }
 0x2d1   :  { %v919_v8 = vpop.f32.mrb[110].mxu1 }
 0x2d2   :  { %v970_v43 = vadd.f32 %v8048_v54, %v917_v55  ;;  %v920_v20 = vadd.f32 %v919_v8, %v8035_v21  ;;  %v6226_v57 = vpop.f32.mrb[111].mxu1  ;;  %1044 = vmatpush1.bf16.msra.mxu0 %v8146_v3  ;;  %v8180_v8 = vld [vmem:[%s11234_s30] sm:$0xff]  }
 0x2d3   :  { %1045 = vmatprep.subr.bf16.mxu0 %v11149_v0  ;;  %v8222_v57 = vld [vmem:[%s11234_s30 + $0x20] sm:$0xff]  }
 0x2d4   :  { %v971_v32 = vadd.f32 %v8048_v54, %v920_v20  ;;  %v1000_v60 = vmax.f32 %v970_v43, 0.0  ;;  %v7384_v43 = vld [vmem:[%s11228_s6 + $0x24] ss:$8 sps:$4 sm:$0xff]   ;;  %v8215_v20 = vld [vmem:[%s11234_s30 + $0x18] sm:$0xff]  }
 0x2d6   :  { %v1001_v15 = vmax.f32 %v971_v32, 0.0  ;;  %v7385_v32 = vld [vmem:[%s11228_s6 + $0x20] ss:$8 sps:$4 sm:$0xff]  }
 0x2d7   :  { %v924_v62 = vpop.f32.mrb[112].mxu1 }
 0x2d8   :  { %v925_v59 = vadd.f32 %v924_v62, %v8037_v27  ;;  %v6229_v46 = vpop.f32.mrb[113].mxu1  ;;  %v8155_v10 = vpack.c.bf16 %v1001_v15, %v1000_v60  ;;  %v7214_v60 = vld [vmem:[%s11232_s28 + $0x18] sm:$0xff]   ;;  %v8239_v62 = vld [vmem:[%s11234_s30 + $0x28] sm:$0xff]  }
 0x2d9   :  { %v927_v33 = vpop.f32.mrb[114].mxu1  ;;  %v7386_v15 = vld [vmem:[%s11228_s6 + $0x34] ss:$8 sps:$4 sm:$0xff]   ;;  %v7387_v46 = vld [vmem:[%s11228_s6 + $0x30] ss:$8 sps:$4 sm:$0xff]  }
 0x2da   :  { %v972_v23 = vadd.f32 %v8048_v54, %v925_v59  ;;  %v928_v21 = vadd.f32 %v927_v33, %v8039_v13  ;;  %v6230_v51 = vpop.f32.mrb[115].mxu1  ;;  %1046 = vmatpush1.bf16.msra.mxu0 %v8155_v10  ;;  %v8247_v59 = vld [vmem:[%s11234_s30 + $0x30] sm:$0xff]   ;;  %v7388_v33 = vld [vmem:[%s11228_s6 + $0x44] ss:$8 sps:$4 sm:$0xff]  }
 0x2db   :  { %1047 = vmatprep.subr.bf16.mxu0 %v11149_v0  ;;  %v7215_v51 = vld [vmem:[%s11232_s28 + $0x20] sm:$0xff]  }
 0x2dc   :  { %v973_v61 = vadd.f32 %v8048_v54, %v928_v21  ;;  %v1002_v27 = vmax.f32 %v972_v23, 0.0  ;;  %v8261_v23 = vld [vmem:[%s11234_s30 + $0x38] sm:$0xff]   ;;  %v7389_v21 = vld [vmem:[%s11228_s6 + $0x40] ss:$8 sps:$4 sm:$0xff]  }
 0x2de   :  { %v1003_v36 = vmax.f32 %v973_v61, 0.0  ;;  %v7390_v61 = vld [vmem:[%s11228_s6 + $0x54] ss:$8 sps:$4 sm:$0xff]  }
 0x2df   :  { %v932_v26 = vpop.f32.mrb[116].mxu1 }
 0x2e0   :  { %v933_v63 = vadd.f32 %v932_v26, %v8041_v38  ;;  %v6233_v24 = vpop.f32.mrb[117].mxu1  ;;  %v8166_v53 = vpack.c.bf16 %v1003_v36, %v1002_v27  ;;  %v7392_v27 = vld [vmem:[%s11228_s6 + $0x64] ss:$8 sps:$4 sm:$0xff]   ;;  %v7393_v26 = vld [vmem:[%s11228_s6 + $0x60] ss:$8 sps:$4 sm:$0xff]  }
 0x2e1   :  { %v935_v13 = vpop.f32.mrb[118].mxu1  ;;  %v7216_v36 = vld [vmem:[%s11232_s28 + $0x28] sm:$0xff]   ;;  %v7395_v24 = vld [vmem:[%s11228_s6 + $0x70] ss:$8 sps:$4 sm:$0xff]  }
 0x2e2   :  { %v974_v30 = vadd.f32 %v8048_v54, %v933_v63  ;;  %v936_v40 = vadd.f32 %v935_v13, %v8043_v44  ;;  %v6234_v2 = vpop.f32.mrb[119].mxu1  ;;  %1048 = vmatpush1.bf16.msra.mxu0 %v8166_v53  ;;  %v7213_v44 = vld [vmem:[%s11232_s28 + $0x10] sm:$0xff]  }
 0x2e3   :  { %1049 = vmatprep.subr.bf16.mxu0 %v11149_v0  ;;  %6240 = vmatpush3.bf16.msra.mxu1 %v7213_v44  ;;  %v7394_v63 = vld [vmem:[%s11228_s6 + $0x74] ss:$8 sps:$4 sm:$0xff]   ;;  %v7401_v44 = vld [vmem:[%s11228_s6 + $0xa0] ss:$8 sps:$4 sm:$0xff]  }
 0x2e4   :  { %v975_v39 = vadd.f32 %v8048_v54, %v936_v40  ;;  %v1004_v55 = vmax.f32 %v974_v30, 0.0  ;;  %v8193_v54 = vld [vmem:[%s11234_s30 + $0x8] sm:$0xff]   ;;  %6241 = vmatprep.subr.bf16.mxu1 %v11233_v7  ;;  %v7217_v13 = vld [vmem:[%s11232_s28 + $0x30] sm:$0xff]  }
 0x2e5   :  { %v7396_v30 = vld [vmem:[%s11228_s6 + $0x84] ss:$8 sps:$4 sm:$0xff]   ;;  %v7397_v40 = vld [vmem:[%s11228_s6 + $0x80] ss:$8 sps:$4 sm:$0xff]   ;;  %v7398_v2 = vld [vmem:[%s11228_s6 + $0x94] ss:$8 sps:$4 sm:$0xff]  }
 0x2e6   :  { %v1005_v17 = vmax.f32 %v975_v39, 0.0  ;;  %v7399_v39 = vld [vmem:[%s11228_s6 + $0x90] ss:$8 sps:$4 sm:$0xff]  }
 0x2e7   :  { %6242 = vmatpush3.bf16.msra.mxu1 %v7214_v60  ;;  %v7405_v60 = vld [vmem:[%s11228_s6 + $0xc0] ss:$8 sps:$4 sm:$0xff]  }
 0x2e8   :  { %v8174_v38 = vpack.c.bf16 %v1005_v17, %v1004_v55  ;;  %6243 = vmatprep.subr.bf16.mxu1 %v11233_v7  ;;  %v7218_v55 = vld [vmem:[%s11232_s28 + $0x38] sm:$0xff]   ;;  %v7400_v17 = vld [vmem:[%s11228_s6 + $0xa4] ss:$8 sps:$4 sm:$0xff]  }
 0x2ea   :  { %1050 = vmatpush1.bf16.msra.mxu0 %v8174_v38 }
 0x2eb   :  { %6311 = vmatprep.subr.bf16.mxu0 %v11233_v7  ;;  %6244 = vmatpush3.bf16.msra.mxu1 %v7215_v51 }
 0x2ec   :  { %6245 = vmatprep.subr.bf16.mxu1 %v11233_v7 }
 0x2ed   :  { %1054 = vmatmul.mubr.bf16.vlgmr.msra.gmra.mrb[60].mxu0 %v7758_v49  ;;  %v8201_v49 = vld [vmem:[%s11234_s30 + $0x10] sm:$0xff]  }
 0x2ee   :  { %5557 = vmatprep.mubr.msk.bf16.mxu0 %vm296_vm0, %v7764_v50  ;;  %6312 = vmatpush3.bf16.msra.mxu0 %v8180_v8  ;;  %v7383_v50 = vld [vmem:[%s11228_s6 + $0x10] ss:$8 sps:$4 sm:$0xff]  }
 0x2ef   :  { %6313 = vmatprep.subr.bf16.mxu0 %v11233_v7  ;;  %6246 = vmatpush3.bf16.msra.mxu1 %v7216_v36 }
 0x2f0   :  { %6247 = vmatprep.subr.bf16.mxu1 %v11233_v7 }
 0x2f2   :  { %6314 = vmatpush3.bf16.msra.mxu0 %v8193_v54 }
 0x2f3   :  { %6315 = vmatprep.subr.bf16.mxu0 %v11233_v7  ;;  %6248 = vmatpush3.bf16.msra.mxu1 %v7217_v13 }
 0x2f4   :  { %6249 = vmatprep.subr.bf16.mxu1 %v11233_v7 }
 0x2f5   :  { %1062 = vmatmul.mubr.bf16.gmra.mrb[64].mxu0 %v7383_v50  ;;  %v7402_v50 = vld [vmem:[%s11228_s6 + $0xb4] ss:$8 sps:$4 sm:$0xff]  }
 0x2f6   :  { %5558 = vmatprep.mubr.msk.bf16.mxu0 %vm296_vm0, %v7384_v43  ;;  %6316 = vmatpush3.bf16.msra.mxu0 %v8201_v49  ;;  %v7403_v43 = vld [vmem:[%s11228_s6 + $0xb0] ss:$8 sps:$4 sm:$0xff]  }
 0x2f7   :  { %6317 = vmatprep.subr.bf16.mxu0 %v11233_v7  ;;  %6250 = vmatpush3.bf16.msra.mxu1 %v7218_v55 }
 0x2f8   :  { %7135 = vmatprep.subr.bf16.mxu1 %v11233_v7 }
 0x2fa   :  { %6318 = vmatpush3.bf16.msra.mxu0 %v8215_v20 }
 0x2fb   :  { %6319 = vmatprep.subr.bf16.mxu0 %v11233_v7 }
 0x2fd   :  { %1070 = vmatmul.mubr.bf16.gmra.mrb[68].mxu0 %v7385_v32  ;;  %v7404_v32 = vld [vmem:[%s11228_s6 + $0xc4] ss:$8 sps:$4 sm:$0xff]  }
 0x2fe   :  { %5559 = vmatprep.mubr.msk.bf16.mxu0 %vm296_vm0, %v7386_v15  ;;  %6320 = vmatpush3.bf16.msra.mxu0 %v8222_v57  ;;  %v7406_v15 = vld [vmem:[%s11228_s6 + $0xd4] ss:$8 sps:$4 sm:$0xff]  }
 0x2ff   :  { %6321 = vmatprep.subr.bf16.mxu0 %v11233_v7 }
 0x302   :  { %6322 = vmatpush3.bf16.msra.mxu0 %v8239_v62 }
 0x303   :  { %6323 = vmatprep.subr.bf16.mxu0 %v11233_v7 }
 0x305   :  { %1078 = vmatmul.mubr.bf16.gmra.mrb[72].mxu0 %v7387_v46  ;;  %v7407_v46 = vld [vmem:[%s11228_s6 + $0xd0] ss:$8 sps:$4 sm:$0xff]  }
 0x306   :  { %5560 = vmatprep.mubr.msk.bf16.mxu0 %vm296_vm0, %v7388_v33  ;;  %6324 = vmatpush3.bf16.msra.mxu0 %v8247_v59  ;;  %v7408_v33 = vld [vmem:[%s11228_s6 + $0xe4] ss:$8 sps:$4 sm:$0xff]  }
 0x307   :  { %6325 = vmatprep.subr.bf16.mxu0 %v11233_v7 }
 0x30a   :  { %6326 = vmatpush3.bf16.msra.mxu0 %v8261_v23 }
 0x30b   :  { %2151 = vmatprep.subr.bf16.mxu0 %v11149_v0 }
 0x30d   :  { %1086 = vmatmul.mubr.bf16.gmra.mrb[76].mxu0 %v7389_v21  ;;  %v7409_v21 = vld [vmem:[%s11228_s6 + $0xe0] ss:$8 sps:$4 sm:$0xff]  }
 0x30e   :  { %5561 = vmatprep.mubr.msk.bf16.mxu0 %vm296_vm0, %v7390_v61 }
 0x315   :  { %1094 = vmatmul.mubr.bf16.gmra.mrb[80].mxu0 %v7391_v42 }
 0x316   :  { %5562 = vmatprep.mubr.msk.bf16.mxu0 %vm296_vm0, %v7392_v27 }
 0x31d   :  { %1102 = vmatmul.mubr.bf16.gmra.mrb[84].mxu0 %v7393_v26 }
 0x31e   :  { %5563 = vmatprep.mubr.msk.bf16.mxu0 %vm296_vm0, %v7394_v63 }
 0x325   :  { %1110 = vmatmul.mubr.bf16.gmra.mrb[88].mxu0 %v7395_v24 }
 0x326   :  { %5564 = vmatprep.mubr.msk.bf16.mxu0 %vm296_vm0, %v7396_v30 }
 0x32d   :  { %1118 = vmatmul.mubr.bf16.gmra.mrb[92].mxu0 %v7397_v40 }
 0x32e   :  { %5565 = vmatprep.mubr.msk.bf16.mxu0 %vm296_vm0, %v7398_v2 }
 0x335   :  { %1126 = vmatmul.mubr.bf16.gmra.mrb[96].mxu0 %v7399_v39 }
 0x336   :  { %5566 = vmatprep.mubr.msk.bf16.mxu0 %vm296_vm0, %v7400_v17 }
 0x33d   :  { %1134 = vmatmul.mubr.bf16.gmra.mrb[100].mxu0 %v7401_v44 }
 0x33e   :  { %5567 = vmatprep.mubr.msk.bf16.mxu0 %vm296_vm0, %v7402_v50 }
 0x345   :  { %1142 = vmatmul.mubr.bf16.gmra.mrb[104].mxu0 %v7403_v43 }
 0x346   :  { %5568 = vmatprep.mubr.msk.bf16.mxu0 %vm296_vm0, %v7404_v32 }
 0x34d   :  { %1150 = vmatmul.mubr.bf16.gmra.mrb[108].mxu0 %v7405_v60 }
 0x34e   :  { %5569 = vmatprep.mubr.msk.bf16.mxu0 %vm296_vm0, %v7406_v15 }
 0x355   :  { %1158 = vmatmul.mubr.bf16.gmra.mrb[112].mxu0 %v7407_v46 }
 0x356   :  { %5570 = vmatprep.mubr.msk.bf16.mxu0 %vm296_vm0, %v7408_v33 }
 0x35d   :  { %1166 = vmatmul.mubr.bf16.gmra.mrb[116].mxu0 %v7409_v21 }
 0x35e   :  { %6327 = vmatprep.mubr.msk.bf16.mxu0 %vm7458_vm1, %v11233_v7 }
 0x365   :  { %6328 = vmatmul.mubr.bf16.vlgmr.msra.gmra.mrb[120].mxu0 %v8055_v47 }
 0x366   :  { %6331 = vmatprep.mubr.msk.bf16.mxu0 %vm7458_vm1, %v11233_v7 }
 0x36d   :  { %6332 = vmatmul.mubr.bf16.gmra.mrb[124].mxu0 %v8063_v5 }
 0x36e   :  { %6335 = vmatprep.mubr.msk.bf16.mxu0 %vm7458_vm1, %v11233_v7 }
 0x375   :  { %6336 = vmatmul.mubr.bf16.gmra.mrb[128].mxu0 %v8071_v52 }
 0x376   :  { %6339 = vmatprep.mubr.msk.bf16.mxu0 %vm7458_vm1, %v11233_v7 }
 0x37d   :  { %6340 = vmatmul.mubr.bf16.gmra.mrb[132].mxu0 %v8079_v18 }
 0x37e   :  { %6343 = vmatprep.mubr.msk.bf16.mxu0 %vm7458_vm1, %v11233_v7 }
 0x385   :  { %6344 = vmatmul.mubr.bf16.gmra.mrb[136].mxu0 %v8087_v58 }
 0x386   :  { %6347 = vmatprep.mubr.msk.bf16.mxu0 %vm7458_vm1, %v11233_v7 }
 0x38d   :  { %6348 = vmatmul.mubr.bf16.gmra.mrb[140].mxu0 %v8095_v11 }
 0x38e   :  { %6351 = vmatprep.mubr.msk.bf16.mxu0 %vm7458_vm1, %v11233_v7 }
 0x395   :  { %6352 = vmatmul.mubr.bf16.gmra.mrb[144].mxu0 %v8103_v29 }
 0x396   :  { %6355 = vmatprep.mubr.msk.bf16.mxu0 %vm7458_vm1, %v11233_v7 }
 0x39d   :  { %6356 = vmatmul.mubr.bf16.gmra.mrb[148].mxu0 %v8111_v1 }
 0x39e   :  { %6359 = vmatprep.mubr.msk.bf16.mxu0 %vm7458_vm1, %v11233_v7 }
 0x3a5   :  { %6360 = vmatmul.mubr.bf16.gmra.mrb[152].mxu0 %v8119_v35 }
 0x3a6   :  { %6363 = vmatprep.mubr.msk.bf16.mxu0 %vm7458_vm1, %v11233_v7 }
 0x3ad   :  { %6364 = vmatmul.mubr.bf16.gmra.mrb[156].mxu0 %v8127_v56 }
 0x3ae   :  { %6367 = vmatprep.mubr.msk.bf16.mxu0 %vm7458_vm1, %v11233_v7 }
 0x3b5   :  { %6368 = vmatmul.mubr.bf16.gmra.mrb[160].mxu0 %v8135_v14 }
 0x3b6   :  { %6371 = vmatprep.mubr.msk.bf16.mxu0 %vm7458_vm1, %v11233_v7 }
 0x3bd   :  { %6372 = vmatmul.mubr.bf16.gmra.mrb[164].mxu0 %v8146_v3 }
 0x3c0   :  { %v1055_v47 = vpop.f32.mrb[60].mxu0 }
 0x3c1   :  { %v1057_v5 = vpop.f32.mrb[61].mxu0 }
 0x3c2   :  { %v1058_v52 = vpop.f32.mrb[62].mxu0 }
 0x3c3   :  { %v1174_v18 = vpack.c.bf16 %v1058_v52, %v1055_v47  ;;  %v1060_v58 = vpop.f32.mrb[63].mxu0 }
 0x3c5   :  { %6252 = vmatmul.mubr.bf16.vlgmr.msra.gmra.mrb[120].mxu1 %v1174_v18 }
 0x3c6   :  { %7143 = vmatpush3.bf16.msra.mxu1 %v8180_v8  ;;  %6255 = vmatprep.mubr.msk.bf16.mxu1 %vm7458_vm1, %v11233_v7 }
 0x3c7   :  { %7136 = vmatprep.subr.bf16.mxu1 %v11233_v7 }
 0x3c8   :  { %v1063_v11 = vpop.f32.mrb[64].mxu0 }
 0x3c9   :  { %v1065_v29 = vpop.f32.mrb[65].mxu0 }
 0x3ca   :  { %v1066_v1 = vpop.f32.mrb[66].mxu0  ;;  %7144 = vmatpush3.bf16.msra.mxu1 %v8193_v54 }
 0x3cb   :  { %v1175_v35 = vpack.c.bf16 %v1066_v1, %v1063_v11  ;;  %v1068_v56 = vpop.f32.mrb[67].mxu0  ;;  %7137 = vmatprep.subr.bf16.mxu1 %v11233_v7 }
 0x3cd   :  { %6256 = vmatmul.mubr.bf16.gmra.mrb[124].mxu1 %v1175_v35 }
 0x3ce   :  { %6259 = vmatprep.mubr.msk.bf16.mxu1 %vm7458_vm1, %v11233_v7  ;;  %7145 = vmatpush3.bf16.msra.mxu1 %v8201_v49 }
 0x3cf   :  { %7138 = vmatprep.subr.bf16.mxu1 %v11233_v7 }
 0x3d0   :  { %v1071_v14 = vpop.f32.mrb[68].mxu0 }
 0x3d1   :  { %v1073_v3 = vpop.f32.mrb[69].mxu0 }
 0x3d2   :  { %v1074_v8 = vpop.f32.mrb[70].mxu0  ;;  %7146 = vmatpush3.bf16.msra.mxu1 %v8215_v20 }
 0x3d3   :  { %v1176_v51 = vpack.c.bf16 %v1074_v8, %v1071_v14  ;;  %v1076_v61 = vpop.f32.mrb[71].mxu0  ;;  %7139 = vmatprep.subr.bf16.mxu1 %v11233_v7 }
 0x3d5   :  { %6260 = vmatmul.mubr.bf16.gmra.mrb[128].mxu1 %v1176_v51 }
 0x3d6   :  { %6263 = vmatprep.mubr.msk.bf16.mxu1 %vm7458_vm1, %v11233_v7  ;;  %7147 = vmatpush3.bf16.msra.mxu1 %v8222_v57 }
 0x3d7   :  { %7140 = vmatprep.subr.bf16.mxu1 %v11233_v7 }
 0x3d8   :  { %v1079_v54 = vpop.f32.mrb[72].mxu0 }
 0x3d9   :  { %v1081_v49 = vpop.f32.mrb[73].mxu0 }
 0x3da   :  { %v1082_v42 = vpop.f32.mrb[74].mxu0  ;;  %7148 = vmatpush3.bf16.msra.mxu1 %v8239_v62 }
 0x3db   :  { %v1177_v27 = vpack.c.bf16 %v1082_v42, %v1079_v54  ;;  %v1084_v36 = vpop.f32.mrb[75].mxu0  ;;  %7141 = vmatprep.subr.bf16.mxu1 %v11233_v7 }
 0x3dd   :  { %6264 = vmatmul.mubr.bf16.gmra.mrb[132].mxu1 %v1177_v27 }
 0x3de   :  { %6267 = vmatprep.mubr.msk.bf16.mxu1 %vm7458_vm1, %v11233_v7  ;;  %7149 = vmatpush3.bf16.msra.mxu1 %v8247_v59 }
 0x3df   :  { %7142 = vmatprep.subr.bf16.mxu1 %v11233_v7 }
 0x3e0   :  { %v1087_v20 = vpop.f32.mrb[76].mxu0 }
 0x3e1   :  { %v1089_v57 = vpop.f32.mrb[77].mxu0 }
 0x3e2   :  { %v1090_v26 = vpop.f32.mrb[78].mxu0  ;;  %7150 = vmatpush3.bf16.msra.mxu1 %v8261_v23 }
 0x3e3   :  { %v1178_v63 = vpack.c.bf16 %v1090_v26, %v1087_v20  ;;  %v1092_v24 = vpop.f32.mrb[79].mxu0  ;;  %6387 = vmatprep.subr.bf16.mxu1 %v11233_v7 }
 0x3e5   :  { %6268 = vmatmul.mubr.bf16.gmra.mrb[136].mxu1 %v1178_v63 }
 0x3e6   :  { %6271 = vmatprep.mubr.msk.bf16.mxu1 %vm7458_vm1, %v11233_v7 }
 0x3e8   :  { %v1095_v62 = vpop.f32.mrb[80].mxu0 }
 0x3e9   :  { %v1097_v13 = vpop.f32.mrb[81].mxu0 }
 0x3ea   :  { %v1098_v30 = vpop.f32.mrb[82].mxu0 }
 0x3eb   :  { %v1179_v40 = vpack.c.bf16 %v1098_v30, %v1095_v62  ;;  %v1100_v59 = vpop.f32.mrb[83].mxu0 }
 0x3ed   :  { %6272 = vmatmul.mubr.bf16.gmra.mrb[140].mxu1 %v1179_v40 }
 0x3ee   :  { %6275 = vmatprep.mubr.msk.bf16.mxu1 %vm7458_vm1, %v11233_v7 }
 0x3f0   :  { %v1103_v2 = vpop.f32.mrb[84].mxu0 }
 0x3f1   :  { %v1105_v39 = vpop.f32.mrb[85].mxu0 }
 0x3f2   :  { %v1106_v23 = vpop.f32.mrb[86].mxu0 }
 0x3f3   :  { %v1180_v55 = vpack.c.bf16 %v1106_v23, %v1103_v2  ;;  %v1108_v17 = vpop.f32.mrb[87].mxu0 }
 0x3f4   :  { %v7219_v17 = vld [vmem:[%s11235_s0] sm:$0xff]  }
 0x3f5   :  { %6276 = vmatmul.mubr.bf16.gmra.mrb[144].mxu1 %v1180_v55 }
 0x3f6   :  { %6279 = vmatprep.mubr.msk.bf16.mxu1 %vm7458_vm1, %v11233_v7 }
 0x3f8   :  { %v1111_v44 = vpop.f32.mrb[88].mxu0 }
 0x3f9   :  { %v1113_v50 = vpop.f32.mrb[89].mxu0 }
 0x3fa   :  { %v1114_v43 = vpop.f32.mrb[90].mxu0  ;;  %v7220_v50 = vld [vmem:[%s11235_s0 + $0x8] sm:$0xff]  }
 0x3fb   :  { %v1181_v32 = vpack.c.bf16 %v1114_v43, %v1111_v44  ;;  %v1116_v60 = vpop.f32.mrb[91].mxu0 }
 0x3fd   :  { %6280 = vmatmul.mubr.bf16.gmra.mrb[148].mxu1 %v1181_v32 }
 0x3fe   :  { %6283 = vmatprep.mubr.msk.bf16.mxu1 %vm7458_vm1, %v11233_v7 }
 0x400   :  { %v1119_v15 = vpop.f32.mrb[92].mxu0 }
 0x401   :  { %v1121_v46 = vpop.f32.mrb[93].mxu0 }
 0x402   :  { %v1122_v33 = vpop.f32.mrb[94].mxu0 }
 0x403   :  { %v1182_v21 = vpack.c.bf16 %v1122_v33, %v1119_v15  ;;  %v1124_v47 = vpop.f32.mrb[95].mxu0 }
 0x405   :  { %6284 = vmatmul.mubr.bf16.gmra.mrb[152].mxu1 %v1182_v21 }
 0x406   :  { %6287 = vmatprep.mubr.msk.bf16.mxu1 %vm7458_vm1, %v11233_v7 }
 0x408   :  { %v1127_v5 = vpop.f32.mrb[96].mxu0 }
 0x409   :  { %v1129_v52 = vpop.f32.mrb[97].mxu0 }
 0x40a   :  { %v1130_v18 = vpop.f32.mrb[98].mxu0 }
 0x40b   :  { %v1183_v58 = vpack.c.bf16 %v1130_v18, %v1127_v5  ;;  %v1132_v11 = vpop.f32.mrb[99].mxu0 }
 0x40d   :  { %6288 = vmatmul.mubr.bf16.gmra.mrb[156].mxu1 %v1183_v58 }
 0x40e   :  { %6291 = vmatprep.mubr.msk.bf16.mxu1 %vm7458_vm1, %v11233_v7 }
 0x410   :  { %v1135_v29 = vpop.f32.mrb[100].mxu0 }
 0x411   :  { %v1137_v1 = vpop.f32.mrb[101].mxu0 }
 0x412   :  { %v1138_v35 = vpop.f32.mrb[102].mxu0 }
 0x413   :  { %v1184_v56 = vpack.c.bf16 %v1138_v35, %v1135_v29  ;;  %v1140_v14 = vpop.f32.mrb[103].mxu0 }
 0x415   :  { %6292 = vmatmul.mubr.bf16.gmra.mrb[160].mxu1 %v1184_v56 }
 0x416   :  { %6295 = vmatprep.mubr.msk.bf16.mxu1 %vm7458_vm1, %v11233_v7 }
 0x418   :  { %v1143_v3 = vpop.f32.mrb[104].mxu0 }
 0x419   :  { %v1145_v8 = vpop.f32.mrb[105].mxu0 }
 0x41a   :  { %v1146_v51 = vpop.f32.mrb[106].mxu0 }
 0x41b   :  { %v1185_v61 = vpack.c.bf16 %v1146_v51, %v1143_v3  ;;  %v1148_v54 = vpop.f32.mrb[107].mxu0 }
 0x41d   :  { %6296 = vmatmul.mubr.bf16.gmra.mrb[164].mxu1 %v1185_v61 }
 0x41e   :  { %6299 = vmatprep.mubr.msk.bf16.mxu1 %vm7458_vm1, %v11233_v7 }
 0x420   :  { %v1151_v49 = vpop.f32.mrb[108].mxu0 }
 0x421   :  { %v1153_v42 = vpop.f32.mrb[109].mxu0 }
 0x422   :  { %v1154_v27 = vpop.f32.mrb[110].mxu0 }
 0x423   :  { %v1186_v36 = vpack.c.bf16 %v1154_v27, %v1151_v49  ;;  %v1156_v20 = vpop.f32.mrb[111].mxu0 }
 0x425   :  { %6300 = vmatmul.mubr.bf16.gmra.mrb[168].mxu1 %v1186_v36 }
 0x426   :  { %6303 = vmatprep.mubr.msk.bf16.mxu1 %vm7458_vm1, %v11233_v7 }
 0x428   :  { %v1159_v57 = vpop.f32.mrb[112].mxu0 }
 0x429   :  { %v1161_v26 = vpop.f32.mrb[113].mxu0 }
 0x42a   :  { %v1162_v63 = vpop.f32.mrb[114].mxu0 }
 0x42b   :  { %v1187_v24 = vpack.c.bf16 %v1162_v63, %v1159_v57  ;;  %v1164_v62 = vpop.f32.mrb[115].mxu0 }
 0x42d   :  { %6304 = vmatmul.mubr.bf16.gmra.mrb[172].mxu1 %v1187_v24 }
 0x42e   :  { %6307 = vmatprep.mubr.msk.bf16.mxu1 %vm7458_vm1, %v11233_v7 }
 0x430   :  { %v1167_v13 = vpop.f32.mrb[116].mxu0 }
 0x431   :  { %v1169_v30 = vpop.f32.mrb[117].mxu0 }
 0x432   :  { %v1170_v40 = vpop.f32.mrb[118].mxu0 }
 0x433   :  { %v1188_v59 = vpack.c.bf16 %v1170_v40, %v1167_v13  ;;  %v1172_v2 = vpop.f32.mrb[119].mxu0 }
 0x435   :  { %6308 = vmatmul.mubr.bf16.gmra.mrb[176].mxu1 %v1188_v59 }
 0x436   :  { %6375 = vmatprep.mubr.msk.bf16.mxu1 %vm7458_vm1, %v11233_v7 }
 0x438   :  { %v8437_v39 = vpop.f32.mrb[120].mxu0 }
 0x439   :  { %v6329_v23 = vpop.f32.mrb[121].mxu0 }
 0x43a   :  { %v8439_v55 = vpop.f32.mrb[122].mxu0 }
 0x43b   :  { %v6330_v44 = vpop.f32.mrb[123].mxu0 }
 0x43d   :  { %6376 = vmatmul.mubr.bf16.vlgmr.msra.gmra.mrb[180].mxu1 %v8155_v10 }
 0x43e   :  { %6388 = vmatpush3.bf16.msra.mxu1 %v7219_v17  ;;  %6379 = vmatprep.mubr.msk.bf16.mxu1 %vm7458_vm1, %v11233_v7 }
 0x43f   :  { %6389 = vmatprep.subr.bf16.mxu1 %v11233_v7 }
 0x440   :  { %v8451_v43 = vpop.f32.mrb[124].mxu0 }
 0x441   :  { %v6333_v32 = vpop.f32.mrb[125].mxu0 }
 0x442   :  { %v8453_v60 = vpop.f32.mrb[126].mxu0  ;;  %6390 = vmatpush3.bf16.msra.mxu1 %v7220_v50 }
 0x443   :  { %v6334_v15 = vpop.f32.mrb[127].mxu0  ;;  %6451 = vmatprep.subr.bf16.mxu1 %v11233_v7 }
 0x445   :  { %6380 = vmatmul.mubr.bf16.gmra.mrb[184].mxu1 %v8166_v53 }
 0x446   :  { %6383 = vmatprep.mubr.msk.bf16.mxu1 %vm7458_vm1, %v11233_v7 }
 0x448   :  { %v8459_v10 = vpop.f32.mrb[128].mxu0 }
 0x449   :  { %v6337_v46 = vpop.f32.mrb[129].mxu0 }
 0x44a   :  { %v8461_v33 = vpop.f32.mrb[130].mxu0 }
 0x44b   :  { %v6338_v21 = vpop.f32.mrb[131].mxu0 }
 0x44d   :  { %6384 = vmatmul.mubr.bf16.gmra.mrb[188].mxu1 %v8174_v38 }
 0x44e   :  { %6391 = vmatprep.mubr.msk.bf16.mxu1 %vm7458_vm1, %v11233_v7 }
 0x450   :  { %v8466_v47 = vpop.f32.mrb[132].mxu0 }
 0x451   :  { %v6341_v5 = vpop.f32.mrb[133].mxu0 }
 0x452   :  { %v8468_v52 = vpop.f32.mrb[134].mxu0 }
 0x453   :  { %v6342_v53 = vpop.f32.mrb[135].mxu0 }
 0x455   :  { %6392 = vmatmul.mubr.msk.bf16.vlgmr.msra.gmra.mrb[192].mxu1 %vm530_vm2, %v7604_v4 }
 0x456   :  { %6395 = vmatprep.mubr.msk.bf16.mxu1 %vm7458_vm1, %v11233_v7 }
 0x458   :  { %v8474_v18 = vpop.f32.mrb[136].mxu0 }
 0x459   :  { %v6345_v58 = vpop.f32.mrb[137].mxu0 }
 0x45a   :  { %v8476_v11 = vpop.f32.mrb[138].mxu0 }
 0x45b   :  { %v6346_v38 = vpop.f32.mrb[139].mxu0 }
 0x45d   :  { %6396 = vmatmul.mubr.msk.bf16.gmra.mrb[196].mxu1 %vm530_vm2, %v7610_v6 }
 0x45e   :  { %6399 = vmatprep.mubr.msk.bf16.mxu1 %vm7458_vm1, %v11233_v7 }
 0x460   :  { %v8482_v29 = vpop.f32.mrb[140].mxu0 }
 0x461   :  { %v6349_v1 = vpop.f32.mrb[141].mxu0 }
 0x462   :  { %v8484_v35 = vpop.f32.mrb[142].mxu0 }
 0x463   :  { %v6350_v4 = vpop.f32.mrb[143].mxu0 }
 0x465   :  { %6400 = vmatmul.mubr.msk.bf16.gmra.mrb[200].mxu1 %vm530_vm2, %v7620_v9 }
 0x466   :  { %6403 = vmatprep.mubr.msk.bf16.mxu1 %vm7458_vm1, %v11233_v7 }
 0x468   :  { %v8490_v56 = vpop.f32.mrb[144].mxu0 }
 0x469   :  { %v6353_v14 = vpop.f32.mrb[145].mxu0 }
 0x46a   :  { %v8492_v3 = vpop.f32.mrb[146].mxu0 }
 0x46b   :  { %v6354_v6 = vpop.f32.mrb[147].mxu0 }
 0x46d   :  { %6404 = vmatmul.mubr.msk.bf16.gmra.mrb[204].mxu1 %vm530_vm2, %v7630_v12 }
 0x46e   :  { %6407 = vmatprep.mubr.msk.bf16.mxu1 %vm7458_vm1, %v11233_v7 }
 0x470   :  { %v8498_v8 = vpop.f32.mrb[148].mxu0 }
 0x471   :  { %v6357_v51 = vpop.f32.mrb[149].mxu0 }
 0x472   :  { %v8500_v61 = vpop.f32.mrb[150].mxu0 }
 0x473   :  { %v6358_v9 = vpop.f32.mrb[151].mxu0 }
 0x475   :  { %6408 = vmatmul.mubr.msk.bf16.gmra.mrb[208].mxu1 %vm530_vm2, %v7647_v16 }
 0x476   :  { %6411 = vmatprep.mubr.msk.bf16.mxu1 %vm7458_vm1, %v11233_v7 }
 0x478   :  { %v8506_v54 = vpop.f32.mrb[152].mxu0 }
 0x479   :  { %v6361_v49 = vpop.f32.mrb[153].mxu0 }
 0x47a   :  { %v8508_v42 = vpop.f32.mrb[154].mxu0 }
 0x47b   :  { %v6362_v12 = vpop.f32.mrb[155].mxu0 }
 0x47d   :  { %6412 = vmatmul.mubr.msk.bf16.gmra.mrb[212].mxu1 %vm530_vm2, %v7657_v19 }
 0x47e   :  { %6415 = vmatprep.mubr.msk.bf16.mxu1 %vm7458_vm1, %v11233_v7 }
 0x480   :  { %v8514_v27 = vpop.f32.mrb[156].mxu0 }
 0x481   :  { %v6365_v36 = vpop.f32.mrb[157].mxu0 }
 0x482   :  { %v8516_v20 = vpop.f32.mrb[158].mxu0 }
 0x483   :  { %v6366_v16 = vpop.f32.mrb[159].mxu0 }
 0x485   :  { %6416 = vmatmul.mubr.msk.bf16.gmra.mrb[216].mxu1 %vm530_vm2, %v7667_v22 }
 0x486   :  { %6419 = vmatprep.mubr.msk.bf16.mxu1 %vm7458_vm1, %v11233_v7 }
 0x488   :  { %v8522_v57 = vpop.f32.mrb[160].mxu0 }
 0x489   :  { %v6369_v26 = vpop.f32.mrb[161].mxu0 }
 0x48a   :  { %v8524_v63 = vpop.f32.mrb[162].mxu0 }
 0x48b   :  { %v6370_v19 = vpop.f32.mrb[163].mxu0 }
 0x48d   :  { %6420 = vmatmul.mubr.msk.bf16.gmra.mrb[220].mxu1 %vm530_vm2, %v7677_v25 }
 0x48e   :  { %6423 = vmatprep.mubr.msk.bf16.mxu1 %vm7458_vm1, %v11233_v7 }
 0x490   :  { %v8530_v24 = vpop.f32.mrb[164].mxu0 }
 0x491   :  { %v6373_v62 = vpop.f32.mrb[165].mxu0 }
 0x492   :  { %v8532_v13 = vpop.f32.mrb[166].mxu0 }
 0x493   :  { %v6374_v22 = vpop.f32.mrb[167].mxu0 }
 0x495   :  { %6424 = vmatmul.mubr.msk.bf16.gmra.mrb[224].mxu1 %vm530_vm2, %v7687_v28 }
 0x496   :  { %6427 = vmatprep.mubr.msk.bf16.mxu1 %vm7458_vm1, %v11233_v7 }
 0x498   :  { %v1303_v30 = vpop.f32.mrb[120].mxu1 }
 0x499   :  { %v8539_v40 = vadd.f32 %v8437_v39, %v1303_v30  ;;  %v6253_v25 = vpop.f32.mrb[121].mxu1 }
 0x49a   :  { %v1306_v59 = vpop.f32.mrb[122].mxu1 }
 0x49b   :  { %v8542_v2 = vadd.f32 %v8439_v55, %v1306_v59  ;;  %v6254_v23 = vpop.f32.mrb[123].mxu1 }
 0x49d   :  { %6428 = vmatmul.mubr.msk.bf16.gmra.mrb[228].mxu1 %vm530_vm2, %v7697_v31 }
 0x49e   :  { %6431 = vmatprep.mubr.msk.bf16.mxu1 %vm7458_vm1, %v11233_v7 }
 0x4a0   :  { %v1311_v28 = vpop.f32.mrb[124].mxu1 }
 0x4a1   :  { %v8549_v17 = vadd.f32 %v8451_v43, %v1311_v28  ;;  %v6257_v44 = vpop.f32.mrb[125].mxu1 }
 0x4a2   :  { %v1314_v50 = vpop.f32.mrb[126].mxu1 }
 0x4a3   :  { %v8552_v39 = vadd.f32 %v8453_v60, %v1314_v50  ;;  %v6258_v32 = vpop.f32.mrb[127].mxu1 }
 0x4a5   :  { %6432 = vmatmul.mubr.msk.bf16.gmra.mrb[232].mxu1 %vm530_vm2, %v7707_v34 }
 0x4a6   :  { %6435 = vmatprep.mubr.msk.bf16.mxu1 %vm7458_vm1, %v11233_v7 }
 0x4a8   :  { %v1319_v31 = vpop.f32.mrb[128].mxu1 }
 0x4a9   :  { %v8559_v55 = vadd.f32 %v8459_v10, %v1319_v31  ;;  %v6261_v15 = vpop.f32.mrb[129].mxu1 }
 0x4aa   :  { %v1322_v46 = vpop.f32.mrb[130].mxu1 }
 0x4ab   :  { %v8562_v43 = vadd.f32 %v8461_v33, %v1322_v46  ;;  %v6262_v21 = vpop.f32.mrb[131].mxu1 }
 0x4ad   :  { %6436 = vmatmul.mubr.msk.bf16.gmra.mrb[236].mxu1 %vm530_vm2, %v7717_v37 }
 0x4ae   :  { %6439 = vmatprep.mubr.msk.bf16.mxu1 %vm7458_vm1, %v11233_v7 }
 0x4b0   :  { %v1327_v34 = vpop.f32.mrb[132].mxu1 }
 0x4b1   :  { %v8569_v60 = vadd.f32 %v8466_v47, %v1327_v34  ;;  %v6265_v5 = vpop.f32.mrb[133].mxu1 }
 0x4b2   :  { %v1330_v53 = vpop.f32.mrb[134].mxu1 }
 0x4b3   :  { %v8572_v10 = vadd.f32 %v8468_v52, %v1330_v53  ;;  %v6266_v58 = vpop.f32.mrb[135].mxu1 }
 0x4b5   :  { %6440 = vmatmul.mubr.msk.bf16.gmra.mrb[240].mxu1 %vm530_vm2, %v7730_v41 }
 0x4b6   :  { %6443 = vmatprep.mubr.msk.bf16.mxu1 %vm7458_vm1, %v11233_v7 }
 0x4b8   :  { %v1335_v37 = vpop.f32.mrb[136].mxu1 }
 0x4b9   :  { %v8579_v33 = vadd.f32 %v8474_v18, %v1335_v37  ;;  %v6269_v38 = vpop.f32.mrb[137].mxu1 }
 0x4ba   :  { %v1338_v1 = vpop.f32.mrb[138].mxu1 }
 0x4bb   :  { %v8582_v47 = vadd.f32 %v8476_v11, %v1338_v1  ;;  %v6270_v4 = vpop.f32.mrb[139].mxu1 }
 0x4bd   :  { %6444 = vmatmul.mubr.msk.bf16.gmra.mrb[244].mxu1 %vm530_vm2, %v7742_v45 }
 0x4be   :  { %6447 = vmatprep.mubr.msk.bf16.mxu1 %vm7458_vm1, %v11233_v7 }
 0x4c0   :  { %v1343_v41 = vpop.f32.mrb[140].mxu1 }
 0x4c1   :  { %v8589_v52 = vadd.f32 %v8482_v29, %v1343_v41  ;;  %v6273_v14 = vpop.f32.mrb[141].mxu1 }
 0x4c2   :  { %v1346_v6 = vpop.f32.mrb[142].mxu1 }
 0x4c3   :  { %v8592_v18 = vadd.f32 %v8484_v35, %v1346_v6  ;;  %v6274_v51 = vpop.f32.mrb[143].mxu1 }
 0x4c5   :  { %6448 = vmatmul.mubr.msk.bf16.gmra.mrb[248].mxu1 %vm530_vm2, %v7752_v48 }
 0x4c6   :  { %6467 = vmatprep.mubr.msk.bf16.mxu1 %vm7458_vm1, %v11233_v7 }
 0x4c8   :  { %v1351_v45 = vpop.f32.mrb[144].mxu1 }
 0x4c9   :  { %v8599_v11 = vadd.f32 %v8490_v56, %v1351_v45  ;;  %v6277_v9 = vpop.f32.mrb[145].mxu1 }
 0x4ca   :  { %v1354_v49 = vpop.f32.mrb[146].mxu1 }
 0x4cb   :  { %v8602_v29 = vadd.f32 %v8492_v3, %v1354_v49  ;;  %v6278_v12 = vpop.f32.mrb[147].mxu1 }
 0x4d0   :  { %v1359_v36 = vpop.f32.mrb[148].mxu1 }
 0x4d1   :  { %v8605_v35 = vadd.f32 %v8498_v8, %v1359_v36  ;;  %v6281_v16 = vpop.f32.mrb[149].mxu1 }
 0x4d2   :  { %v1362_v26 = vpop.f32.mrb[150].mxu1 }
 0x4d3   :  { %v8608_v48 = vadd.f32 %v8500_v61, %v1362_v26  ;;  %v6282_v19 = vpop.f32.mrb[151].mxu1 }
 0x4d8   :  { %v1367_v62 = vpop.f32.mrb[152].mxu1 }
 0x4d9   :  { %v8611_v56 = vadd.f32 %v8506_v54, %v1367_v62  ;;  %v6285_v22 = vpop.f32.mrb[153].mxu1 }
 0x4da   :  { %v1370_v30 = vpop.f32.mrb[154].mxu1 }
 0x4db   :  { %v8614_v3 = vadd.f32 %v8508_v42, %v1370_v30  ;;  %v6286_v25 = vpop.f32.mrb[155].mxu1 }
 0x4e0   :  { %v1375_v59 = vpop.f32.mrb[156].mxu1 }
 0x4e1   :  { %v8617_v8 = vadd.f32 %v8514_v27, %v1375_v59  ;;  %v6289_v23 = vpop.f32.mrb[157].mxu1 }
 0x4e2   :  { %v1378_v28 = vpop.f32.mrb[158].mxu1  ;;  %v8647_v23 = vld [vmem:[%s11236_s10] ss:$0 sm:$0xff] }
 0x4e3   :  { %v8620_v61 = vadd.f32 %v8516_v20, %v1378_v28  ;;  %v6290_v44 = vpop.f32.mrb[159].mxu1 }
 0x4e8   :  { %v1383_v50 = vpop.f32.mrb[160].mxu1 }
 0x4e9   :  { %v8623_v54 = vadd.f32 %v8522_v57, %v1383_v50  ;;  %v6293_v32 = vpop.f32.mrb[161].mxu1 }
 0x4ea   :  { %v1386_v31 = vpop.f32.mrb[162].mxu1  ;;  %v7223_v32 = vld [vmem:[%s11237_s2 + $0x4] ss:$8 sps:$4 sm:$0xff]  }
 0x4eb   :  { %v8626_v42 = vadd.f32 %v8524_v63, %v1386_v31  ;;  %v6294_v15 = vpop.f32.mrb[163].mxu1  ;;  %v1630_v31 = vadd.f32 %v8647_v23, %v8539_v40  ;;  %5636 = vmatprep.mubr.msk.bf16.mxu0 %vm296_vm0, %v7223_v32 }
 0x4ec   :  { %v8659_v15 = vld [vmem:[%s11238_s8] ss:$0 sm:$0xff] }
 0x4f0   :  { %v1391_v46 = vpop.f32.mrb[164].mxu1 }
 0x4f1   :  { %v8629_v27 = vadd.f32 %v8530_v24, %v1391_v46  ;;  %v6297_v21 = vpop.f32.mrb[165].mxu1  ;;  %v1631_v46 = vadd.f32 %v8647_v23, %v8542_v2  ;;  %v1633_v2 = vadd.f32 %v8647_v23, %v8552_v39 }
 0x4f2   :  { %v1394_v34 = vpop.f32.mrb[166].mxu1 }
 0x4f3   :  { %v8632_v20 = vadd.f32 %v8532_v13, %v1394_v34  ;;  %v6298_v5 = vpop.f32.mrb[167].mxu1  ;;  %v1660_v34 = vmax.f32 %v1630_v31, 0.0 }
 0x4f8   :  { %v1399_v53 = vpop.f32.mrb[168].mxu1 }
 0x4f9   :  { %v6301_v58 = vpop.f32.mrb[169].mxu1 }
 0x4fa   :  { %v1402_v57 = vpop.f32.mrb[170].mxu1 }
 0x4fb   :  { %v6302_v37 = vpop.f32.mrb[171].mxu1 }
 0x500   :  { %v1407_v38 = vpop.f32.mrb[172].mxu1 }
 0x501   :  { %v6305_v1 = vpop.f32.mrb[173].mxu1 }
 0x502   :  { %v1410_v4 = vpop.f32.mrb[174].mxu1  ;;  %v1632_v1 = vadd.f32 %v8647_v23, %v8549_v17 }
 0x503   :  { %v6306_v63 = vpop.f32.mrb[175].mxu1 }
 0x508   :  { %v1415_v41 = vpop.f32.mrb[176].mxu1 }
 0x509   :  { %v6309_v14 = vpop.f32.mrb[177].mxu1 }
 0x50a   :  { %v1418_v6 = vpop.f32.mrb[178].mxu1 }
 0x50b   :  { %v6310_v51 = vpop.f32.mrb[179].mxu1 }
 0x510   :  { %v1600_v24 = vpop.f32.mrb[180].mxu1 }
 0x511   :  { %v8634_v45 = vadd.f32 %v1600_v24, %v1399_v53  ;;  %v6377_v9 = vpop.f32.mrb[181].mxu1 }
 0x512   :  { %v1603_v49 = vpop.f32.mrb[182].mxu1 }
 0x513   :  { %v8636_v13 = vadd.f32 %v1603_v49, %v1402_v57  ;;  %v6378_v12 = vpop.f32.mrb[183].mxu1  ;;  %v1661_v57 = vmax.f32 %v1631_v46, 0.0  ;;  %v1663_v49 = vmax.f32 %v1633_v2, 0.0 }
 0x518   :  { %v1608_v36 = vpop.f32.mrb[184].mxu1 }
 0x519   :  { %v8638_v16 = vadd.f32 %v1608_v36, %v1407_v38  ;;  %v6381_v26 = vpop.f32.mrb[185].mxu1 }
 0x51a   :  { %v1611_v19 = vpop.f32.mrb[186].mxu1  ;;  %v1634_v26 = vadd.f32 %v8647_v23, %v8559_v55 }
 0x51b   :  { %v8640_v62 = vadd.f32 %v1611_v19, %v1410_v4  ;;  %v6382_v22 = vpop.f32.mrb[187].mxu1 }
 0x51c   :  { %v1635_v22 = vadd.f32 %v8647_v23, %v8562_v43 }
 0x520   :  { %v1616_v30 = vpop.f32.mrb[188].mxu1 }
 0x521   :  { %v8642_v25 = vadd.f32 %v1616_v30, %v1415_v41  ;;  %v6385_v59 = vpop.f32.mrb[189].mxu1 }
 0x522   :  { %v1619_v28 = vpop.f32.mrb[190].mxu1 }
 0x523   :  { %v8649_v44 = vadd.f32 %v1619_v28, %v1418_v6  ;;  %v6386_v50 = vpop.f32.mrb[191].mxu1  ;;  %v1662_v6 = vmax.f32 %v1632_v1, 0.0 }
 0x524   :  { %v1664_v50 = vmax.f32 %v1634_v26, 0.0  ;;  %v1639_v26 = vadd.f32 %v8647_v23, %v8582_v47 }
 0x528   :  { %v1747_v21 = vpop.f32.mrb[192].mxu1 }
 0x529   :  { %v1748_v5 = vadd.f32 %v8659_v15, %v1747_v21  ;;  %v6393_v53 = vpop.f32.mrb[193].mxu1  ;;  %v1665_v21 = vmax.f32 %v1635_v22, 0.0 }
 0x52a   :  { %v1750_v58 = vpop.f32.mrb[194].mxu1  ;;  %v1636_v53 = vadd.f32 %v8647_v23, %v8569_v60 }
 0x52b   :  { %v8665_v37 = vadd.f32 %v1748_v5, %v1660_v34  ;;  %v1751_v40 = vadd.f32 %v8659_v15, %v1750_v58  ;;  %v6394_v38 = vpop.f32.mrb[195].mxu1 }
 0x52c   :  { %v1666_v2 = vmax.f32 %v1636_v53, 0.0 }
 0x52d   :  { %v8670_v4 = vadd.f32 %v1751_v40, %v1661_v57  ;;  %v11148_v63 = vmax.f32 %v8665_v37, 0.0  ;;  %v1637_v57 = vadd.f32 %v8647_v23, %v8572_v10 }
 0x52f   :  { %v11147_v41 = vmax.f32 %v8670_v4, 0.0 }
 0x530   :  { %v1755_v14 = vpop.f32.mrb[196].mxu1 }
 0x531   :  { %v1756_v51 = vadd.f32 %v8659_v15, %v1755_v14  ;;  %v6397_v24 = vpop.f32.mrb[197].mxu1  ;;  %v8681_v9 = vpack.c.bf16 %v11147_v41, %v11148_v63 }
 0x532   :  { %v1758_v17 = vpop.f32.mrb[198].mxu1  ;;  %v1667_v24 = vmax.f32 %v1637_v57, 0.0  ;;  %v1640_v57 = vadd.f32 %v8647_v23, %v8589_v52 }
 0x533   :  { %v8683_v12 = vadd.f32 %v1756_v51, %v1662_v6  ;;  %v1759_v39 = vadd.f32 %v8659_v15, %v1758_v17  ;;  %v6398_v36 = vpop.f32.mrb[199].mxu1  ;;  %2152 = vmatpush1.bf16.msra.mxu0 %v8681_v9 }
 0x534   :  { %2153 = vmatprep.subr.bf16.mxu0 %v11149_v0 }
 0x535   :  { %v8690_v19 = vadd.f32 %v1759_v39, %v1663_v49  ;;  %v11146_v30 = vmax.f32 %v8683_v12, 0.0  ;;  %v1638_v39 = vadd.f32 %v8647_v23, %v8579_v33 }
 0x537   :  { %v11145_v59 = vmax.f32 %v8690_v19, 0.0 }
 0x538   :  { %v1763_v28 = vpop.f32.mrb[200].mxu1 }
 0x539   :  { %v1764_v32 = vadd.f32 %v8659_v15, %v1763_v28  ;;  %v6401_v31 = vpop.f32.mrb[201].mxu1  ;;  %v8701_v46 = vpack.c.bf16 %v11145_v59, %v11146_v30 }
 0x53a   :  { %v1766_v55 = vpop.f32.mrb[202].mxu1 }
 0x53b   :  { %v8703_v34 = vadd.f32 %v1764_v32, %v1664_v50  ;;  %v1767_v43 = vadd.f32 %v8659_v15, %v1766_v55  ;;  %v6402_v5 = vpop.f32.mrb[203].mxu1  ;;  %2154 = vmatpush1.bf16.msra.mxu0 %v8701_v46  ;;  %v1668_v32 = vmax.f32 %v1638_v39, 0.0 }
 0x53c   :  { %2155 = vmatprep.subr.bf16.mxu0 %v11149_v0 }
 0x53d   :  { %v8710_v58 = vadd.f32 %v1767_v43, %v1665_v21  ;;  %v11144_v40 = vmax.f32 %v8703_v34, 0.0  ;;  %v1669_v43 = vmax.f32 %v1639_v26, 0.0 }
 0x53f   :  { %v11139_v38 = vmax.f32 %v8710_v58, 0.0 }
 0x540   :  { %v1771_v1 = vpop.f32.mrb[204].mxu1 }
 0x541   :  { %v1772_v14 = vadd.f32 %v8659_v15, %v1771_v1  ;;  %v6405_v6 = vpop.f32.mrb[205].mxu1  ;;  %v8721_v51 = vpack.c.bf16 %v11139_v38, %v11144_v40 }
 0x542   :  { %v1774_v60 = vpop.f32.mrb[206].mxu1 }
 0x543   :  { %v8723_v17 = vadd.f32 %v1772_v14, %v1666_v2  ;;  %v1775_v10 = vadd.f32 %v8659_v15, %v1774_v60  ;;  %v6406_v49 = vpop.f32.mrb[207].mxu1  ;;  %2156 = vmatpush1.bf16.msra.mxu0 %v8721_v51  ;;  %v1641_v2 = vadd.f32 %v8647_v23, %v8592_v18 }
 0x544   :  { %2157 = vmatprep.subr.bf16.mxu0 %v11149_v0 }
 0x545   :  { %v8730_v36 = vadd.f32 %v1775_v10, %v1667_v24  ;;  %v11134_v22 = vmax.f32 %v8723_v17, 0.0  ;;  %v1670_v24 = vmax.f32 %v1640_v57, 0.0  ;;  %v1671_v26 = vmax.f32 %v1641_v2, 0.0 }
 0x547   :  { %v11133_v28 = vmax.f32 %v8730_v36, 0.0 }
 0x548   :  { %v1779_v50 = vpop.f32.mrb[208].mxu1 }
 0x549   :  { %v1780_v31 = vadd.f32 %v8659_v15, %v1779_v50  ;;  %v6409_v55 = vpop.f32.mrb[209].mxu1  ;;  %v8741_v21 = vpack.c.bf16 %v11133_v28, %v11134_v22 }
 0x54a   :  { %v1782_v33 = vpop.f32.mrb[210].mxu1 }
 0x54b   :  { %v8743_v5 = vadd.f32 %v1780_v31, %v1668_v32  ;;  %v1783_v47 = vadd.f32 %v8659_v15, %v1782_v33  ;;  %v6410_v53 = vpop.f32.mrb[211].mxu1  ;;  %2158 = vmatpush1.bf16.msra.mxu0 %v8741_v21  ;;  %v1642_v31 = vadd.f32 %v8647_v23, %v8599_v11  ;;  %v1643_v33 = vadd.f32 %v8647_v23, %v8602_v29 }
 0x54c   :  { %2159 = vmatprep.subr.bf16.mxu0 %v11149_v0 }
 0x54d   :  { %v8750_v1 = vadd.f32 %v1783_v47, %v1669_v43  ;;  %v11130_v14 = vmax.f32 %v8743_v5, 0.0  ;;  %v1672_v57 = vmax.f32 %v1642_v31, 0.0 }
 0x54f   :  { %v11127_v6 = vmax.f32 %v8750_v1, 0.0 }
 0x550   :  { %v1787_v60 = vpop.f32.mrb[212].mxu1 }
 0x551   :  { %v1788_v10 = vadd.f32 %v8659_v15, %v1787_v60  ;;  %v6413_v49 = vpop.f32.mrb[213].mxu1  ;;  %v8761_v39 = vpack.c.bf16 %v11127_v6, %v11130_v14 }
 0x552   :  { %v1790_v52 = vpop.f32.mrb[214].mxu1 }
 0x553   :  { %v8763_v50 = vadd.f32 %v1788_v10, %v1670_v24  ;;  %v1791_v18 = vadd.f32 %v8659_v15, %v1790_v52  ;;  %v6414_v32 = vpop.f32.mrb[215].mxu1  ;;  %2160 = vmatpush1.bf16.msra.mxu0 %v8761_v39  ;;  %v1673_v10 = vmax.f32 %v1643_v33, 0.0 }
 0x554   :  { %2161 = vmatprep.subr.bf16.mxu0 %v11149_v0  ;;  %v1645_v32 = vadd.f32 %v8647_v23, %v8608_v48 }
 0x555   :  { %v8770_v55 = vadd.f32 %v1791_v18, %v1671_v26  ;;  %v11124_v43 = vmax.f32 %v8763_v50, 0.0  ;;  %v1644_v26 = vadd.f32 %v8647_v23, %v8605_v35 }
 0x557   :  { %v11121_v47 = vmax.f32 %v8770_v55, 0.0 }
 0x558   :  { %v1795_v53 = vpop.f32.mrb[216].mxu1 }
 0x559   :  { %v1796_v2 = vadd.f32 %v8659_v15, %v1795_v53  ;;  %v6417_v60 = vpop.f32.mrb[217].mxu1  ;;  %v8781_v24 = vpack.c.bf16 %v11121_v47, %v11124_v43 }
 0x55a   :  { %v1798_v11 = vpop.f32.mrb[218].mxu1 }
 0x55b   :  { %v8783_v49 = vadd.f32 %v1796_v2, %v1672_v57  ;;  %v1799_v29 = vadd.f32 %v8659_v15, %v1798_v11  ;;  %v6418_v52 = vpop.f32.mrb[219].mxu1  ;;  %2162 = vmatpush1.bf16.msra.mxu0 %v8781_v24  ;;  %v1674_v57 = vmax.f32 %v1644_v26, 0.0  ;;  %v1646_v26 = vadd.f32 %v8647_v23, %v8611_v56 }
 0x55c   :  { %2163 = vmatprep.subr.bf16.mxu0 %v11149_v0 }
 0x55d   :  { %v8790_v18 = vadd.f32 %v1799_v29, %v1673_v10  ;;  %v11120_v31 = vmax.f32 %v8783_v49, 0.0  ;;  %v1675_v10 = vmax.f32 %v1645_v32, 0.0 }
 0x55f   :  { %11239 = vst [vmem:[#allocation3_spill] sm:$0xff] %v8790_v18  ;;  %v11119_v33 = vmax.f32 %v8790_v18, 0.0 }
 0x560   :  { %v1803_v53 = vpop.f32.mrb[220].mxu1 }
 0x561   :  { %v1804_v2 = vadd.f32 %v8659_v15, %v1803_v53  ;;  %v6421_v60 = vpop.f32.mrb[221].mxu1  ;;  %v8801_v11 = vpack.c.bf16 %v11119_v33, %v11120_v31 }
 0x562   :  { %v1806_v35 = vpop.f32.mrb[222].mxu1  ;;  %v1647_v60 = vadd.f32 %v8647_v23, %v8614_v3 }
 0x563   :  { %v8803_v29 = vadd.f32 %v1804_v2, %v1674_v57  ;;  %v1807_v48 = vadd.f32 %v8659_v15, %v1806_v35  ;;  %v6422_v52 = vpop.f32.mrb[223].mxu1  ;;  %2164 = vmatpush1.bf16.msra.mxu0 %v8801_v11  ;;  %v1676_v2 = vmax.f32 %v1646_v26, 0.0  ;;  %v1648_v26 = vadd.f32 %v8647_v23, %v8617_v8 }
 0x564   :  { %2165 = vmatprep.subr.bf16.mxu0 %v11149_v0 }
 0x565   :  { %11240 = vst [vmem:[#allocation4_spill] sm:$0xff] %v8803_v29  ;;  %v8810_v53 = vadd.f32 %v1807_v48, %v1675_v10  ;;  %v11123_v33 = vmax.f32 %v8803_v29, 0.0  ;;  %v1677_v10 = vmax.f32 %v1647_v60, 0.0 }
 0x567   :  { %11241 = vst [vmem:[#allocation5_spill] sm:$0xff] %v8810_v53  ;;  %v11122_v32 = vmax.f32 %v8810_v53, 0.0 }
 0x568   :  { %v1811_v57 = vpop.f32.mrb[224].mxu1 }
 0x569   :  { %v1812_v35 = vadd.f32 %v8659_v15, %v1811_v57  ;;  %v6425_v52 = vpop.f32.mrb[225].mxu1  ;;  %v8821_v31 = vpack.c.bf16 %v11122_v32, %v11123_v33 }
 0x56a   :  { %v1814_v56 = vpop.f32.mrb[226].mxu1  ;;  %v1649_v52 = vadd.f32 %v8647_v23, %v8620_v61 }
 0x56b   :  { %v8823_v48 = vadd.f32 %v1812_v35, %v1676_v2  ;;  %v1815_v3 = vadd.f32 %v8659_v15, %v1814_v56  ;;  %v6426_v47 = vpop.f32.mrb[227].mxu1  ;;  %2166 = vmatpush1.bf16.msra.mxu0 %v8821_v31  ;;  %v1678_v35 = vmax.f32 %v1648_v26, 0.0  ;;  %v1650_v26 = vadd.f32 %v8647_v23, %v8623_v54 }
 0x56c   :  { %2167 = vmatprep.subr.bf16.mxu0 %v11149_v0 }
 0x56d   :  { %11242 = vst [vmem:[#allocation6_spill] sm:$0xff] %v8823_v48  ;;  %v8830_v57 = vadd.f32 %v1815_v3, %v1677_v10  ;;  %v11126_v32 = vmax.f32 %v8823_v48, 0.0  ;;  %v1679_v10 = vmax.f32 %v1649_v52, 0.0 }
 0x56f   :  { %11243 = vst [vmem:[#allocation7_spill] sm:$0xff] %v8830_v57  ;;  %v11125_v60 = vmax.f32 %v8830_v57, 0.0 }
 0x570   :  { %v1819_v2 = vpop.f32.mrb[228].mxu1 }
 0x571   :  { %v1820_v47 = vadd.f32 %v8659_v15, %v1819_v2  ;;  %v6429_v56 = vpop.f32.mrb[229].mxu1  ;;  %v8841_v33 = vpack.c.bf16 %v11125_v60, %v11126_v32 }
 0x572   :  { %v1822_v8 = vpop.f32.mrb[230].mxu1  ;;  %v1651_v56 = vadd.f32 %v8647_v23, %v8626_v42 }
 0x573   :  { %v8843_v3 = vadd.f32 %v1820_v47, %v1678_v35  ;;  %v1823_v61 = vadd.f32 %v8659_v15, %v1822_v8  ;;  %v6430_v43 = vpop.f32.mrb[231].mxu1  ;;  %2168 = vmatpush1.bf16.msra.mxu0 %v8841_v33  ;;  %v1680_v47 = vmax.f32 %v1650_v26, 0.0  ;;  %v1652_v26 = vadd.f32 %v8647_v23, %v8629_v27 }
 0x574   :  { %2169 = vmatprep.subr.bf16.mxu0 %v11149_v0 }
 0x575   :  { %11244 = vst [vmem:[#allocation8_spill] sm:$0xff] %v8843_v3  ;;  %v8850_v2 = vadd.f32 %v1823_v61, %v1679_v10  ;;  %v11129_v60 = vmax.f32 %v8843_v3, 0.0  ;;  %v1681_v10 = vmax.f32 %v1651_v56, 0.0 }
 0x577   :  { %11245 = vst [vmem:[#allocation9_spill] sm:$0xff] %v8850_v2  ;;  %v11128_v52 = vmax.f32 %v8850_v2, 0.0 }
 0x578   :  { %v1827_v35 = vpop.f32.mrb[232].mxu1 }
 0x579   :  { %v1828_v43 = vadd.f32 %v8659_v15, %v1827_v35  ;;  %v6433_v8 = vpop.f32.mrb[233].mxu1  ;;  %v8861_v32 = vpack.c.bf16 %v11128_v52, %v11129_v60 }
 0x57a   :  { %v1830_v54 = vpop.f32.mrb[234].mxu1  ;;  %v1653_v8 = vadd.f32 %v8647_v23, %v8632_v20 }
 0x57b   :  { %v8863_v61 = vadd.f32 %v1828_v43, %v1680_v47  ;;  %v1831_v42 = vadd.f32 %v8659_v15, %v1830_v54  ;;  %v6434_v6 = vpop.f32.mrb[235].mxu1  ;;  %2170 = vmatpush1.bf16.msra.mxu0 %v8861_v32  ;;  %v1682_v43 = vmax.f32 %v1652_v26, 0.0  ;;  %v1654_v26 = vadd.f32 %v8647_v23, %v8634_v45 }
 0x57c   :  { %2171 = vmatprep.subr.bf16.mxu0 %v11149_v0 }
 0x57d   :  { %11246 = vst [vmem:[#allocation10_spill] sm:$0xff] %v8863_v61  ;;  %v8870_v35 = vadd.f32 %v1831_v42, %v1681_v10  ;;  %v11132_v52 = vmax.f32 %v8863_v61, 0.0  ;;  %v1683_v10 = vmax.f32 %v1653_v8, 0.0 }
 0x57f   :  { %11247 = vst [vmem:[#allocation11_spill] sm:$0xff] %v8870_v35  ;;  %v11131_v56 = vmax.f32 %v8870_v35, 0.0 }
 0x580   :  { %v1835_v47 = vpop.f32.mrb[236].mxu1 }
 0x581   :  { %v1836_v6 = vadd.f32 %v8659_v15, %v1835_v47  ;;  %v6437_v54 = vpop.f32.mrb[237].mxu1  ;;  %v8881_v60 = vpack.c.bf16 %v11131_v56, %v11132_v52  ;;  %v1655_v56 = vadd.f32 %v8647_v23, %v8636_v13 }
 0x582   :  { %v1838_v27 = vpop.f32.mrb[238].mxu1 }
 0x583   :  { %v8883_v42 = vadd.f32 %v1836_v6, %v1682_v43  ;;  %v1839_v20 = vadd.f32 %v8659_v15, %v1838_v27  ;;  %v6438_v14 = vpop.f32.mrb[239].mxu1  ;;  %2172 = vmatpush1.bf16.msra.mxu0 %v8881_v60  ;;  %v1684_v6 = vmax.f32 %v1654_v26, 0.0  ;;  %v1685_v13 = vmax.f32 %v1655_v56, 0.0 }
 0x584   :  { %2173 = vmatprep.subr.bf16.mxu0 %v11149_v0  ;;  %v7263_v14 = vld [vmem:[%s11094_s12] sm:$0xff]  }
 0x585   :  { %11248 = vst [vmem:[#allocation12_spill] sm:$0xff] %v8883_v42  ;;  %v8890_v47 = vadd.f32 %v1839_v20, %v1683_v10  ;;  %v11136_v54 = vmax.f32 %v8883_v42, 0.0  ;;  %6452 = vmatpush3.bf16.msra.mxu1 %v7263_v14  ;;  %v1657_v14 = vadd.f32 %v8647_v23, %v8640_v62 }
 0x586   :  { %6453 = vmatprep.subr.bf16.mxu1 %v11233_v7 }
 0x587   :  { %11249 = vst [vmem:[#allocation13_spill] sm:$0xff] %v8890_v47  ;;  %v11135_v8 = vmax.f32 %v8890_v47, 0.0 }
 0x588   :  { %v1843_v43 = vpop.f32.mrb[240].mxu1 }
 0x589   :  { %v1844_v27 = vadd.f32 %v8659_v15, %v1843_v43  ;;  %v6441_v52 = vpop.f32.mrb[241].mxu1  ;;  %v8904_v45 = vpack.c.bf16 %v11135_v8, %v11136_v54 }
 0x58a   :  { %v1846_v10 = vpop.f32.mrb[242].mxu1  ;;  %v1656_v52 = vadd.f32 %v8647_v23, %v8638_v16 }
 0x58b   :  { %v8907_v20 = vadd.f32 %v1844_v27, %v1684_v6  ;;  %v1847_v28 = vadd.f32 %v8659_v15, %v1846_v10  ;;  %v6442_v22 = vpop.f32.mrb[243].mxu1  ;;  %2174 = vmatpush1.bf16.msra.mxu0 %v8904_v45 }
 0x58c   :  { %2175 = vmatprep.subr.bf16.mxu0 %v11149_v0  ;;  %v1686_v27 = vmax.f32 %v1656_v52, 0.0  ;;  %v1658_v52 = vadd.f32 %v8647_v23, %v8642_v25 }
 0x58d   :  { %11250 = vst [vmem:[#allocation14_spill] sm:$0xff] %v8907_v20  ;;  %v8914_v26 = vadd.f32 %v1847_v28, %v1685_v13  ;;  %v11138_v43 = vmax.f32 %v8907_v20, 0.0  ;;  %v1687_v28 = vmax.f32 %v1657_v14, 0.0  ;;  %v1659_v14 = vadd.f32 %v8647_v23, %v8649_v44 }
 0x58f   :  { %11251 = vst [vmem:[#allocation15_spill] sm:$0xff] %v8914_v26  ;;  %v11137_v56 = vmax.f32 %v8914_v26, 0.0  ;;  %v1689_v23 = vmax.f32 %v1659_v14, 0.0 }
 0x590   :  { %v1851_v6 = vpop.f32.mrb[244].mxu1 }
 0x591   :  { %v1852_v22 = vadd.f32 %v8659_v15, %v1851_v6  ;;  %v6445_v10 = vpop.f32.mrb[245].mxu1  ;;  %v8925_v8 = vpack.c.bf16 %v11137_v56, %v11138_v43 }
 0x592   :  { %v1854_v16 = vpop.f32.mrb[246].mxu1  ;;  %v7274_v10 = vld [vmem:[%s11094_s12 + $0x8] sm:$0xff]  }
 0x593   :  { %v8927_v13 = vadd.f32 %v1852_v22, %v1686_v27  ;;  %v1855_v62 = vadd.f32 %v8659_v15, %v1854_v16  ;;  %v6446_v54 = vpop.f32.mrb[247].mxu1  ;;  %2176 = vmatpush1.bf16.msra.mxu0 %v8925_v8  ;;  %6454 = vmatpush3.bf16.msra.mxu1 %v7274_v10  ;;  %v1688_v16 = vmax.f32 %v1658_v52, 0.0 }
 0x594   :  { %2177 = vmatprep.subr.bf16.mxu0 %v11149_v0  ;;  %6455 = vmatprep.subr.bf16.mxu1 %v11233_v7 }
 0x595   :  { %11252 = vst [vmem:[#allocation16_spill] sm:$0xff] %v8927_v13  ;;  %v8934_v6 = vadd.f32 %v1855_v62, %v1687_v28  ;;  %v11143_v27 = vmax.f32 %v8927_v13, 0.0 }
 0x597   :  { %11253 = vst [vmem:[#allocation17_spill] sm:$0xff] %v8934_v6  ;;  %v11142_v54 = vmax.f32 %v8934_v6, 0.0 }
 0x598   :  { %v1859_v22 = vpop.f32.mrb[248].mxu1 }
 0x599   :  { %v1860_v56 = vadd.f32 %v8659_v15, %v1859_v22  ;;  %v6449_v43 = vpop.f32.mrb[249].mxu1  ;;  %v8948_v25 = vpack.c.bf16 %v11142_v54, %v11143_v27  ;;  %v7276_v22 = vld [vmem:[%s11094_s12 + $0x10] sm:$0xff]  }
 0x59a   :  { %v1862_v28 = vpop.f32.mrb[250].mxu1  ;;  %6456 = vmatpush3.bf16.msra.mxu1 %v7276_v22  ;;  %v7268_v22 = vld [vmem:[%s11093_s13 + $0x20] sm:$0xff]  }
 0x59b   :  { %v8951_v44 = vadd.f32 %v1860_v56, %v1688_v16  ;;  %v1863_v62 = vadd.f32 %v8659_v15, %v1862_v28  ;;  %v6450_v38 = vpop.f32.mrb[251].mxu1  ;;  %2178 = vmatpush1.bf16.msra.mxu0 %v8948_v25  ;;  %v7221_v15 = vld [vmem:[%s11237_s2] ss:$8 sps:$4 sm:$0xff]   ;;  %6457 = vmatprep.subr.bf16.mxu1 %v11233_v7  ;;  %v7226_v28 = vld [vmem:[%s11237_s2 + $0x10] ss:$8 sps:$4 sm:$0xff]  }
 0x59c   :  { %2179 = vmatprep.subr.bf16.mxu0 %v11149_v0  ;;  %v7224_v38 = vld [vmem:[%s11237_s2 + $0x14] ss:$8 sps:$4 sm:$0xff]   ;;  %v7257_v56 = vld [vmem:[%s11093_s13] sm:$0xff]   ;;  %v7258_v16 = vld [vmem:[%s11093_s13 + $0x8] sm:$0xff]  }
 0x59d   :  { %11254 = vst [vmem:[#allocation18_spill] sm:$0xff] %v8951_v44  ;;  %v8956_v43 = vadd.f32 %v1863_v62, %v1689_v23  ;;  %v11141_v52 = vmax.f32 %v8951_v44, 0.0  ;;  %v7227_v23 = vld [vmem:[%s11237_s2 + $0x24] ss:$8 sps:$4 sm:$0xff]   ;;  %v7262_v62 = vld [vmem:[%s11093_s13 + $0x10] sm:$0xff]  }
 0x59f   :  { %11255 = vst [vmem:[#allocation19_spill] sm:$0xff] %v8956_v43  ;;  %v11140_v10 = vmax.f32 %v8956_v43, 0.0 }
 0x5a1   :  { %v8964_v14 = vpack.c.bf16 %v11140_v10, %v11141_v52 }
 0x5a3   :  { %2180 = vmatpush1.bf16.msra.mxu0 %v8964_v14 }
 0x5a4   :  { %6527 = vmatprep.subr.bf16.mxu0 %v11233_v7 }
 0x5a6   :  { %2184 = vmatmul.mubr.bf16.vlgmr.msra.gmra.mrb[168].mxu0 %v7221_v15  ;;  %v7264_v15 = vld [vmem:[%s11093_s13 + $0x18] sm:$0xff]  }
 0x5a7   :  { %5637 = vmatprep.mubr.msk.bf16.mxu0 %vm296_vm0, %v7224_v38  ;;  %6528 = vmatpush3.bf16.msra.mxu0 %v7257_v56  ;;  %v7229_v38 = vld [vmem:[%s11237_s2 + $0x20] ss:$8 sps:$4 sm:$0xff]   ;;  %v7230_v56 = vld [vmem:[%s11237_s2 + $0x34] ss:$8 sps:$4 sm:$0xff]  }
 0x5a8   :  { %6529 = vmatprep.subr.bf16.mxu0 %v11233_v7 }
 0x5ab   :  { %6530 = vmatpush3.bf16.msra.mxu0 %v7258_v16  ;;  %v7277_v16 = vld [vmem:[%s11094_s12 + $0x18] sm:$0xff]  }
 0x5ac   :  { %6531 = vmatprep.subr.bf16.mxu0 %v11233_v7  ;;  %6458 = vmatpush3.bf16.msra.mxu1 %v7277_v16  ;;  %v7278_v16 = vld [vmem:[%s11094_s12 + $0x20] sm:$0xff]  }
 0x5ad   :  { %6459 = vmatprep.subr.bf16.mxu1 %v11233_v7 }
 0x5ae   :  { %2192 = vmatmul.mubr.bf16.gmra.mrb[172].mxu0 %v7226_v28  ;;  %v7269_v28 = vld [vmem:[%s11093_s13 + $0x28] sm:$0xff]  }
 0x5af   :  { %5638 = vmatprep.mubr.msk.bf16.mxu0 %vm296_vm0, %v7227_v23  ;;  %6532 = vmatpush3.bf16.msra.mxu0 %v7262_v62  ;;  %v7232_v23 = vld [vmem:[%s11237_s2 + $0x30] ss:$8 sps:$4 sm:$0xff]   ;;  %v7233_v62 = vld [vmem:[%s11237_s2 + $0x44] ss:$8 sps:$4 sm:$0xff]  }
 0x5b0   :  { %6533 = vmatprep.subr.bf16.mxu0 %v11233_v7  ;;  %6460 = vmatpush3.bf16.msra.mxu1 %v7278_v16  ;;  %v7280_v16 = vld [vmem:[%s11094_s12 + $0x30] sm:$0xff]  }
 0x5b1   :  { %6461 = vmatprep.subr.bf16.mxu1 %v11233_v7 }
 0x5b3   :  { %6534 = vmatpush3.bf16.msra.mxu0 %v7264_v15  ;;  %v7273_v15 = vld [vmem:[%s11093_s13 + $0x30] sm:$0xff]  }
 0x5b4   :  { %6535 = vmatprep.subr.bf16.mxu0 %v11233_v7 }
 0x5b6   :  { %2200 = vmatmul.mubr.bf16.gmra.mrb[176].mxu0 %v7229_v38  ;;  %v7275_v38 = vld [vmem:[%s11093_s13 + $0x38] sm:$0xff]  }
 0x5b7   :  { %5639 = vmatprep.mubr.msk.bf16.mxu0 %vm296_vm0, %v7230_v56  ;;  %6536 = vmatpush3.bf16.msra.mxu0 %v7268_v22  ;;  %v7235_v56 = vld [vmem:[%s11237_s2 + $0x40] ss:$8 sps:$4 sm:$0xff]   ;;  %v7236_v22 = vld [vmem:[%s11237_s2 + $0x54] ss:$8 sps:$4 sm:$0xff]  }
 0x5b8   :  { %6537 = vmatprep.subr.bf16.mxu0 %v11233_v7 }
 0x5bb   :  { %6538 = vmatpush3.bf16.msra.mxu0 %v7269_v28  ;;  %v7238_v28 = vld [vmem:[%s11237_s2 + $0x50] ss:$8 sps:$4 sm:$0xff]  }
 0x5bc   :  { %6539 = vmatprep.subr.bf16.mxu0 %v11233_v7 }
 0x5be   :  { %2208 = vmatmul.mubr.bf16.gmra.mrb[180].mxu0 %v7232_v23  ;;  %v7239_v23 = vld [vmem:[%s11237_s2 + $0x64] ss:$8 sps:$4 sm:$0xff]  }
 0x5bf   :  { %5640 = vmatprep.mubr.msk.bf16.mxu0 %vm296_vm0, %v7233_v62  ;;  %6540 = vmatpush3.bf16.msra.mxu0 %v7273_v15  ;;  %v7279_v62 = vld [vmem:[%s11094_s12 + $0x28] sm:$0xff]  }
 0x5c0   :  { %6541 = vmatprep.subr.bf16.mxu0 %v11233_v7  ;;  %6462 = vmatpush3.bf16.msra.mxu1 %v7279_v62  ;;  %v7241_v15 = vld [vmem:[%s11237_s2 + $0x60] ss:$8 sps:$4 sm:$0xff]   ;;  %v7250_v62 = vld [vmem:[%s11237_s2 + $0x90] ss:$8 sps:$4 sm:$0xff]  }
 0x5c1   :  { %6463 = vmatprep.subr.bf16.mxu1 %v11233_v7 }
 0x5c3   :  { %6542 = vmatpush3.bf16.msra.mxu0 %v7275_v38  ;;  %v7242_v38 = vld [vmem:[%s11237_s2 + $0x74] ss:$8 sps:$4 sm:$0xff]  }
 0x5c4   :  { %6603 = vmatprep.subr.bf16.mxu0 %v11233_v7  ;;  %6464 = vmatpush3.bf16.msra.mxu1 %v7280_v16  ;;  %v9104_v16 = vld [vmem:[%s11237_s2 + $0xb0] ss:$8 sps:$4 sm:$0xff]  }
 0x5c5   :  { %6465 = vmatprep.subr.bf16.mxu1 %v11233_v7 }
 0x5c6   :  { %2216 = vmatmul.mubr.bf16.gmra.mrb[184].mxu0 %v7235_v56  ;;  %v7244_v56 = vld [vmem:[%s11237_s2 + $0x70] ss:$8 sps:$4 sm:$0xff]  }
 0x5c7   :  { %5641 = vmatprep.mubr.msk.bf16.mxu0 %vm296_vm0, %v7236_v22  ;;  %v7245_v22 = vld [vmem:[%s11237_s2 + $0x84] ss:$8 sps:$4 sm:$0xff]  }
 0x5ce   :  { %2224 = vmatmul.mubr.bf16.gmra.mrb[188].mxu0 %v7238_v28  ;;  %v7247_v28 = vld [vmem:[%s11237_s2 + $0x80] ss:$8 sps:$4 sm:$0xff]  }
 0x5cf   :  { %5642 = vmatprep.mubr.msk.bf16.mxu0 %vm296_vm0, %v7239_v23  ;;  %v7248_v23 = vld [vmem:[%s11237_s2 + $0x94] ss:$8 sps:$4 sm:$0xff]  }
 0x5d6   :  { %2232 = vmatmul.mubr.bf16.gmra.mrb[192].mxu0 %v7241_v15  ;;  %v7251_v15 = vld [vmem:[%s11237_s2 + $0xa4] ss:$8 sps:$4 sm:$0xff]  }
 0x5d7   :  { %5643 = vmatprep.mubr.msk.bf16.mxu0 %vm296_vm0, %v7242_v38  ;;  %v7281_v38 = vld [vmem:[%s11094_s12 + $0x38] sm:$0xff]  }
 0x5d8   :  { %6466 = vmatpush3.bf16.msra.mxu1 %v7281_v38  ;;  %v9135_v38 = vld [vmem:[%s11237_s2 + $0xe4] ss:$8 sps:$4 sm:$0xff]  }
 0x5d9   :  { %2835 = vmatprep.subr.bf16.mxu1 %v11149_v0 }
 0x5de   :  { %2240 = vmatmul.mubr.bf16.gmra.mrb[196].mxu0 %v7244_v56  ;;  %v7253_v56 = vld [vmem:[%s11237_s2 + $0xa0] ss:$8 sps:$4 sm:$0xff]  }
 0x5df   :  { %5644 = vmatprep.mubr.msk.bf16.mxu0 %vm296_vm0, %v7245_v22  ;;  %v7254_v22 = vld [vmem:[%s11237_s2 + $0xb4] ss:$8 sps:$4 sm:$0xff]  }
 0x5e6   :  { %2248 = vmatmul.mubr.bf16.gmra.mrb[200].mxu0 %v7247_v28  ;;  %v9109_v28 = vld [vmem:[%s11237_s2 + $0xc4] ss:$8 sps:$4 sm:$0xff]  }
 0x5e7   :  { %5645 = vmatprep.mubr.msk.bf16.mxu0 %vm296_vm0, %v7248_v23  ;;  %v9117_v23 = vld [vmem:[%s11237_s2 + $0xc0] ss:$8 sps:$4 sm:$0xff]  }
 0x5ee   :  { %2256 = vmatmul.mubr.bf16.gmra.mrb[204].mxu0 %v7250_v62  ;;  %v9122_v62 = vld [vmem:[%s11237_s2 + $0xd4] ss:$8 sps:$4 sm:$0xff]  }
 0x5ef   :  { %5646 = vmatprep.mubr.msk.bf16.mxu0 %vm296_vm0, %v7251_v15  ;;  %v9130_v15 = vld [vmem:[%s11237_s2 + $0xd0] ss:$8 sps:$4 sm:$0xff]  }
 0x5f6   :  { %2264 = vmatmul.mubr.bf16.gmra.mrb[208].mxu0 %v7253_v56  ;;  %v9143_v56 = vld [vmem:[%s11237_s2 + $0xe0] ss:$8 sps:$4 sm:$0xff]  }
 0x5f7   :  { %5647 = vmatprep.mubr.msk.bf16.mxu0 %vm296_vm0, %v7254_v22 }
 0x5fe   :  { %2272 = vmatmul.mubr.bf16.gmra.mrb[212].mxu0 %v9104_v16 }
 0x5ff   :  { %5648 = vmatprep.mubr.msk.bf16.mxu0 %vm296_vm0, %v9109_v28 }
 0x606   :  { %2280 = vmatmul.mubr.bf16.gmra.mrb[216].mxu0 %v9117_v23 }
 0x607   :  { %5649 = vmatprep.mubr.msk.bf16.mxu0 %vm296_vm0, %v9122_v62 }
 0x60e   :  { %2288 = vmatmul.mubr.bf16.gmra.mrb[220].mxu0 %v9130_v15 }
 0x60f   :  { %5650 = vmatprep.mubr.msk.bf16.mxu0 %vm296_vm0, %v9135_v38 }
 0x616   :  { %2296 = vmatmul.mubr.bf16.gmra.mrb[224].mxu0 %v9143_v56 }
 0x617   :  { %6543 = vmatprep.mubr.msk.bf16.mxu0 %vm7458_vm1, %v11233_v7 }
 0x61e   :  { %6544 = vmatmul.mubr.bf16.vlgmr.msra.gmra.mrb[228].mxu0 %v8681_v9 }
 0x61f   :  { %6547 = vmatprep.mubr.msk.bf16.mxu0 %vm7458_vm1, %v11233_v7 }
 0x626   :  { %6548 = vmatmul.mubr.bf16.gmra.mrb[232].mxu0 %v8701_v46 }
 0x627   :  { %6551 = vmatprep.mubr.msk.bf16.mxu0 %vm7458_vm1, %v11233_v7 }
 0x62e   :  { %6552 = vmatmul.mubr.bf16.gmra.mrb[236].mxu0 %v8721_v51 }
 0x62f   :  { %6555 = vmatprep.mubr.msk.bf16.mxu0 %vm7458_vm1, %v11233_v7 }
 0x636   :  { %6556 = vmatmul.mubr.bf16.gmra.mrb[240].mxu0 %v8741_v21 }
 0x637   :  { %6559 = vmatprep.mubr.msk.bf16.mxu0 %vm7458_vm1, %v11233_v7 }
 0x63e   :  { %6560 = vmatmul.mubr.bf16.gmra.mrb[244].mxu0 %v8761_v39 }
 0x63f   :  { %6563 = vmatprep.mubr.msk.bf16.mxu0 %vm7458_vm1, %v11233_v7 }
 0x646   :  { %6564 = vmatmul.mubr.bf16.gmra.mrb[248].mxu0 %v8781_v24 }
 0x647   :  { %6567 = vmatprep.mubr.msk.bf16.mxu0 %vm7458_vm1, %v11233_v7 }
 0x64e   :  { %6568 = vmatmul.mubr.bf16.gmra.mrb[252].mxu0 %v8801_v11 }
 0x64f   :  { %6571 = vmatprep.mubr.msk.bf16.mxu0 %vm7458_vm1, %v11233_v7 }
 0x656   :  { %6572 = vmatmul.mubr.bf16.gmra.mrb[0].mxu0 %v8821_v31 }
 0x657   :  { %6575 = vmatprep.mubr.msk.bf16.mxu0 %vm7458_vm1, %v11233_v7 }
 0x65e   :  { %6576 = vmatmul.mubr.bf16.gmra.mrb[4].mxu0 %v8841_v33 }
 0x65f   :  { %6579 = vmatprep.mubr.msk.bf16.mxu0 %vm7458_vm1, %v11233_v7 }
 0x666   :  { %6580 = vmatmul.mubr.bf16.gmra.mrb[8].mxu0 %v8861_v32 }
 0x667   :  { %6583 = vmatprep.mubr.msk.bf16.mxu0 %vm7458_vm1, %v11233_v7 }
 0x66e   :  { %6584 = vmatmul.mubr.bf16.gmra.mrb[12].mxu0 %v8881_v60 }
 0x66f   :  { %6587 = vmatprep.mubr.msk.bf16.mxu0 %vm7458_vm1, %v11233_v7 }
 0x676   :  { %6588 = vmatmul.mubr.bf16.gmra.mrb[16].mxu0 %v8904_v45 }
 0x677   :  { %6591 = vmatprep.mubr.msk.bf16.mxu0 %vm7458_vm1, %v11233_v7 }
 0x679   :  { %v2185_v9 = vpop.f32.mrb[168].mxu0 }
 0x67a   :  { %v2187_v46 = vpop.f32.mrb[169].mxu0 }
 0x67b   :  { %v2188_v51 = vpop.f32.mrb[170].mxu0 }
 0x67c   :  { %v2304_v21 = vpack.c.bf16 %v2188_v51, %v2185_v9  ;;  %v2190_v39 = vpop.f32.mrb[171].mxu0 }
 0x67e   :  { %6468 = vmatmul.mubr.bf16.vlgmr.msra.gmra.mrb[252].mxu1 %v2304_v21  ;;  %6592 = vmatmul.mubr.bf16.gmra.mrb[20].mxu0 %v8925_v8 }
 0x67f   :  { %6471 = vmatprep.mubr.msk.bf16.mxu1 %vm7458_vm1, %v11233_v7  ;;  %6595 = vmatprep.mubr.msk.bf16.mxu0 %vm7458_vm1, %v11233_v7 }
 0x681   :  { %v2193_v24 = vpop.f32.mrb[172].mxu0 }
 0x682   :  { %v2195_v31 = vpop.f32.mrb[173].mxu0 }
 0x683   :  { %v2196_v33 = vpop.f32.mrb[174].mxu0 }
 0x684   :  { %v2305_v11 = vpack.c.bf16 %v2196_v33, %v2193_v24  ;;  %v2198_v32 = vpop.f32.mrb[175].mxu0 }
 0x686   :  { %6472 = vmatmul.mubr.bf16.gmra.mrb[0].mxu1 %v2305_v11  ;;  %6596 = vmatmul.mubr.bf16.gmra.mrb[24].mxu0 %v8948_v25 }
 0x687   :  { %6475 = vmatprep.mubr.msk.bf16.mxu1 %vm7458_vm1, %v11233_v7  ;;  %6599 = vmatprep.mubr.msk.bf16.mxu0 %vm7458_vm1, %v11233_v7 }
 0x689   :  { %v2201_v60 = vpop.f32.mrb[176].mxu0 }
 0x68a   :  { %v2203_v8 = vpop.f32.mrb[177].mxu0 }
 0x68b   :  { %v2204_v45 = vpop.f32.mrb[178].mxu0 }
 0x68c   :  { %v2306_v22 = vpack.c.bf16 %v2204_v45, %v2201_v60  ;;  %v2206_v9 = vpop.f32.mrb[179].mxu0 }
 0x68e   :  { %6476 = vmatmul.mubr.bf16.gmra.mrb[4].mxu1 %v2306_v22  ;;  %6600 = vmatmul.mubr.bf16.gmra.mrb[28].mxu0 %v8964_v14 }
 0x68f   :  { %6479 = vmatprep.mubr.msk.bf16.mxu1 %vm7458_vm1, %v11233_v7  ;;  %6619 = vmatprep.mubr.msk.bf16.mxu0 %vm7458_vm1, %v11233_v7 }
 0x691   :  { %v2209_v25 = vpop.f32.mrb[180].mxu0 }
 0x692   :  { %v2211_v46 = vpop.f32.mrb[181].mxu0 }
 0x693   :  { %v2212_v51 = vpop.f32.mrb[182].mxu0 }
 0x694   :  { %v2307_v21 = vpack.c.bf16 %v2212_v51, %v2209_v25  ;;  %v2214_v39 = vpop.f32.mrb[183].mxu0 }
 0x696   :  { %6480 = vmatmul.mubr.bf16.gmra.mrb[8].mxu1 %v2307_v21 }
 0x697   :  { %6483 = vmatprep.mubr.msk.bf16.mxu1 %vm7458_vm1, %v11233_v7 }
 0x699   :  { %v2217_v24 = vpop.f32.mrb[184].mxu0 }
 0x69a   :  { %v2219_v31 = vpop.f32.mrb[185].mxu0 }
 0x69b   :  { %v2220_v33 = vpop.f32.mrb[186].mxu0 }
 0x69c   :  { %v2308_v11 = vpack.c.bf16 %v2220_v33, %v2217_v24  ;;  %v2222_v14 = vpop.f32.mrb[187].mxu0 }
 0x69e   :  { %6484 = vmatmul.mubr.bf16.gmra.mrb[12].mxu1 %v2308_v11 }
 0x69f   :  { %6487 = vmatprep.mubr.msk.bf16.mxu1 %vm7458_vm1, %v11233_v7 }
 0x6a1   :  { %v2225_v32 = vpop.f32.mrb[188].mxu0 }
 0x6a2   :  { %v2227_v60 = vpop.f32.mrb[189].mxu0 }
 0x6a3   :  { %v2228_v8 = vpop.f32.mrb[190].mxu0 }
 0x6a4   :  { %v2309_v45 = vpack.c.bf16 %v2228_v8, %v2225_v32  ;;  %v2230_v22 = vpop.f32.mrb[191].mxu0 }
 0x6a6   :  { %6488 = vmatmul.mubr.bf16.gmra.mrb[16].mxu1 %v2309_v45 }
 0x6a7   :  { %6491 = vmatprep.mubr.msk.bf16.mxu1 %vm7458_vm1, %v11233_v7 }
 0x6a9   :  { %v2233_v9 = vpop.f32.mrb[192].mxu0 }
 0x6aa   :  { %v2235_v25 = vpop.f32.mrb[193].mxu0 }
 0x6ab   :  { %v2236_v46 = vpop.f32.mrb[194].mxu0 }
 0x6ac   :  { %v2310_v51 = vpack.c.bf16 %v2236_v46, %v2233_v9  ;;  %v2238_v21 = vpop.f32.mrb[195].mxu0 }
 0x6ae   :  { %6492 = vmatmul.mubr.bf16.gmra.mrb[20].mxu1 %v2310_v51 }
 0x6af   :  { %6495 = vmatprep.mubr.msk.bf16.mxu1 %vm7458_vm1, %v11233_v7 }
 0x6b1   :  { %v2241_v39 = vpop.f32.mrb[196].mxu0 }
 0x6b2   :  { %v2243_v24 = vpop.f32.mrb[197].mxu0 }
 0x6b3   :  { %v2244_v31 = vpop.f32.mrb[198].mxu0 }
 0x6b4   :  { %v2311_v33 = vpack.c.bf16 %v2244_v31, %v2241_v39  ;;  %v2246_v11 = vpop.f32.mrb[199].mxu0 }
 0x6b6   :  { %6496 = vmatmul.mubr.bf16.gmra.mrb[24].mxu1 %v2311_v33 }
 0x6b7   :  { %6499 = vmatprep.mubr.msk.bf16.mxu1 %vm7458_vm1, %v11233_v7 }
 0x6b9   :  { %v2249_v14 = vpop.f32.mrb[200].mxu0 }
 0x6ba   :  { %v2251_v32 = vpop.f32.mrb[201].mxu0 }
 0x6bb   :  { %v2252_v60 = vpop.f32.mrb[202].mxu0 }
 0x6bc   :  { %v2312_v8 = vpack.c.bf16 %v2252_v60, %v2249_v14  ;;  %v2254_v45 = vpop.f32.mrb[203].mxu0 }
 0x6be   :  { %6500 = vmatmul.mubr.bf16.gmra.mrb[28].mxu1 %v2312_v8 }
 0x6bf   :  { %6503 = vmatprep.mubr.msk.bf16.mxu1 %vm7458_vm1, %v11233_v7 }
 0x6c1   :  { %v2257_v22 = vpop.f32.mrb[204].mxu0 }
 0x6c2   :  { %v2259_v9 = vpop.f32.mrb[205].mxu0 }
 0x6c3   :  { %v2260_v25 = vpop.f32.mrb[206].mxu0 }
 0x6c4   :  { %v2313_v46 = vpack.c.bf16 %v2260_v25, %v2257_v22  ;;  %v2262_v51 = vpop.f32.mrb[207].mxu0 }
 0x6c6   :  { %6504 = vmatmul.mubr.bf16.gmra.mrb[32].mxu1 %v2313_v46 }
 0x6c7   :  { %6507 = vmatprep.mubr.msk.bf16.mxu1 %vm7458_vm1, %v11233_v7 }
 0x6c9   :  { %v2265_v21 = vpop.f32.mrb[208].mxu0 }
 0x6ca   :  { %v2267_v39 = vpop.f32.mrb[209].mxu0 }
 0x6cb   :  { %v2268_v24 = vpop.f32.mrb[210].mxu0 }
 0x6cc   :  { %v2314_v31 = vpack.c.bf16 %v2268_v24, %v2265_v21  ;;  %v2270_v33 = vpop.f32.mrb[211].mxu0 }
 0x6ce   :  { %6508 = vmatmul.mubr.bf16.gmra.mrb[36].mxu1 %v2314_v31 }
 0x6cf   :  { %6511 = vmatprep.mubr.msk.bf16.mxu1 %vm7458_vm1, %v11233_v7 }
 0x6d1   :  { %v2273_v11 = vpop.f32.mrb[212].mxu0 }
 0x6d2   :  { %v2275_v14 = vpop.f32.mrb[213].mxu0 }
 0x6d3   :  { %v2276_v32 = vpop.f32.mrb[214].mxu0 }
 0x6d4   :  { %v2315_v60 = vpack.c.bf16 %v2276_v32, %v2273_v11  ;;  %v2278_v8 = vpop.f32.mrb[215].mxu0 }
 0x6d5   :  { %v7410_v8 = vld [vmem:[%s11237_s2 + $0x4] ss:$8 sps:$4 sm:$0xff]  }
 0x6d6   :  { %6512 = vmatmul.mubr.bf16.gmra.mrb[40].mxu1 %v2315_v60 }
 0x6d7   :  { %6515 = vmatprep.mubr.msk.bf16.mxu1 %vm7458_vm1, %v11233_v7 }
 0x6d9   :  { %v2281_v45 = vpop.f32.mrb[216].mxu0 }
 0x6da   :  { %v2283_v22 = vpop.f32.mrb[217].mxu0 }
 0x6db   :  { %v2284_v9 = vpop.f32.mrb[218].mxu0 }
 0x6dc   :  { %v2316_v25 = vpack.c.bf16 %v2284_v9, %v2281_v45  ;;  %v2286_v46 = vpop.f32.mrb[219].mxu0 }
 0x6de   :  { %6516 = vmatmul.mubr.bf16.gmra.mrb[44].mxu1 %v2316_v25 }
 0x6df   :  { %6519 = vmatprep.mubr.msk.bf16.mxu1 %vm7458_vm1, %v11233_v7 }
 0x6e1   :  { %v2289_v51 = vpop.f32.mrb[220].mxu0 }
 0x6e2   :  { %v2291_v21 = vpop.f32.mrb[221].mxu0 }
 0x6e3   :  { %v2292_v39 = vpop.f32.mrb[222].mxu0 }
 0x6e4   :  { %v2317_v24 = vpack.c.bf16 %v2292_v39, %v2289_v51  ;;  %v2294_v31 = vpop.f32.mrb[223].mxu0 }
 0x6e6   :  { %6520 = vmatmul.mubr.bf16.gmra.mrb[48].mxu1 %v2317_v24 }
 0x6e7   :  { %6523 = vmatprep.mubr.msk.bf16.mxu1 %vm7458_vm1, %v11233_v7 }
 0x6e9   :  { %v2297_v33 = vpop.f32.mrb[224].mxu0 }
 0x6ea   :  { %v2299_v11 = vpop.f32.mrb[225].mxu0 }
 0x6eb   :  { %v2300_v14 = vpop.f32.mrb[226].mxu0 }
 0x6ec   :  { %v2318_v32 = vpack.c.bf16 %v2300_v14, %v2297_v33  ;;  %v2302_v60 = vpop.f32.mrb[227].mxu0 }
 0x6ee   :  { %6524 = vmatmul.mubr.bf16.gmra.mrb[52].mxu1 %v2318_v32 }
 0x6ef   :  { %5668 = vmatprep.mubr.msk.bf16.mxu1 %vm296_vm0, %v7410_v8 }
 0x6f1   :  { %v2634_v45 = vpop.f32.mrb[228].mxu0 }
 0x6f2   :  { %v6545_v22 = vpop.f32.mrb[229].mxu0 }
 0x6f3   :  { %v2637_v9 = vpop.f32.mrb[230].mxu0 }
 0x6f4   :  { %v6546_v25 = vpop.f32.mrb[231].mxu0 }
 0x6f9   :  { %v2642_v46 = vpop.f32.mrb[232].mxu0 }
 0x6fa   :  { %v6549_v51 = vpop.f32.mrb[233].mxu0 }
 0x6fb   :  { %v9225_v21 = vpop.f32.mrb[234].mxu0 }
 0x6fc   :  { %v6550_v39 = vpop.f32.mrb[235].mxu0 }
 0x701   :  { %v9227_v24 = vpop.f32.mrb[236].mxu0 }
 0x702   :  { %v6553_v31 = vpop.f32.mrb[237].mxu0 }
 0x703   :  { %v9229_v33 = vpop.f32.mrb[238].mxu0 }
 0x704   :  { %v6554_v11 = vpop.f32.mrb[239].mxu0 }
 0x709   :  { %v9231_v14 = vpop.f32.mrb[240].mxu0 }
 0x70a   :  { %v6557_v32 = vpop.f32.mrb[241].mxu0 }
 0x70b   :  { %v9233_v60 = vpop.f32.mrb[242].mxu0 }
 0x70c   :  { %v6558_v8 = vpop.f32.mrb[243].mxu0 }
 0x711   :  { %v9235_v22 = vpop.f32.mrb[244].mxu0 }
 0x712   :  { %v6561_v25 = vpop.f32.mrb[245].mxu0 }
 0x713   :  { %v9237_v10 = vpop.f32.mrb[246].mxu0 }
 0x714   :  { %v6562_v51 = vpop.f32.mrb[247].mxu0 }
 0x719   :  { %v9239_v52 = vpop.f32.mrb[248].mxu0 }
 0x71a   :  { %v6565_v39 = vpop.f32.mrb[249].mxu0 }
 0x71b   :  { %v9241_v54 = vpop.f32.mrb[250].mxu0 }
 0x71c   :  { %v6566_v31 = vpop.f32.mrb[251].mxu0 }
 0x721   :  { %v9243_v27 = vpop.f32.mrb[252].mxu0 }
 0x722   :  { %v6569_v11 = vpop.f32.mrb[253].mxu0 }
 0x723   :  { %v9245_v40 = vpop.f32.mrb[254].mxu0 }
 0x724   :  { %v6570_v32 = vpop.f32.mrb[255].mxu0 }
 0x729   :  { %v9247_v59 = vpop.f32.mrb[0].mxu0 }
 0x72a   :  { %v6573_v8 = vpop.f32.mrb[1].mxu0 }
 0x72b   :  { %v9249_v30 = vpop.f32.mrb[2].mxu0 }
 0x72c   :  { %v6574_v25 = vpop.f32.mrb[3].mxu0 }
 0x731   :  { %v9251_v41 = vpop.f32.mrb[4].mxu0 }
 0x732   :  { %v6577_v51 = vpop.f32.mrb[5].mxu0 }
 0x733   :  { %v9253_v63 = vpop.f32.mrb[6].mxu0 }
 0x734   :  { %v6578_v39 = vpop.f32.mrb[7].mxu0 }
 0x735   :  { %v9270_v39 = vld [vmem:[%s11095_s14] ss:$0 sm:$0xff] }
 0x739   :  { %v9255_v0 = vpop.f32.mrb[8].mxu0 }
 0x73a   :  { %v6581_v31 = vpop.f32.mrb[9].mxu0 }
 0x73b   :  { %v9257_v43 = vpop.f32.mrb[10].mxu0 }
 0x73c   :  { %v6582_v11 = vpop.f32.mrb[11].mxu0 }
 0x741   :  { %v9259_v44 = vpop.f32.mrb[12].mxu0 }
 0x742   :  { %v6585_v32 = vpop.f32.mrb[13].mxu0 }
 0x743   :  { %v9261_v6 = vpop.f32.mrb[14].mxu0 }
 0x744   :  { %v6586_v8 = vpop.f32.mrb[15].mxu0 }
 0x749   :  { %v9263_v13 = vpop.f32.mrb[16].mxu0 }
 0x74a   :  { %v6589_v25 = vpop.f32.mrb[17].mxu0 }
 0x74b   :  { %v9265_v26 = vpop.f32.mrb[18].mxu0 }
 0x74c   :  { %v6590_v51 = vpop.f32.mrb[19].mxu0 }
 0x751   :  { %v2433_v20 = vpop.f32.mrb[252].mxu1  ;;  %v9272_v31 = vpop.f32.mrb[20].mxu0 }
 0x752   :  { %v2635_v11 = vadd.f32 %v2634_v45, %v2433_v20  ;;  %v6469_v47 = vpop.f32.mrb[253].mxu1  ;;  %v6593_v32 = vpop.f32.mrb[21].mxu0 }
 0x753   :  { %v2436_v42 = vpop.f32.mrb[254].mxu1  ;;  %v9274_v35 = vpop.f32.mrb[22].mxu0 }
 0x754   :  { %v2760_v8 = vadd.f32 %v9270_v39, %v2635_v11  ;;  %v2638_v25 = vadd.f32 %v2637_v9, %v2436_v42  ;;  %v6470_v61 = vpop.f32.mrb[255].mxu1  ;;  %v6594_v2 = vpop.f32.mrb[23].mxu0  ;;  %v11256_v9 = vmov 0  }
 0x756   :  { %v2761_v51 = vadd.f32 %v9270_v39, %v2638_v25  ;;  %v2790_v3 = vmax.f32 %v2760_v8, 0.0 }
 0x758   :  { %v2791_v57 = vmax.f32 %v2761_v51, 0.0 }
 0x759   :  { %v2441_v48 = vpop.f32.mrb[0].mxu1  ;;  %v9278_v53 = vpop.f32.mrb[24].mxu0 }
 0x75a   :  { %v2643_v29 = vadd.f32 %v2642_v46, %v2441_v48  ;;  %v6473_v18 = vpop.f32.mrb[1].mxu1  ;;  %v6597_v20 = vpop.f32.mrb[25].mxu0  ;;  %v9280_v47 = vpack.c.bf16 %v2791_v57, %v2790_v3 }
 0x75b   :  { %v2444_v45 = vpop.f32.mrb[2].mxu1  ;;  %v9282_v32 = vpop.f32.mrb[26].mxu0 }
 0x75c   :  { %v2762_v11 = vadd.f32 %v9270_v39, %v2643_v29  ;;  %v2646_v61 = vadd.f32 %v9225_v21, %v2444_v45  ;;  %v6474_v2 = vpop.f32.mrb[3].mxu1  ;;  %v6598_v42 = vpop.f32.mrb[27].mxu0  ;;  %2836 = vmatpush1.bf16.msra.mxu1 %v9280_v47 }
 0x75d   :  { %2837 = vmatprep.subr.bf16.mxu1 %v11256_v9 }
 0x75e   :  { %v2763_v8 = vadd.f32 %v9270_v39, %v2646_v61  ;;  %v2792_v48 = vmax.f32 %v2762_v11, 0.0 }
 0x760   :  { %v2793_v18 = vmax.f32 %v2763_v8, 0.0 }
 0x761   :  { %v2449_v46 = vpop.f32.mrb[4].mxu1  ;;  %v9289_v57 = vpop.f32.mrb[28].mxu0 }
 0x762   :  { %v2651_v3 = vadd.f32 %v9227_v24, %v2449_v46  ;;  %v6477_v25 = vpop.f32.mrb[5].mxu1  ;;  %v6601_v51 = vpop.f32.mrb[29].mxu0  ;;  %v9292_v29 = vpack.c.bf16 %v2793_v18, %v2792_v48 }
 0x763   :  { %v2452_v21 = vpop.f32.mrb[6].mxu1  ;;  %v9294_v20 = vpop.f32.mrb[30].mxu0 }
 0x764   :  { %v2764_v45 = vadd.f32 %v9270_v39, %v2651_v3  ;;  %v2654_v2 = vadd.f32 %v9229_v33, %v2452_v21  ;;  %v6478_v42 = vpop.f32.mrb[7].mxu1  ;;  %v6602_v61 = vpop.f32.mrb[31].mxu0  ;;  %2838 = vmatpush1.bf16.msra.mxu1 %v9292_v29 }
 0x765   :  { %2839 = vmatprep.subr.bf16.mxu1 %v11256_v9 }
 0x766   :  { %v2765_v11 = vadd.f32 %v9270_v39, %v2654_v2  ;;  %v2794_v24 = vmax.f32 %v2764_v45, 0.0 }
 0x768   :  { %v2795_v8 = vmax.f32 %v2765_v11, 0.0 }
 0x769   :  { %v2457_v46 = vpop.f32.mrb[8].mxu1 }
 0x76a   :  { %v2659_v48 = vadd.f32 %v9231_v14, %v2457_v46  ;;  %v6481_v18 = vpop.f32.mrb[9].mxu1  ;;  %v9302_v25 = vpack.c.bf16 %v2795_v8, %v2794_v24 }
 0x76b   :  { %v2460_v51 = vpop.f32.mrb[10].mxu1 }
 0x76c   :  { %v2766_v3 = vadd.f32 %v9270_v39, %v2659_v48  ;;  %v2662_v33 = vadd.f32 %v9233_v60, %v2460_v51  ;;  %v6482_v21 = vpop.f32.mrb[11].mxu1  ;;  %2840 = vmatpush1.bf16.msra.mxu1 %v9302_v25 }
 0x76d   :  { %2841 = vmatprep.subr.bf16.mxu1 %v11256_v9 }
 0x76e   :  { %v2767_v2 = vadd.f32 %v9270_v39, %v2662_v33  ;;  %v2796_v45 = vmax.f32 %v2766_v3, 0.0 }
 0x770   :  { %v2797_v42 = vmax.f32 %v2767_v2, 0.0 }
 0x771   :  { %v2465_v61 = vpop.f32.mrb[12].mxu1 }
 0x772   :  { %v2667_v14 = vadd.f32 %v9235_v22, %v2465_v61  ;;  %v6485_v11 = vpop.f32.mrb[13].mxu1  ;;  %v9310_v24 = vpack.c.bf16 %v2797_v42, %v2796_v45 }
 0x773   :  { %v2468_v8 = vpop.f32.mrb[14].mxu1 }
 0x774   :  { %v2768_v46 = vadd.f32 %v9270_v39, %v2667_v14  ;;  %v2670_v60 = vadd.f32 %v9237_v10, %v2468_v8  ;;  %v6486_v48 = vpop.f32.mrb[15].mxu1  ;;  %2842 = vmatpush1.bf16.msra.mxu1 %v9310_v24 }
 0x775   :  { %2843 = vmatprep.subr.bf16.mxu1 %v11256_v9 }
 0x776   :  { %v2769_v18 = vadd.f32 %v9270_v39, %v2670_v60  ;;  %v2798_v51 = vmax.f32 %v2768_v46, 0.0 }
 0x778   :  { %v2799_v3 = vmax.f32 %v2769_v18, 0.0 }
 0x779   :  { %v2473_v33 = vpop.f32.mrb[16].mxu1 }
 0x77a   :  { %v2675_v22 = vadd.f32 %v9239_v52, %v2473_v33  ;;  %v6489_v21 = vpop.f32.mrb[17].mxu1  ;;  %v9318_v2 = vpack.c.bf16 %v2799_v3, %v2798_v51 }
 0x77b   :  { %v2476_v45 = vpop.f32.mrb[18].mxu1 }
 0x77c   :  { %v2770_v42 = vadd.f32 %v9270_v39, %v2675_v22  ;;  %v2678_v10 = vadd.f32 %v9241_v54, %v2476_v45  ;;  %v6490_v61 = vpop.f32.mrb[19].mxu1  ;;  %2844 = vmatpush1.bf16.msra.mxu1 %v9318_v2 }
 0x77d   :  { %2845 = vmatprep.subr.bf16.mxu1 %v11256_v9 }
 0x77e   :  { %v2771_v14 = vadd.f32 %v9270_v39, %v2678_v10  ;;  %v2800_v11 = vmax.f32 %v2770_v42, 0.0 }
 0x780   :  { %v2801_v8 = vmax.f32 %v2771_v14, 0.0 }
 0x781   :  { %v2481_v46 = vpop.f32.mrb[20].mxu1 }
 0x782   :  { %v2683_v52 = vadd.f32 %v9243_v27, %v2481_v46  ;;  %v6493_v60 = vpop.f32.mrb[21].mxu1  ;;  %v9326_v48 = vpack.c.bf16 %v2801_v8, %v2800_v11 }
 0x783   :  { %v2484_v18 = vpop.f32.mrb[22].mxu1 }
 0x784   :  { %v2772_v51 = vadd.f32 %v9270_v39, %v2683_v52  ;;  %v2686_v54 = vadd.f32 %v9245_v40, %v2484_v18  ;;  %v6494_v3 = vpop.f32.mrb[23].mxu1  ;;  %2846 = vmatpush1.bf16.msra.mxu1 %v9326_v48 }
 0x785   :  { %2847 = vmatprep.subr.bf16.mxu1 %v11256_v9 }
 0x786   :  { %v2773_v33 = vadd.f32 %v9270_v39, %v2686_v54  ;;  %v2802_v22 = vmax.f32 %v2772_v51, 0.0 }
 0x788   :  { %v2803_v21 = vmax.f32 %v2773_v33, 0.0 }
 0x789   :  { %v2489_v45 = vpop.f32.mrb[24].mxu1 }
 0x78a   :  { %v2691_v27 = vadd.f32 %v9247_v59, %v2489_v45  ;;  %v6497_v42 = vpop.f32.mrb[25].mxu1  ;;  %v9334_v10 = vpack.c.bf16 %v2803_v21, %v2802_v22 }
 0x78b   :  { %v2492_v61 = vpop.f32.mrb[26].mxu1 }
 0x78c   :  { %v2774_v14 = vadd.f32 %v9270_v39, %v2691_v27  ;;  %v2694_v40 = vadd.f32 %v9249_v30, %v2492_v61  ;;  %v6498_v11 = vpop.f32.mrb[27].mxu1  ;;  %2848 = vmatpush1.bf16.msra.mxu1 %v9334_v10 }
 0x78d   :  { %2849 = vmatprep.subr.bf16.mxu1 %v11256_v9 }
 0x78e   :  { %v2775_v8 = vadd.f32 %v9270_v39, %v2694_v40  ;;  %v2804_v46 = vmax.f32 %v2774_v14, 0.0 }
 0x790   :  { %v2805_v52 = vmax.f32 %v2775_v8, 0.0 }
 0x791   :  { %v2497_v60 = vpop.f32.mrb[28].mxu1 }
 0x792   :  { %v2699_v59 = vadd.f32 %v9251_v41, %v2497_v60  ;;  %v6501_v18 = vpop.f32.mrb[29].mxu1  ;;  %v9342_v51 = vpack.c.bf16 %v2805_v52, %v2804_v46 }
 0x793   :  { %v2500_v54 = vpop.f32.mrb[30].mxu1 }
 0x794   :  { %v2776_v3 = vadd.f32 %v9270_v39, %v2699_v59  ;;  %v2702_v30 = vadd.f32 %v9253_v63, %v2500_v54  ;;  %v6502_v33 = vpop.f32.mrb[31].mxu1  ;;  %2850 = vmatpush1.bf16.msra.mxu1 %v9342_v51 }
 0x795   :  { %2851 = vmatprep.subr.bf16.mxu1 %v11256_v9 }
 0x796   :  { %v2777_v22 = vadd.f32 %v9270_v39, %v2702_v30  ;;  %v2806_v21 = vmax.f32 %v2776_v3, 0.0 }
 0x798   :  { %v2807_v45 = vmax.f32 %v2777_v22, 0.0 }
 0x799   :  { %v2505_v27 = vpop.f32.mrb[32].mxu1 }
 0x79a   :  { %v2707_v41 = vadd.f32 %v9255_v0, %v2505_v27  ;;  %v6505_v42 = vpop.f32.mrb[33].mxu1  ;;  %v9350_v61 = vpack.c.bf16 %v2807_v45, %v2806_v21 }
 0x79b   :  { %v2508_v14 = vpop.f32.mrb[34].mxu1 }
 0x79c   :  { %v2778_v40 = vadd.f32 %v9270_v39, %v2707_v41  ;;  %v2710_v63 = vadd.f32 %v9257_v43, %v2508_v14  ;;  %v6506_v11 = vpop.f32.mrb[35].mxu1  ;;  %2852 = vmatpush1.bf16.msra.mxu1 %v9350_v61 }
 0x79d   :  { %2853 = vmatprep.subr.bf16.mxu1 %v11256_v9 }
 0x79e   :  { %v2779_v8 = vadd.f32 %v9270_v39, %v2710_v63  ;;  %v2808_v46 = vmax.f32 %v2778_v40, 0.0 }
 0x7a0   :  { %v2809_v52 = vmax.f32 %v2779_v8, 0.0 }
 0x7a1   :  { %v2513_v60 = vpop.f32.mrb[36].mxu1 }
 0x7a2   :  { %v2715_v0 = vadd.f32 %v9259_v44, %v2513_v60  ;;  %v6509_v59 = vpop.f32.mrb[37].mxu1  ;;  %v9358_v18 = vpack.c.bf16 %v2809_v52, %v2808_v46 }
 0x7a3   :  { %v2516_v54 = vpop.f32.mrb[38].mxu1 }
 0x7a4   :  { %v2780_v3 = vadd.f32 %v9270_v39, %v2715_v0  ;;  %v2718_v43 = vadd.f32 %v9261_v6, %v2516_v54  ;;  %v6510_v30 = vpop.f32.mrb[39].mxu1  ;;  %2854 = vmatpush1.bf16.msra.mxu1 %v9358_v18 }
 0x7a5   :  { %2855 = vmatprep.subr.bf16.mxu1 %v11256_v9 }
 0x7a6   :  { %v2781_v33 = vadd.f32 %v9270_v39, %v2718_v43  ;;  %v2810_v22 = vmax.f32 %v2780_v3, 0.0 }
 0x7a8   :  { %v2811_v21 = vmax.f32 %v2781_v33, 0.0 }
 0x7a9   :  { %v2521_v45 = vpop.f32.mrb[40].mxu1 }
 0x7aa   :  { %v2723_v44 = vadd.f32 %v9263_v13, %v2521_v45  ;;  %v6513_v27 = vpop.f32.mrb[41].mxu1  ;;  %v9366_v41 = vpack.c.bf16 %v2811_v21, %v2810_v22  ;;  %v7285_v13 = vld [vmem:[%s11097_s15] sm:$0xff]  }
 0x7ab   :  { %v2524_v42 = vpop.f32.mrb[42].mxu1  ;;  %6604 = vmatpush3.bf16.msra.mxu0 %v7285_v13 }
 0x7ac   :  { %v2782_v14 = vadd.f32 %v9270_v39, %v2723_v44  ;;  %v2726_v6 = vadd.f32 %v9265_v26, %v2524_v42  ;;  %v6514_v40 = vpop.f32.mrb[43].mxu1  ;;  %2856 = vmatpush1.bf16.msra.mxu1 %v9366_v41  ;;  %6605 = vmatprep.subr.bf16.mxu0 %v11233_v7 }
 0x7ad   :  { %2857 = vmatprep.subr.bf16.mxu1 %v11256_v9 }
 0x7ae   :  { %v2783_v63 = vadd.f32 %v9270_v39, %v2726_v6  ;;  %v2812_v11 = vmax.f32 %v2782_v14, 0.0  ;;  %v7290_v6 = vld [vmem:[%s11097_s15 + $0x8] sm:$0xff]  }
 0x7af   :  { %6606 = vmatpush3.bf16.msra.mxu0 %v7290_v6  ;;  %v7289_v6 = vld [vmem:[%s11096_s16 + $0x30] sm:$0xff]  }
 0x7b0   :  { %v2813_v8 = vmax.f32 %v2783_v63, 0.0  ;;  %6607 = vmatprep.subr.bf16.mxu0 %v11233_v7 }
 0x7b1   :  { %v2529_v46 = vpop.f32.mrb[44].mxu1 }
 0x7b2   :  { %v2731_v52 = vadd.f32 %v9272_v31, %v2529_v46  ;;  %v6517_v60 = vpop.f32.mrb[45].mxu1  ;;  %v9377_v0 = vpack.c.bf16 %v2813_v8, %v2812_v11 }
 0x7b3   :  { %v2532_v26 = vpop.f32.mrb[46].mxu1 }
 0x7b4   :  { %v2784_v59 = vadd.f32 %v9270_v39, %v2731_v52  ;;  %v2734_v54 = vadd.f32 %v9274_v35, %v2532_v26  ;;  %v6518_v3 = vpop.f32.mrb[47].mxu1  ;;  %2858 = vmatpush1.bf16.msra.mxu1 %v9377_v0 }
 0x7b5   :  { %2859 = vmatprep.subr.bf16.mxu1 %v11256_v9  ;;  %v7282_v3 = vld [vmem:[%s11096_s16] sm:$0xff]  }
 0x7b6   :  { %v2785_v43 = vadd.f32 %v9270_v39, %v2734_v54  ;;  %v2814_v30 = vmax.f32 %v2784_v59, 0.0 }
 0x7b8   :  { %v2815_v31 = vmax.f32 %v2785_v43, 0.0  ;;  %v7412_v43 = vld [vmem:[%s11237_s2 + $0x14] ss:$8 sps:$4 sm:$0xff]  }
 0x7b9   :  { %v2537_v33 = vpop.f32.mrb[48].mxu1 }
 0x7ba   :  { %v2739_v22 = vadd.f32 %v9278_v53, %v2537_v33  ;;  %v6521_v21 = vpop.f32.mrb[49].mxu1  ;;  %v9386_v45 = vpack.c.bf16 %v2815_v31, %v2814_v30  ;;  %v7283_v30 = vld [vmem:[%s11096_s16 + $0x8] sm:$0xff]   ;;  %v7284_v31 = vld [vmem:[%s11096_s16 + $0x10] sm:$0xff]  }
 0x7bb   :  { %v2540_v44 = vpop.f32.mrb[50].mxu1  ;;  %v7413_v33 = vld [vmem:[%s11237_s2 + $0x10] ss:$8 sps:$4 sm:$0xff]  }
 0x7bc   :  { %v2786_v27 = vadd.f32 %v9270_v39, %v2739_v22  ;;  %v2742_v35 = vadd.f32 %v9282_v32, %v2540_v44  ;;  %v6522_v42 = vpop.f32.mrb[51].mxu1  ;;  %2860 = vmatpush1.bf16.msra.mxu1 %v9386_v45  ;;  %v7414_v22 = vld [vmem:[%s11237_s2 + $0x24] ss:$8 sps:$4 sm:$0xff]   ;;  %v7286_v21 = vld [vmem:[%s11096_s16 + $0x18] sm:$0xff]  }
 0x7bd   :  { %2861 = vmatprep.subr.bf16.mxu1 %v11256_v9  ;;  %v7287_v44 = vld [vmem:[%s11096_s16 + $0x20] sm:$0xff]   ;;  %v7416_v42 = vld [vmem:[%s11237_s2 + $0x34] ss:$8 sps:$4 sm:$0xff]  }
 0x7be   :  { %v2787_v14 = vadd.f32 %v9270_v39, %v2742_v35  ;;  %v2816_v53 = vmax.f32 %v2786_v27, 0.0  ;;  %v7415_v27 = vld [vmem:[%s11237_s2 + $0x20] ss:$8 sps:$4 sm:$0xff]   ;;  %v7293_v35 = vld [vmem:[%s11097_s15 + $0x18] sm:$0xff]  }
 0x7c0   :  { %v2817_v40 = vmax.f32 %v2787_v14, 0.0  ;;  %v7288_v14 = vld [vmem:[%s11096_s16 + $0x28] sm:$0xff]  }
 0x7c1   :  { %v2545_v63 = vpop.f32.mrb[52].mxu1 }
 0x7c2   :  { %v2747_v11 = vadd.f32 %v9289_v57, %v2545_v63  ;;  %v6525_v8 = vpop.f32.mrb[53].mxu1  ;;  %v9397_v13 = vpack.c.bf16 %v2817_v40, %v2816_v53  ;;  %v7417_v53 = vld [vmem:[%s11237_s2 + $0x30] ss:$8 sps:$4 sm:$0xff]   ;;  %v7418_v40 = vld [vmem:[%s11237_s2 + $0x44] ss:$8 sps:$4 sm:$0xff]  }
 0x7c3   :  { %v2548_v32 = vpop.f32.mrb[54].mxu1  ;;  %v7291_v63 = vld [vmem:[%s11096_s16 + $0x38] sm:$0xff]   ;;  %v7294_v8 = vld [vmem:[%s11097_s15 + $0x20] sm:$0xff]  }
 0x7c4   :  { %v2788_v46 = vadd.f32 %v9270_v39, %v2747_v11  ;;  %v2750_v52 = vadd.f32 %v9294_v20, %v2548_v32  ;;  %v6526_v60 = vpop.f32.mrb[55].mxu1  ;;  %2862 = vmatpush1.bf16.msra.mxu1 %v9397_v13  ;;  %v7411_v20 = vld [vmem:[%s11237_s2] ss:$8 sps:$4 sm:$0xff]   ;;  %v7420_v32 = vld [vmem:[%s11237_s2 + $0x54] ss:$8 sps:$4 sm:$0xff]  }
 0x7c5   :  { %2863 = vmatprep.subr.bf16.mxu1 %v11256_v9  ;;  %v7419_v11 = vld [vmem:[%s11237_s2 + $0x40] ss:$8 sps:$4 sm:$0xff]  }
 0x7c6   :  { %v2789_v26 = vadd.f32 %v9270_v39, %v2750_v52  ;;  %v2818_v59 = vmax.f32 %v2788_v46, 0.0  ;;  %v7292_v39 = vld [vmem:[%s11097_s15 + $0x10] sm:$0xff]   ;;  %v7422_v52 = vld [vmem:[%s11237_s2 + $0x64] ss:$8 sps:$4 sm:$0xff]  }
 0x7c7   :  { %6608 = vmatpush3.bf16.msra.mxu0 %v7292_v39  ;;  %v7421_v46 = vld [vmem:[%s11237_s2 + $0x50] ss:$8 sps:$4 sm:$0xff]   ;;  %v7295_v60 = vld [vmem:[%s11097_s15 + $0x28] sm:$0xff]  }
 0x7c8   :  { %v2819_v54 = vmax.f32 %v2789_v26, 0.0  ;;  %6609 = vmatprep.subr.bf16.mxu0 %v11233_v7  ;;  %v7423_v26 = vld [vmem:[%s11237_s2 + $0x60] ss:$8 sps:$4 sm:$0xff]  }
 0x7c9   :  { %v7427_v39 = vld [vmem:[%s11237_s2 + $0x80] ss:$8 sps:$4 sm:$0xff]  }
 0x7ca   :  { %v9405_v57 = vpack.c.bf16 %v2819_v54, %v2818_v59  ;;  %v7424_v59 = vld [vmem:[%s11237_s2 + $0x74] ss:$8 sps:$4 sm:$0xff]   ;;  %v7425_v54 = vld [vmem:[%s11237_s2 + $0x70] ss:$8 sps:$4 sm:$0xff]  }
 0x7cb   :  { %6610 = vmatpush3.bf16.msra.mxu0 %v7293_v35 }
 0x7cc   :  { %2864 = vmatpush1.bf16.msra.mxu1 %v9405_v57  ;;  %6611 = vmatprep.subr.bf16.mxu0 %v11233_v7 }
 0x7cd   :  { %6679 = vmatprep.subr.bf16.mxu1 %v11233_v7 }
 0x7cf   :  { %2868 = vmatmul.mubr.bf16.vlgmr.msra.gmra.mrb[56].mxu1 %v7411_v20  ;;  %6612 = vmatpush3.bf16.msra.mxu0 %v7294_v8  ;;  %v7426_v20 = vld [vmem:[%s11237_s2 + $0x84] ss:$8 sps:$4 sm:$0xff]  }
 0x7d0   :  { %5669 = vmatprep.mubr.msk.bf16.mxu1 %vm296_vm0, %v7412_v43  ;;  %6680 = vmatpush3.bf16.msra.mxu1 %v7282_v3  ;;  %v7296_v3 = vld [vmem:[%s11097_s15 + $0x30] sm:$0xff]  }
 0x7d1   :  { %6681 = vmatprep.subr.bf16.mxu1 %v11233_v7  ;;  %6613 = vmatprep.subr.bf16.mxu0 %v11233_v7  ;;  %v7428_v43 = vld [vmem:[%s11237_s2 + $0x94] ss:$8 sps:$4 sm:$0xff]  }
 0x7d3   :  { %6614 = vmatpush3.bf16.msra.mxu0 %v7295_v60 }
 0x7d4   :  { %6682 = vmatpush3.bf16.msra.mxu1 %v7283_v30  ;;  %6615 = vmatprep.subr.bf16.mxu0 %v11233_v7  ;;  %v7429_v30 = vld [vmem:[%s11237_s2 + $0x90] ss:$8 sps:$4 sm:$0xff]  }
 0x7d5   :  { %6683 = vmatprep.subr.bf16.mxu1 %v11233_v7 }
 0x7d7   :  { %2876 = vmatmul.mubr.bf16.gmra.mrb[60].mxu1 %v7413_v33  ;;  %6616 = vmatpush3.bf16.msra.mxu0 %v7296_v3  ;;  %v7430_v33 = vld [vmem:[%s11237_s2 + $0xa4] ss:$8 sps:$4 sm:$0xff]  }
 0x7d8   :  { %5670 = vmatprep.mubr.msk.bf16.mxu1 %vm296_vm0, %v7414_v22  ;;  %6684 = vmatpush3.bf16.msra.mxu1 %v7284_v31  ;;  %v7297_v31 = vld [vmem:[%s11097_s15 + $0x38] sm:$0xff]   ;;  %v7431_v22 = vld [vmem:[%s11237_s2 + $0xa0] ss:$8 sps:$4 sm:$0xff]  }
 0x7d9   :  { %6685 = vmatprep.subr.bf16.mxu1 %v11233_v7  ;;  %6617 = vmatprep.subr.bf16.mxu0 %v11233_v7 }
 0x7db   :  { %6618 = vmatpush3.bf16.msra.mxu0 %v7297_v31 }
 0x7dc   :  { %6686 = vmatpush3.bf16.msra.mxu1 %v7286_v21  ;;  %3789 = vmatprep.subr.bf16.mxu0 %v11256_v9  ;;  %v7432_v21 = vld [vmem:[%s11237_s2 + $0xb4] ss:$8 sps:$4 sm:$0xff]  }
 0x7dd   :  { %6687 = vmatprep.subr.bf16.mxu1 %v11233_v7 }
 0x7df   :  { %2884 = vmatmul.mubr.bf16.gmra.mrb[64].mxu1 %v7415_v27 }
 0x7e0   :  { %5671 = vmatprep.mubr.msk.bf16.mxu1 %vm296_vm0, %v7416_v42  ;;  %6688 = vmatpush3.bf16.msra.mxu1 %v7287_v44 }
 0x7e1   :  { %6689 = vmatprep.subr.bf16.mxu1 %v11233_v7 }
 0x7e4   :  { %6690 = vmatpush3.bf16.msra.mxu1 %v7288_v14 }
 0x7e5   :  { %6691 = vmatprep.subr.bf16.mxu1 %v11233_v7 }
 0x7e7   :  { %2892 = vmatmul.mubr.bf16.gmra.mrb[68].mxu1 %v7417_v53 }
 0x7e8   :  { %5672 = vmatprep.mubr.msk.bf16.mxu1 %vm296_vm0, %v7418_v40  ;;  %6692 = vmatpush3.bf16.msra.mxu1 %v7289_v6 }
 0x7e9   :  { %6693 = vmatprep.subr.bf16.mxu1 %v11233_v7 }
 0x7ec   :  { %6694 = vmatpush3.bf16.msra.mxu1 %v7291_v63 }
 0x7ed   :  { %6755 = vmatprep.subr.bf16.mxu1 %v11233_v7 }
 0x7ef   :  { %2900 = vmatmul.mubr.bf16.gmra.mrb[72].mxu1 %v7419_v11 }
 0x7f0   :  { %5673 = vmatprep.mubr.msk.bf16.mxu1 %vm296_vm0, %v7420_v32 }
 0x7f7   :  { %2908 = vmatmul.mubr.bf16.gmra.mrb[76].mxu1 %v7421_v46 }
 0x7f8   :  { %5674 = vmatprep.mubr.msk.bf16.mxu1 %vm296_vm0, %v7422_v52 }
 0x7ff   :  { %2916 = vmatmul.mubr.bf16.gmra.mrb[80].mxu1 %v7423_v26 }
 0x800   :  { %5675 = vmatprep.mubr.msk.bf16.mxu1 %vm296_vm0, %v7424_v59 }
 0x807   :  { %2924 = vmatmul.mubr.bf16.gmra.mrb[84].mxu1 %v7425_v54 }
 0x808   :  { %5676 = vmatprep.mubr.msk.bf16.mxu1 %vm296_vm0, %v7426_v20 }
 0x80f   :  { %2932 = vmatmul.mubr.bf16.gmra.mrb[88].mxu1 %v7427_v39 }
 0x810   :  { %5677 = vmatprep.mubr.msk.bf16.mxu1 %vm296_vm0, %v7428_v43 }
 0x817   :  { %2940 = vmatmul.mubr.bf16.gmra.mrb[92].mxu1 %v7429_v30 }
 0x818   :  { %5678 = vmatprep.mubr.msk.bf16.mxu1 %vm296_vm0, %v7430_v33 }
 0x81f   :  { %2948 = vmatmul.mubr.bf16.gmra.mrb[96].mxu1 %v7431_v22 }
 0x820   :  { %5679 = vmatprep.mubr.msk.bf16.mxu1 %vm296_vm0, %v7432_v21 }
 0x827   :  { %2956 = vmatmul.mubr.bf16.gmra.mrb[100].mxu1 %v9104_v16 }
 0x828   :  { %5680 = vmatprep.mubr.msk.bf16.mxu1 %vm296_vm0, %v9109_v28 }
 0x82f   :  { %2964 = vmatmul.mubr.bf16.gmra.mrb[104].mxu1 %v9117_v23 }
 0x830   :  { %5681 = vmatprep.mubr.msk.bf16.mxu1 %vm296_vm0, %v9122_v62 }
 0x837   :  { %2972 = vmatmul.mubr.bf16.gmra.mrb[108].mxu1 %v9130_v15 }
 0x838   :  { %5682 = vmatprep.mubr.msk.bf16.mxu1 %vm296_vm0, %v9135_v38 }
 0x83f   :  { %2980 = vmatmul.mubr.bf16.gmra.mrb[112].mxu1 %v9143_v56 }
 0x840   :  { %6695 = vmatprep.mubr.msk.bf16.mxu1 %vm7458_vm1, %v11233_v7 }
 0x847   :  { %6696 = vmatmul.mubr.bf16.vlgmr.msra.gmra.mrb[116].mxu1 %v9280_v47 }
 0x848   :  { %6699 = vmatprep.mubr.msk.bf16.mxu1 %vm7458_vm1, %v11233_v7 }
 0x84f   :  { %6700 = vmatmul.mubr.bf16.gmra.mrb[120].mxu1 %v9292_v29 }
 0x850   :  { %6703 = vmatprep.mubr.msk.bf16.mxu1 %vm7458_vm1, %v11233_v7 }
 0x857   :  { %6704 = vmatmul.mubr.bf16.gmra.mrb[124].mxu1 %v9302_v25 }
 0x858   :  { %6707 = vmatprep.mubr.msk.bf16.mxu1 %vm7458_vm1, %v11233_v7 }
 0x85f   :  { %6708 = vmatmul.mubr.bf16.gmra.mrb[128].mxu1 %v9310_v24 }
 0x860   :  { %6711 = vmatprep.mubr.msk.bf16.mxu1 %vm7458_vm1, %v11233_v7 }
 0x867   :  { %6712 = vmatmul.mubr.bf16.gmra.mrb[132].mxu1 %v9318_v2 }
 0x868   :  { %6715 = vmatprep.mubr.msk.bf16.mxu1 %vm7458_vm1, %v11233_v7 }
 0x86f   :  { %6716 = vmatmul.mubr.bf16.gmra.mrb[136].mxu1 %v9326_v48 }
 0x870   :  { %6719 = vmatprep.mubr.msk.bf16.mxu1 %vm7458_vm1, %v11233_v7 }
 0x877   :  { %6720 = vmatmul.mubr.bf16.gmra.mrb[140].mxu1 %v9334_v10 }
 0x878   :  { %6723 = vmatprep.mubr.msk.bf16.mxu1 %vm7458_vm1, %v11233_v7 }
 0x87f   :  { %6724 = vmatmul.mubr.bf16.gmra.mrb[144].mxu1 %v9342_v51 }
 0x880   :  { %6727 = vmatprep.mubr.msk.bf16.mxu1 %vm7458_vm1, %v11233_v7 }
 0x887   :  { %6728 = vmatmul.mubr.bf16.gmra.mrb[148].mxu1 %v9350_v61 }
 0x888   :  { %6731 = vmatprep.mubr.msk.bf16.mxu1 %vm7458_vm1, %v11233_v7 }
 0x88f   :  { %6732 = vmatmul.mubr.bf16.gmra.mrb[152].mxu1 %v9358_v18 }
 0x890   :  { %6735 = vmatprep.mubr.msk.bf16.mxu1 %vm7458_vm1, %v11233_v7 }
 0x897   :  { %6736 = vmatmul.mubr.bf16.gmra.mrb[156].mxu1 %v9366_v41 }
 0x898   :  { %6739 = vmatprep.mubr.msk.bf16.mxu1 %vm7458_vm1, %v11233_v7 }
 0x89f   :  { %6740 = vmatmul.mubr.bf16.gmra.mrb[160].mxu1 %v9377_v0 }
 0x8a0   :  { %6743 = vmatprep.mubr.msk.bf16.mxu1 %vm7458_vm1, %v11233_v7 }
 0x8a2   :  { %v2869_v16 = vpop.f32.mrb[56].mxu1 }
 0x8a3   :  { %v2871_v28 = vpop.f32.mrb[57].mxu1 }
 0x8a4   :  { %v2872_v23 = vpop.f32.mrb[58].mxu1 }
 0x8a5   :  { %v2988_v62 = vpack.c.bf16 %v2872_v23, %v2869_v16  ;;  %v2874_v15 = vpop.f32.mrb[59].mxu1 }
 0x8a7   :  { %6620 = vmatmul.mubr.bf16.vlgmr.msra.gmra.mrb[32].mxu0 %v2988_v62  ;;  %6744 = vmatmul.mubr.bf16.gmra.mrb[164].mxu1 %v9386_v45 }
 0x8a8   :  { %6623 = vmatprep.mubr.msk.bf16.mxu0 %vm7458_vm1, %v11233_v7  ;;  %6747 = vmatprep.mubr.msk.bf16.mxu1 %vm7458_vm1, %v11233_v7 }
 0x8aa   :  { %v2877_v38 = vpop.f32.mrb[60].mxu1 }
 0x8ab   :  { %v2879_v56 = vpop.f32.mrb[61].mxu1 }
 0x8ac   :  { %v2880_v47 = vpop.f32.mrb[62].mxu1 }
 0x8ad   :  { %v2989_v29 = vpack.c.bf16 %v2880_v47, %v2877_v38  ;;  %v2882_v25 = vpop.f32.mrb[63].mxu1 }
 0x8af   :  { %6624 = vmatmul.mubr.bf16.gmra.mrb[36].mxu0 %v2989_v29  ;;  %6748 = vmatmul.mubr.bf16.gmra.mrb[168].mxu1 %v9397_v13 }
 0x8b0   :  { %6627 = vmatprep.mubr.msk.bf16.mxu0 %vm7458_vm1, %v11233_v7  ;;  %6751 = vmatprep.mubr.msk.bf16.mxu1 %vm7458_vm1, %v11233_v7 }
 0x8b2   :  { %v2885_v24 = vpop.f32.mrb[64].mxu1 }
 0x8b3   :  { %v2887_v2 = vpop.f32.mrb[65].mxu1 }
 0x8b4   :  { %v2888_v48 = vpop.f32.mrb[66].mxu1 }
 0x8b5   :  { %v2990_v10 = vpack.c.bf16 %v2888_v48, %v2885_v24  ;;  %v2890_v51 = vpop.f32.mrb[67].mxu1 }
 0x8b7   :  { %6628 = vmatmul.mubr.bf16.gmra.mrb[40].mxu0 %v2990_v10  ;;  %6752 = vmatmul.mubr.bf16.gmra.mrb[172].mxu1 %v9405_v57 }
 0x8b8   :  { %6631 = vmatprep.mubr.msk.bf16.mxu0 %vm7458_vm1, %v11233_v7  ;;  %6771 = vmatprep.mubr.msk.bf16.mxu1 %vm7458_vm1, %v11233_v7 }
 0x8ba   :  { %v2893_v61 = vpop.f32.mrb[68].mxu1 }
 0x8bb   :  { %v2895_v18 = vpop.f32.mrb[69].mxu1 }
 0x8bc   :  { %v2896_v41 = vpop.f32.mrb[70].mxu1 }
 0x8bd   :  { %v2991_v0 = vpack.c.bf16 %v2896_v41, %v2893_v61  ;;  %v2898_v45 = vpop.f32.mrb[71].mxu1 }
 0x8bf   :  { %6632 = vmatmul.mubr.bf16.gmra.mrb[44].mxu0 %v2991_v0 }
 0x8c0   :  { %6635 = vmatprep.mubr.msk.bf16.mxu0 %vm7458_vm1, %v11233_v7 }
 0x8c2   :  { %v2901_v13 = vpop.f32.mrb[72].mxu1 }
 0x8c3   :  { %v2903_v44 = vpop.f32.mrb[73].mxu1 }
 0x8c4   :  { %v2904_v27 = vpop.f32.mrb[74].mxu1 }
 0x8c5   :  { %v2992_v35 = vpack.c.bf16 %v2904_v27, %v2901_v13  ;;  %v2906_v57 = vpop.f32.mrb[75].mxu1 }
 0x8c7   :  { %6636 = vmatmul.mubr.bf16.gmra.mrb[48].mxu0 %v2992_v35 }
 0x8c8   :  { %6639 = vmatprep.mubr.msk.bf16.mxu0 %vm7458_vm1, %v11233_v7 }
 0x8ca   :  { %v2909_v42 = vpop.f32.mrb[76].mxu1 }
 0x8cb   :  { %v2911_v14 = vpop.f32.mrb[77].mxu1 }
 0x8cc   :  { %v2912_v6 = vpop.f32.mrb[78].mxu1 }
 0x8cd   :  { %v2993_v53 = vpack.c.bf16 %v2912_v6, %v2909_v42  ;;  %v2914_v40 = vpop.f32.mrb[79].mxu1 }
 0x8cf   :  { %6640 = vmatmul.mubr.bf16.gmra.mrb[52].mxu0 %v2993_v53 }
 0x8d0   :  { %6643 = vmatprep.mubr.msk.bf16.mxu0 %vm7458_vm1, %v11233_v7 }
 0x8d2   :  { %v2917_v63 = vpop.f32.mrb[80].mxu1 }
 0x8d3   :  { %v2919_v11 = vpop.f32.mrb[81].mxu1 }
 0x8d4   :  { %v2920_v8 = vpop.f32.mrb[82].mxu1 }
 0x8d5   :  { %v2994_v32 = vpack.c.bf16 %v2920_v8, %v2917_v63  ;;  %v2922_v46 = vpop.f32.mrb[83].mxu1 }
 0x8d7   :  { %6644 = vmatmul.mubr.bf16.gmra.mrb[56].mxu0 %v2994_v32 }
 0x8d8   :  { %6647 = vmatprep.mubr.msk.bf16.mxu0 %vm7458_vm1, %v11233_v7 }
 0x8da   :  { %v2925_v52 = vpop.f32.mrb[84].mxu1 }
 0x8db   :  { %v2927_v60 = vpop.f32.mrb[85].mxu1 }
 0x8dc   :  { %v2928_v26 = vpop.f32.mrb[86].mxu1 }
 0x8dd   :  { %v2995_v59 = vpack.c.bf16 %v2928_v26, %v2925_v52  ;;  %v2930_v54 = vpop.f32.mrb[87].mxu1 }
 0x8df   :  { %6648 = vmatmul.mubr.bf16.gmra.mrb[60].mxu0 %v2995_v59 }
 0x8e0   :  { %6651 = vmatprep.mubr.msk.bf16.mxu0 %vm7458_vm1, %v11233_v7 }
 0x8e2   :  { %v2933_v3 = vpop.f32.mrb[88].mxu1 }
 0x8e3   :  { %v2935_v20 = vpop.f32.mrb[89].mxu1 }
 0x8e4   :  { %v2936_v39 = vpop.f32.mrb[90].mxu1 }
 0x8e5   :  { %v2996_v43 = vpack.c.bf16 %v2936_v39, %v2933_v3  ;;  %v2938_v30 = vpop.f32.mrb[91].mxu1 }
 0x8e7   :  { %6652 = vmatmul.mubr.bf16.gmra.mrb[64].mxu0 %v2996_v43 }
 0x8e8   :  { %6655 = vmatprep.mubr.msk.bf16.mxu0 %vm7458_vm1, %v11233_v7 }
 0x8ea   :  { %v2941_v31 = vpop.f32.mrb[92].mxu1 }
 0x8eb   :  { %v2943_v33 = vpop.f32.mrb[93].mxu1 }
 0x8ec   :  { %v2944_v22 = vpop.f32.mrb[94].mxu1 }
 0x8ed   :  { %v2997_v21 = vpack.c.bf16 %v2944_v22, %v2941_v31  ;;  %v2946_v16 = vpop.f32.mrb[95].mxu1 }
 0x8ef   :  { %6656 = vmatmul.mubr.bf16.gmra.mrb[68].mxu0 %v2997_v21 }
 0x8f0   :  { %6659 = vmatprep.mubr.msk.bf16.mxu0 %vm7458_vm1, %v11233_v7 }
 0x8f2   :  { %v2949_v28 = vpop.f32.mrb[96].mxu1 }
 0x8f3   :  { %v2951_v23 = vpop.f32.mrb[97].mxu1 }
 0x8f4   :  { %v2952_v62 = vpop.f32.mrb[98].mxu1 }
 0x8f5   :  { %v2998_v15 = vpack.c.bf16 %v2952_v62, %v2949_v28  ;;  %v2954_v38 = vpop.f32.mrb[99].mxu1 }
 0x8f7   :  { %6660 = vmatmul.mubr.bf16.gmra.mrb[72].mxu0 %v2998_v15 }
 0x8f8   :  { %6663 = vmatprep.mubr.msk.bf16.mxu0 %vm7458_vm1, %v11233_v7 }
 0x8fa   :  { %v2957_v56 = vpop.f32.mrb[100].mxu1 }
 0x8fb   :  { %v2959_v47 = vpop.f32.mrb[101].mxu1 }
 0x8fc   :  { %v2960_v29 = vpop.f32.mrb[102].mxu1 }
 0x8fd   :  { %v2999_v25 = vpack.c.bf16 %v2960_v29, %v2957_v56  ;;  %v2962_v24 = vpop.f32.mrb[103].mxu1 }
 0x8ff   :  { %6664 = vmatmul.mubr.bf16.gmra.mrb[76].mxu0 %v2999_v25 }
 0x900   :  { %6667 = vmatprep.mubr.msk.bf16.mxu0 %vm7458_vm1, %v11233_v7 }
 0x902   :  { %v2965_v2 = vpop.f32.mrb[104].mxu1 }
 0x903   :  { %v2967_v48 = vpop.f32.mrb[105].mxu1 }
 0x904   :  { %v2968_v10 = vpop.f32.mrb[106].mxu1 }
 0x905   :  { %v3000_v51 = vpack.c.bf16 %v2968_v10, %v2965_v2  ;;  %v2970_v61 = vpop.f32.mrb[107].mxu1 }
 0x907   :  { %6668 = vmatmul.mubr.bf16.gmra.mrb[80].mxu0 %v3000_v51 }
 0x908   :  { %6671 = vmatprep.mubr.msk.bf16.mxu0 %vm7458_vm1, %v11233_v7 }
 0x90a   :  { %v2973_v18 = vpop.f32.mrb[108].mxu1 }
 0x90b   :  { %v2975_v41 = vpop.f32.mrb[109].mxu1 }
 0x90c   :  { %v2976_v0 = vpop.f32.mrb[110].mxu1 }
 0x90d   :  { %v3001_v45 = vpack.c.bf16 %v2976_v0, %v2973_v18  ;;  %v2978_v13 = vpop.f32.mrb[111].mxu1 }
 0x90f   :  { %6672 = vmatmul.mubr.bf16.gmra.mrb[84].mxu0 %v3001_v45 }
 0x910   :  { %6675 = vmatprep.mubr.msk.bf16.mxu0 %vm7458_vm1, %v11233_v7 }
 0x912   :  { %v2981_v44 = vpop.f32.mrb[112].mxu1 }
 0x913   :  { %v2983_v27 = vpop.f32.mrb[113].mxu1 }
 0x914   :  { %v2984_v35 = vpop.f32.mrb[114].mxu1 }
 0x915   :  { %v3002_v57 = vpack.c.bf16 %v2984_v35, %v2981_v44  ;;  %v2986_v42 = vpop.f32.mrb[115].mxu1 }
 0x916   :  { %v9674_v42 = vld [vmem:[%s11098_s17] ss:$0 sm:$0xff] }
 0x917   :  { %6676 = vmatmul.mubr.bf16.gmra.mrb[88].mxu0 %v3002_v57 }
 0x91a   :  { %v3318_v14 = vpop.f32.mrb[116].mxu1 }
 0x91b   :  { %v6697_v6 = vpop.f32.mrb[117].mxu1 }
 0x91c   :  { %v3321_v53 = vpop.f32.mrb[118].mxu1 }
 0x91d   :  { %v6698_v40 = vpop.f32.mrb[119].mxu1 }
 0x922   :  { %v9627_v63 = vpop.f32.mrb[120].mxu1 }
 0x923   :  { %v6701_v11 = vpop.f32.mrb[121].mxu1 }
 0x924   :  { %v9629_v8 = vpop.f32.mrb[122].mxu1  ;;  %v7300_v11 = vld [vmem:[%s11099_s3 + $0x4] ss:$8 sps:$4 sm:$0xff]  }
 0x925   :  { %v6702_v32 = vpop.f32.mrb[123].mxu1  ;;  %5730 = vmatprep.mubr.msk.bf16.mxu0 %vm296_vm0, %v7300_v11 }
 0x92a   :  { %v9631_v46 = vpop.f32.mrb[124].mxu1 }
 0x92b   :  { %v6705_v52 = vpop.f32.mrb[125].mxu1 }
 0x92c   :  { %v9633_v60 = vpop.f32.mrb[126].mxu1 }
 0x92d   :  { %v6706_v26 = vpop.f32.mrb[127].mxu1 }
 0x932   :  { %v9635_v59 = vpop.f32.mrb[128].mxu1 }
 0x933   :  { %v6709_v54 = vpop.f32.mrb[129].mxu1 }
 0x934   :  { %v9637_v3 = vpop.f32.mrb[130].mxu1 }
 0x935   :  { %v6710_v20 = vpop.f32.mrb[131].mxu1 }
 0x93a   :  { %v9639_v39 = vpop.f32.mrb[132].mxu1 }
 0x93b   :  { %v6713_v43 = vpop.f32.mrb[133].mxu1 }
 0x93c   :  { %v9641_v30 = vpop.f32.mrb[134].mxu1 }
 0x93d   :  { %v6714_v31 = vpop.f32.mrb[135].mxu1 }
 0x942   :  { %v9643_v33 = vpop.f32.mrb[136].mxu1 }
 0x943   :  { %v6717_v22 = vpop.f32.mrb[137].mxu1 }
 0x944   :  { %v9645_v21 = vpop.f32.mrb[138].mxu1 }
 0x945   :  { %v6718_v16 = vpop.f32.mrb[139].mxu1 }
 0x94a   :  { %v9647_v28 = vpop.f32.mrb[140].mxu1 }
 0x94b   :  { %v6721_v23 = vpop.f32.mrb[141].mxu1 }
 0x94c   :  { %v9649_v62 = vpop.f32.mrb[142].mxu1 }
 0x94d   :  { %v6722_v15 = vpop.f32.mrb[143].mxu1 }
 0x952   :  { %v9651_v38 = vpop.f32.mrb[144].mxu1 }
 0x953   :  { %v6725_v56 = vpop.f32.mrb[145].mxu1 }
 0x954   :  { %v9653_v47 = vpop.f32.mrb[146].mxu1  ;;  %v11257_v56 = vmax.f32 %v8665_v37, 0.0 }
 0x955   :  { %v6726_v29 = vpop.f32.mrb[147].mxu1 }
 0x95a   :  { %v9655_v25 = vpop.f32.mrb[148].mxu1 }
 0x95b   :  { %v6729_v24 = vpop.f32.mrb[149].mxu1 }
 0x95c   :  { %v9657_v2 = vpop.f32.mrb[150].mxu1 }
 0x95d   :  { %v6730_v48 = vpop.f32.mrb[151].mxu1 }
 0x962   :  { %v9659_v10 = vpop.f32.mrb[152].mxu1 }
 0x963   :  { %v6733_v51 = vpop.f32.mrb[153].mxu1 }
 0x964   :  { %v9661_v61 = vpop.f32.mrb[154].mxu1  ;;  %v11258_v51 = vmax.f32 %v8670_v4, 0.0 }
 0x965   :  { %v6734_v18 = vpop.f32.mrb[155].mxu1 }
 0x96a   :  { %v9663_v41 = vpop.f32.mrb[156].mxu1 }
 0x96b   :  { %v6737_v0 = vpop.f32.mrb[157].mxu1 }
 0x96c   :  { %v9665_v45 = vpop.f32.mrb[158].mxu1 }
 0x96d   :  { %v6738_v13 = vpop.f32.mrb[159].mxu1 }
 0x972   :  { %v9667_v44 = vpop.f32.mrb[160].mxu1 }
 0x973   :  { %v6741_v27 = vpop.f32.mrb[161].mxu1 }
 0x974   :  { %v9669_v35 = vpop.f32.mrb[162].mxu1 }
 0x975   :  { %v6742_v57 = vpop.f32.mrb[163].mxu1 }
 0x97a   :  { %v3117_v6 = vpop.f32.mrb[32].mxu0  ;;  %v9676_v40 = vpop.f32.mrb[164].mxu1 }
 0x97b   :  { %v3319_v32 = vadd.f32 %v3318_v14, %v3117_v6  ;;  %v6621_v52 = vpop.f32.mrb[33].mxu0  ;;  %v6745_v26 = vpop.f32.mrb[165].mxu1 }
 0x97c   :  { %v3120_v54 = vpop.f32.mrb[34].mxu0  ;;  %v9681_v20 = vpop.f32.mrb[166].mxu1 }
 0x97d   :  { %v3444_v43 = vadd.f32 %v9674_v42, %v3319_v32  ;;  %v3322_v31 = vadd.f32 %v3321_v53, %v3120_v54  ;;  %v6622_v22 = vpop.f32.mrb[35].mxu0  ;;  %v6746_v16 = vpop.f32.mrb[167].mxu1 }
 0x97f   :  { %v3474_v23 = vmax.f32 %v3444_v43, 0.0  ;;  %v3445_v15 = vadd.f32 %v9674_v42, %v3322_v31  ;;  %v11259_v43 = vmax.f32 %v8683_v12, 0.0 }
 0x981   :  { %v9688_v29 = vadd.f32 %v3474_v23, %v11257_v56  ;;  %v3475_v14 = vmax.f32 %v3445_v15, 0.0  ;;  %v11260_v23 = vmax.f32 %v8690_v19, 0.0 }
 0x982   :  { %v3125_v24 = vpop.f32.mrb[36].mxu0  ;;  %v9690_v48 = vpop.f32.mrb[168].mxu1 }
 0x983   :  { %v9694_v18 = vadd.f32 %v3475_v14, %v11258_v51  ;;  %v3327_v0 = vadd.f32 %v9627_v63, %v3125_v24  ;;  %v6625_v53 = vpop.f32.mrb[37].mxu0  ;;  %v6749_v13 = vpop.f32.mrb[169].mxu1  ;;  %v11197_v6 = vmax.f32 %v9688_v29, 0.0 }
 0x984   :  { %v3128_v27 = vpop.f32.mrb[38].mxu0  ;;  %v9697_v57 = vpop.f32.mrb[170].mxu1 }
 0x985   :  { %v11196_v37 = vmax.f32 %v9694_v18, 0.0  ;;  %v3446_v11 = vadd.f32 %v9674_v42, %v3327_v0  ;;  %v3330_v32 = vadd.f32 %v9629_v8, %v3128_v27  ;;  %v6626_v52 = vpop.f32.mrb[39].mxu0  ;;  %v6750_v26 = vpop.f32.mrb[171].mxu1 }
 0x986   :  { %v11261_v26 = vmax.f32 %v8703_v34, 0.0 }
 0x987   :  { %v3476_v4 = vmax.f32 %v3446_v11, 0.0  ;;  %v3447_v54 = vadd.f32 %v9674_v42, %v3330_v32  ;;  %v9708_v63 = vpack.c.bf16 %v11196_v37, %v11197_v6 }
 0x989   :  { %v9712_v31 = vadd.f32 %v3476_v4, %v11259_v43  ;;  %v3477_v22 = vmax.f32 %v3447_v54, 0.0  ;;  %3790 = vmatpush1.bf16.msra.mxu0 %v9708_v63 }
 0x98a   :  { %v3133_v16 = vpop.f32.mrb[40].mxu0  ;;  %v9715_v8 = vpop.f32.mrb[172].mxu1  ;;  %3791 = vmatprep.subr.bf16.mxu0 %v11256_v9 }
 0x98b   :  { %v9720_v15 = vadd.f32 %v3477_v22, %v11260_v23  ;;  %v3335_v56 = vadd.f32 %v9631_v46, %v3133_v16  ;;  %v6629_v14 = vpop.f32.mrb[41].mxu0  ;;  %v6753_v24 = vpop.f32.mrb[173].mxu1  ;;  %v11195_v0 = vmax.f32 %v9712_v31, 0.0 }
 0x98c   :  { %v3136_v51 = vpop.f32.mrb[42].mxu0  ;;  %v9723_v12 = vpop.f32.mrb[174].mxu1 }
 0x98d   :  { %v11194_v53 = vmax.f32 %v9720_v15, 0.0  ;;  %v3448_v13 = vadd.f32 %v9674_v42, %v3335_v56  ;;  %v3338_v27 = vadd.f32 %v9633_v60, %v3136_v51  ;;  %v6630_v11 = vpop.f32.mrb[43].mxu0  ;;  %v6754_v32 = vpop.f32.mrb[175].mxu1  ;;  %v11262_v60 = vmax.f32 %v8710_v58, 0.0 }
 0x98f   :  { %v3478_v19 = vmax.f32 %v3448_v13, 0.0  ;;  %v3449_v52 = vadd.f32 %v9674_v42, %v3338_v27  ;;  %v9734_v46 = vpack.c.bf16 %v11194_v53, %v11195_v0 }
 0x991   :  { %v9738_v4 = vadd.f32 %v3478_v19, %v11261_v26  ;;  %v3479_v54 = vmax.f32 %v3449_v52, 0.0  ;;  %3792 = vmatpush1.bf16.msra.mxu0 %v9734_v46 }
 0x992   :  { %v3141_v43 = vpop.f32.mrb[44].mxu0  ;;  %3793 = vmatprep.subr.bf16.mxu0 %v11256_v9 }
 0x993   :  { %v9744_v22 = vadd.f32 %v3479_v54, %v11262_v60  ;;  %v3343_v16 = vadd.f32 %v9635_v59, %v3141_v43  ;;  %v6633_v23 = vpop.f32.mrb[45].mxu0  ;;  %v11193_v14 = vmax.f32 %v9738_v4, 0.0  ;;  %v11263_v59 = vmax.f32 %v8723_v17, 0.0 }
 0x994   :  { %v3144_v56 = vpop.f32.mrb[46].mxu0 }
 0x995   :  { %v11186_v34 = vmax.f32 %v9744_v22, 0.0  ;;  %v3450_v24 = vadd.f32 %v9674_v42, %v3343_v16  ;;  %v3346_v51 = vadd.f32 %v9637_v3, %v3144_v56  ;;  %v6634_v13 = vpop.f32.mrb[47].mxu0  ;;  %v11264_v3 = vmax.f32 %v8730_v36, 0.0 }
 0x997   :  { %v3480_v27 = vmax.f32 %v3450_v24, 0.0  ;;  %v3451_v11 = vadd.f32 %v9674_v42, %v3346_v51  ;;  %v9756_v58 = vpack.c.bf16 %v11186_v34, %v11193_v14 }
 0x999   :  { %v9760_v32 = vadd.f32 %v3480_v27, %v11263_v59  ;;  %v3481_v19 = vmax.f32 %v3451_v11, 0.0  ;;  %3794 = vmatpush1.bf16.msra.mxu0 %v9756_v58 }
 0x99a   :  { %v3149_v52 = vpop.f32.mrb[48].mxu0  ;;  %3795 = vmatprep.subr.bf16.mxu0 %v11256_v9 }
 0x99b   :  { %v9766_v26 = vadd.f32 %v3481_v19, %v11264_v3  ;;  %v3351_v54 = vadd.f32 %v9639_v39, %v3149_v52  ;;  %v6637_v43 = vpop.f32.mrb[49].mxu0  ;;  %v11185_v16 = vmax.f32 %v9760_v32, 0.0  ;;  %v11265_v39 = vmax.f32 %v8743_v5, 0.0 }
 0x99c   :  { %v3152_v60 = vpop.f32.mrb[50].mxu0 }
 0x99d   :  { %v11180_v17 = vmax.f32 %v9766_v26, 0.0  ;;  %v3452_v23 = vadd.f32 %v9674_v42, %v3351_v54  ;;  %v3354_v56 = vadd.f32 %v9641_v30, %v3152_v60  ;;  %v6638_v24 = vpop.f32.mrb[51].mxu0  ;;  %v11266_v30 = vmax.f32 %v8750_v1, 0.0 }
 0x99f   :  { %v3482_v51 = vmax.f32 %v3452_v23, 0.0  ;;  %v3453_v13 = vadd.f32 %v9674_v42, %v3354_v56  ;;  %v9778_v36 = vpack.c.bf16 %v11180_v17, %v11185_v16 }
 0x9a1   :  { %v9782_v27 = vadd.f32 %v3482_v51, %v11265_v39  ;;  %v3483_v11 = vmax.f32 %v3453_v13, 0.0  ;;  %3796 = vmatpush1.bf16.msra.mxu0 %v9778_v36 }
 0x9a2   :  { %v3157_v59 = vpop.f32.mrb[52].mxu0  ;;  %3797 = vmatprep.subr.bf16.mxu0 %v11256_v9 }
 0x9a3   :  { %v9788_v19 = vadd.f32 %v3483_v11, %v11266_v30  ;;  %v3359_v52 = vadd.f32 %v9643_v33, %v3157_v59  ;;  %v6641_v3 = vpop.f32.mrb[53].mxu0  ;;  %v11177_v43 = vmax.f32 %v9782_v27, 0.0  ;;  %v11267_v33 = vmax.f32 %v8763_v50, 0.0 }
 0x9a4   :  { %v3160_v54 = vpop.f32.mrb[54].mxu0 }
 0x9a5   :  { %v11174_v5 = vmax.f32 %v9788_v19, 0.0  ;;  %v3454_v60 = vadd.f32 %v9674_v42, %v3359_v52  ;;  %v3362_v23 = vadd.f32 %v9645_v21, %v3160_v54  ;;  %v6642_v56 = vpop.f32.mrb[55].mxu0  ;;  %v11268_v21 = vmax.f32 %v8770_v55, 0.0 }
 0x9a7   :  { %v3484_v24 = vmax.f32 %v3454_v60, 0.0  ;;  %v3455_v51 = vadd.f32 %v9674_v42, %v3362_v23  ;;  %v9800_v1 = vpack.c.bf16 %v11174_v5, %v11177_v43 }
 0x9a9   :  { %v9804_v13 = vadd.f32 %v3484_v24, %v11267_v33  ;;  %v3485_v39 = vmax.f32 %v3455_v51, 0.0  ;;  %3798 = vmatpush1.bf16.msra.mxu0 %v9800_v1 }
 0x9aa   :  { %v3165_v11 = vpop.f32.mrb[56].mxu0  ;;  %3799 = vmatprep.subr.bf16.mxu0 %v11256_v9 }
 0x9ab   :  { %v9810_v59 = vadd.f32 %v3485_v39, %v11268_v21  ;;  %v3367_v30 = vadd.f32 %v9647_v28, %v3165_v11  ;;  %v6645_v52 = vpop.f32.mrb[57].mxu0  ;;  %v11171_v54 = vmax.f32 %v9804_v13, 0.0  ;;  %v11269_v28 = vmax.f32 %v8783_v49, 0.0 }
 0x9ac   :  { %v3168_v3 = vpop.f32.mrb[58].mxu0 }
 0x9ad   :  { %v11168_v50 = vmax.f32 %v9810_v59, 0.0  ;;  %v3456_v60 = vadd.f32 %v9674_v42, %v3367_v30  ;;  %v3370_v23 = vadd.f32 %v9649_v62, %v3168_v3  ;;  %v6646_v56 = vpop.f32.mrb[59].mxu0  ;;  %v11271_v62 = vld [vmem:[#allocation3_spill] sm:$0xff] }
 0x9ae   :  { %v11272_v21 = vmax.f32 %v11271_v62, 0.0 }
 0x9af   :  { %v3486_v24 = vmax.f32 %v3456_v60, 0.0  ;;  %v3457_v51 = vadd.f32 %v9674_v42, %v3370_v23  ;;  %v9822_v55 = vpack.c.bf16 %v11168_v50, %v11171_v54 }
 0x9b1   :  { %v9826_v33 = vadd.f32 %v3486_v24, %v11269_v28  ;;  %v3487_v39 = vmax.f32 %v3457_v51, 0.0  ;;  %3800 = vmatpush1.bf16.msra.mxu0 %v9822_v55 }
 0x9b2   :  { %v3173_v11 = vpop.f32.mrb[60].mxu0  ;;  %3801 = vmatprep.subr.bf16.mxu0 %v11256_v9 }
 0x9b3   :  { %11270 = vst [vmem:[#allocation20_spill] sm:$0xff] %v9826_v33  ;;  %v9832_v30 = vadd.f32 %v3487_v39, %v11272_v21  ;;  %v3375_v52 = vadd.f32 %v9651_v38, %v3173_v11  ;;  %v6649_v3 = vpop.f32.mrb[61].mxu0  ;;  %v11170_v23 = vmax.f32 %v9826_v33, 0.0  ;;  %v11274_v38 = vld [vmem:[#allocation4_spill] sm:$0xff] }
 0x9b4   :  { %v3176_v60 = vpop.f32.mrb[62].mxu0  ;;  %v11275_v11 = vmax.f32 %v11274_v38, 0.0 }
 0x9b5   :  { %11273 = vst [vmem:[#allocation3_spill] sm:$0xff] %v9832_v30  ;;  %v11169_v49 = vmax.f32 %v9832_v30, 0.0  ;;  %v3458_v56 = vadd.f32 %v9674_v42, %v3375_v52  ;;  %v3378_v24 = vadd.f32 %v9653_v47, %v3176_v60  ;;  %v6650_v51 = vpop.f32.mrb[63].mxu0  ;;  %v11277_v47 = vld [vmem:[#allocation5_spill] sm:$0xff] }
 0x9b6   :  { %v11278_v3 = vmax.f32 %v11277_v47, 0.0 }
 0x9b7   :  { %v3488_v28 = vmax.f32 %v3458_v56, 0.0  ;;  %v3459_v50 = vadd.f32 %v9674_v42, %v3378_v24  ;;  %v9844_v39 = vpack.c.bf16 %v11169_v49, %v11170_v23 }
 0x9b9   :  { %v9848_v62 = vadd.f32 %v3488_v28, %v11275_v11  ;;  %v3489_v21 = vmax.f32 %v3459_v50, 0.0  ;;  %3802 = vmatpush1.bf16.msra.mxu0 %v9844_v39 }
 0x9ba   :  { %v3181_v52 = vpop.f32.mrb[64].mxu0  ;;  %3803 = vmatprep.subr.bf16.mxu0 %v11256_v9 }
 0x9bb   :  { %11276 = vst [vmem:[#allocation4_spill] sm:$0xff] %v9848_v62  ;;  %v9854_v60 = vadd.f32 %v3489_v21, %v11278_v3  ;;  %v3383_v56 = vadd.f32 %v9655_v25, %v3181_v52  ;;  %v6653_v24 = vpop.f32.mrb[65].mxu0  ;;  %v11173_v49 = vmax.f32 %v9848_v62, 0.0  ;;  %v11280_v25 = vld [vmem:[#allocation6_spill] sm:$0xff] }
 0x9bc   :  { %v3184_v51 = vpop.f32.mrb[66].mxu0  ;;  %v11281_v52 = vmax.f32 %v11280_v25, 0.0 }
 0x9bd   :  { %11279 = vst [vmem:[#allocation5_spill] sm:$0xff] %v9854_v60  ;;  %v11172_v38 = vmax.f32 %v9854_v60, 0.0  ;;  %v3460_v28 = vadd.f32 %v9674_v42, %v3383_v56  ;;  %v3386_v50 = vadd.f32 %v9657_v2, %v3184_v51  ;;  %v6654_v11 = vpop.f32.mrb[67].mxu0  ;;  %v11283_v2 = vld [vmem:[#allocation7_spill] sm:$0xff] }
 0x9be   :  { %v11284_v24 = vmax.f32 %v11283_v2, 0.0 }
 0x9bf   :  { %v3490_v23 = vmax.f32 %v3460_v28, 0.0  ;;  %v3461_v54 = vadd.f32 %v9674_v42, %v3386_v50  ;;  %v9866_v21 = vpack.c.bf16 %v11172_v38, %v11173_v49 }
 0x9c1   :  { %v9870_v47 = vadd.f32 %v3490_v23, %v11281_v52  ;;  %v3491_v3 = vmax.f32 %v3461_v54, 0.0  ;;  %3804 = vmatpush1.bf16.msra.mxu0 %v9866_v21 }
 0x9c2   :  { %v3189_v56 = vpop.f32.mrb[68].mxu0  ;;  %3805 = vmatprep.subr.bf16.mxu0 %v11256_v9 }
 0x9c3   :  { %11282 = vst [vmem:[#allocation6_spill] sm:$0xff] %v9870_v47  ;;  %v9876_v51 = vadd.f32 %v3491_v3, %v11284_v24  ;;  %v3391_v28 = vadd.f32 %v9659_v10, %v3189_v56  ;;  %v6657_v50 = vpop.f32.mrb[69].mxu0  ;;  %v11176_v38 = vmax.f32 %v9870_v47, 0.0  ;;  %v11286_v10 = vld [vmem:[#allocation8_spill] sm:$0xff] }
 0x9c4   :  { %v3192_v11 = vpop.f32.mrb[70].mxu0  ;;  %v11287_v56 = vmax.f32 %v11286_v10, 0.0 }
 0x9c5   :  { %11285 = vst [vmem:[#allocation7_spill] sm:$0xff] %v9876_v51  ;;  %v11175_v25 = vmax.f32 %v9876_v51, 0.0  ;;  %v3462_v23 = vadd.f32 %v9674_v42, %v3391_v28  ;;  %v3394_v54 = vadd.f32 %v9661_v61, %v3192_v11  ;;  %v6658_v52 = vpop.f32.mrb[71].mxu0  ;;  %v11289_v61 = vld [vmem:[#allocation9_spill] sm:$0xff] }
 0x9c6   :  { %v11290_v50 = vmax.f32 %v11289_v61, 0.0 }
 0x9c7   :  { %v3492_v49 = vmax.f32 %v3462_v23, 0.0  ;;  %v3463_v5 = vadd.f32 %v9674_v42, %v3394_v54  ;;  %v9888_v3 = vpack.c.bf16 %v11175_v25, %v11176_v38 }
 0x9c9   :  { %v9892_v2 = vadd.f32 %v3492_v49, %v11287_v56  ;;  %v3493_v24 = vmax.f32 %v3463_v5, 0.0  ;;  %3806 = vmatpush1.bf16.msra.mxu0 %v9888_v3 }
 0x9ca   :  { %v3197_v28 = vpop.f32.mrb[72].mxu0  ;;  %3807 = vmatprep.subr.bf16.mxu0 %v11256_v9 }
 0x9cb   :  { %11288 = vst [vmem:[#allocation8_spill] sm:$0xff] %v9892_v2  ;;  %v9898_v11 = vadd.f32 %v3493_v24, %v11290_v50  ;;  %v3399_v23 = vadd.f32 %v9663_v41, %v3197_v28  ;;  %v6661_v54 = vpop.f32.mrb[73].mxu0  ;;  %v11179_v25 = vmax.f32 %v9892_v2, 0.0  ;;  %v11292_v41 = vld [vmem:[#allocation10_spill] sm:$0xff] }
 0x9cc   :  { %v3200_v52 = vpop.f32.mrb[74].mxu0  ;;  %v11293_v28 = vmax.f32 %v11292_v41, 0.0 }
 0x9cd   :  { %11291 = vst [vmem:[#allocation9_spill] sm:$0xff] %v9898_v11  ;;  %v11178_v10 = vmax.f32 %v9898_v11, 0.0  ;;  %v3464_v49 = vadd.f32 %v9674_v42, %v3399_v23  ;;  %v3402_v5 = vadd.f32 %v9665_v45, %v3200_v52  ;;  %v6662_v56 = vpop.f32.mrb[75].mxu0  ;;  %v11295_v45 = vld [vmem:[#allocation11_spill] sm:$0xff] }
 0x9ce   :  { %v11296_v54 = vmax.f32 %v11295_v45, 0.0 }
 0x9cf   :  { %v3494_v38 = vmax.f32 %v3464_v49, 0.0  ;;  %v3465_v43 = vadd.f32 %v9674_v42, %v3402_v5  ;;  %v9910_v24 = vpack.c.bf16 %v11178_v10, %v11179_v25 }
 0x9d1   :  { %v9914_v61 = vadd.f32 %v3494_v38, %v11293_v28  ;;  %v3495_v50 = vmax.f32 %v3465_v43, 0.0  ;;  %3808 = vmatpush1.bf16.msra.mxu0 %v9910_v24 }
 0x9d2   :  { %v3205_v23 = vpop.f32.mrb[76].mxu0  ;;  %3809 = vmatprep.subr.bf16.mxu0 %v11256_v9 }
 0x9d3   :  { %11294 = vst [vmem:[#allocation10_spill] sm:$0xff] %v9914_v61  ;;  %v9920_v52 = vadd.f32 %v3495_v50, %v11296_v54  ;;  %v3407_v49 = vadd.f32 %v9667_v44, %v3205_v23  ;;  %v6665_v5 = vpop.f32.mrb[77].mxu0  ;;  %v11182_v10 = vmax.f32 %v9914_v61, 0.0  ;;  %v11298_v44 = vld [vmem:[#allocation12_spill] sm:$0xff] }
 0x9d4   :  { %v3208_v56 = vpop.f32.mrb[78].mxu0  ;;  %v11299_v23 = vmax.f32 %v11298_v44, 0.0 }
 0x9d5   :  { %11297 = vst [vmem:[#allocation11_spill] sm:$0xff] %v9920_v52  ;;  %v11181_v41 = vmax.f32 %v9920_v52, 0.0  ;;  %v3466_v38 = vadd.f32 %v9674_v42, %v3407_v49  ;;  %v3410_v43 = vadd.f32 %v9669_v35, %v3208_v56  ;;  %v6666_v28 = vpop.f32.mrb[79].mxu0  ;;  %v11301_v35 = vld [vmem:[#allocation13_spill] sm:$0xff] }
 0x9d6   :  { %v11302_v5 = vmax.f32 %v11301_v35, 0.0 }
 0x9d7   :  { %v3496_v25 = vmax.f32 %v3466_v38, 0.0  ;;  %v3467_v17 = vadd.f32 %v9674_v42, %v3410_v43  ;;  %v9932_v50 = vpack.c.bf16 %v11181_v41, %v11182_v10  ;;  %v7340_v10 = vld [vmem:[%s11101_s18] sm:$0xff]  }
 0x9d8   :  { %6756 = vmatpush3.bf16.msra.mxu1 %v7340_v10 }
 0x9d9   :  { %v9936_v45 = vadd.f32 %v3496_v25, %v11299_v23  ;;  %v3497_v54 = vmax.f32 %v3467_v17, 0.0  ;;  %3810 = vmatpush1.bf16.msra.mxu0 %v9932_v50  ;;  %6757 = vmatprep.subr.bf16.mxu1 %v11233_v7 }
 0x9da   :  { %v3213_v49 = vpop.f32.mrb[80].mxu0  ;;  %3811 = vmatprep.subr.bf16.mxu0 %v11256_v9 }
 0x9db   :  { %11300 = vst [vmem:[#allocation12_spill] sm:$0xff] %v9936_v45  ;;  %v9942_v56 = vadd.f32 %v3497_v54, %v11302_v5  ;;  %v3415_v38 = vadd.f32 %v9676_v40, %v3213_v49  ;;  %v6669_v43 = vpop.f32.mrb[81].mxu0  ;;  %v11184_v28 = vmax.f32 %v9936_v45, 0.0  ;;  %v11304_v49 = vld [vmem:[#allocation14_spill] sm:$0xff] }
 0x9dc   :  { %v3216_v41 = vpop.f32.mrb[82].mxu0  ;;  %v11305_v5 = vmax.f32 %v11304_v49, 0.0  ;;  %v11307_v43 = vld [vmem:[#allocation15_spill] sm:$0xff] }
 0x9dd   :  { %11303 = vst [vmem:[#allocation13_spill] sm:$0xff] %v9942_v56  ;;  %v11183_v44 = vmax.f32 %v9942_v56, 0.0  ;;  %v3468_v25 = vadd.f32 %v9674_v42, %v3415_v38  ;;  %v3418_v17 = vadd.f32 %v9681_v20, %v3216_v41  ;;  %v6670_v23 = vpop.f32.mrb[83].mxu0 }
 0x9df   :  { %v3498_v35 = vmax.f32 %v3468_v25, 0.0  ;;  %v3469_v54 = vadd.f32 %v9674_v42, %v3418_v17  ;;  %v9957_v40 = vpack.c.bf16 %v11183_v44, %v11184_v28  ;;  %v11308_v25 = vmax.f32 %v11307_v43, 0.0 }
 0x9e1   :  { %v9961_v38 = vadd.f32 %v3498_v35, %v11305_v5  ;;  %v3499_v20 = vmax.f32 %v3469_v54, 0.0  ;;  %3812 = vmatpush1.bf16.msra.mxu0 %v9957_v40 }
 0x9e2   :  { %v3221_v41 = vpop.f32.mrb[84].mxu0  ;;  %3813 = vmatprep.subr.bf16.mxu0 %v11256_v9 }
 0x9e3   :  { %11306 = vst [vmem:[#allocation14_spill] sm:$0xff] %v9961_v38  ;;  %v9968_v17 = vadd.f32 %v3499_v20, %v11308_v25  ;;  %v3423_v23 = vadd.f32 %v9690_v48, %v3221_v41  ;;  %v6673_v44 = vpop.f32.mrb[85].mxu0  ;;  %v11188_v10 = vmax.f32 %v9961_v38, 0.0  ;;  %v11310_v48 = vld [vmem:[#allocation16_spill] sm:$0xff] }
 0x9e4   :  { %v3224_v49 = vpop.f32.mrb[86].mxu0  ;;  %v11311_v44 = vmax.f32 %v11310_v48, 0.0  ;;  %v7351_v48 = vld [vmem:[%s11101_s18 + $0x8] sm:$0xff]  }
 0x9e5   :  { %11309 = vst [vmem:[#allocation15_spill] sm:$0xff] %v9968_v17  ;;  %v11187_v35 = vmax.f32 %v9968_v17, 0.0  ;;  %v3470_v54 = vadd.f32 %v9674_v42, %v3423_v23  ;;  %v3426_v5 = vadd.f32 %v9697_v57, %v3224_v49  ;;  %v6674_v28 = vpop.f32.mrb[87].mxu0  ;;  %v11313_v57 = vld [vmem:[#allocation17_spill] sm:$0xff]  ;;  %6758 = vmatpush3.bf16.msra.mxu1 %v7351_v48 }
 0x9e6   :  { %v11314_v28 = vmax.f32 %v11313_v57, 0.0  ;;  %6759 = vmatprep.subr.bf16.mxu1 %v11233_v7 }
 0x9e7   :  { %v3500_v16 = vmax.f32 %v3470_v54, 0.0  ;;  %v3471_v34 = vadd.f32 %v9674_v42, %v3426_v5  ;;  %v9980_v20 = vpack.c.bf16 %v11187_v35, %v11188_v10 }
 0x9e9   :  { %v9984_v41 = vadd.f32 %v3500_v16, %v11311_v44  ;;  %v3501_v43 = vmax.f32 %v3471_v34, 0.0  ;;  %3814 = vmatpush1.bf16.msra.mxu0 %v9980_v20 }
 0x9ea   :  { %v3229_v25 = vpop.f32.mrb[88].mxu0  ;;  %3815 = vmatprep.subr.bf16.mxu0 %v11256_v9 }
 0x9eb   :  { %11312 = vst [vmem:[#allocation16_spill] sm:$0xff] %v9984_v41  ;;  %v9990_v23 = vadd.f32 %v3501_v43, %v11314_v28  ;;  %v3431_v49 = vadd.f32 %v9715_v8, %v3229_v25  ;;  %v6677_v54 = vpop.f32.mrb[89].mxu0  ;;  %v11192_v16 = vmax.f32 %v9984_v41, 0.0  ;;  %v11316_v25 = vld [vmem:[#allocation18_spill] sm:$0xff] }
 0x9ec   :  { %v3232_v5 = vpop.f32.mrb[90].mxu0  ;;  %v11317_v28 = vmax.f32 %v11316_v25, 0.0  ;;  %v7353_v25 = vld [vmem:[%s11101_s18 + $0x10] sm:$0xff]  }
 0x9ed   :  { %11315 = vst [vmem:[#allocation17_spill] sm:$0xff] %v9990_v23  ;;  %v11191_v34 = vmax.f32 %v9990_v23, 0.0  ;;  %v3472_v44 = vadd.f32 %v9674_v42, %v3431_v49  ;;  %v3434_v35 = vadd.f32 %v9723_v12, %v3232_v5  ;;  %v6678_v10 = vpop.f32.mrb[91].mxu0  ;;  %v11319_v12 = vld [vmem:[#allocation19_spill] sm:$0xff]  ;;  %6760 = vmatpush3.bf16.msra.mxu1 %v7353_v25 }
 0x9ee   :  { %v11320_v10 = vmax.f32 %v11319_v12, 0.0  ;;  %6761 = vmatprep.subr.bf16.mxu1 %v11233_v7  ;;  %v7306_v12 = vld [vmem:[%s11099_s3 + $0x24] ss:$8 sps:$4 sm:$0xff]  }
 0x9ef   :  { %v3502_v43 = vmax.f32 %v3472_v44, 0.0  ;;  %v3473_v57 = vadd.f32 %v9674_v42, %v3434_v35  ;;  %v10005_v8 = vpack.c.bf16 %v11191_v34, %v11192_v16  ;;  %v7298_v44 = vld [vmem:[%s11099_s3] ss:$8 sps:$4 sm:$0xff]  }
 0x9f0   :  { %v7345_v25 = vld [vmem:[%s11100_s19 + $0x20] sm:$0xff]  }
 0x9f1   :  { %v10010_v54 = vadd.f32 %v3502_v43, %v11317_v28  ;;  %v3503_v49 = vmax.f32 %v3473_v57, 0.0  ;;  %3816 = vmatpush1.bf16.msra.mxu0 %v10005_v8  ;;  %v7303_v43 = vld [vmem:[%s11099_s3 + $0x14] ss:$8 sps:$4 sm:$0xff]   ;;  %v7334_v57 = vld [vmem:[%s11100_s19] sm:$0xff]   ;;  %v7335_v28 = vld [vmem:[%s11100_s19 + $0x8] sm:$0xff]  }
 0x9f2   :  { %3817 = vmatprep.subr.bf16.mxu0 %v11256_v9 }
 0x9f3   :  { %11318 = vst [vmem:[#allocation18_spill] sm:$0xff] %v10010_v54  ;;  %v10016_v42 = vadd.f32 %v3503_v49, %v11320_v10  ;;  %v11190_v35 = vmax.f32 %v10010_v54, 0.0  ;;  %v7301_v49 = vld [vmem:[%s11099_s3 + $0x10] ss:$8 sps:$4 sm:$0xff]  }
 0x9f4   :  { %v7339_v10 = vld [vmem:[%s11100_s19 + $0x10] sm:$0xff]  }
 0x9f5   :  { %11321 = vst [vmem:[#allocation19_spill] sm:$0xff] %v10016_v42  ;;  %v11189_v5 = vmax.f32 %v10016_v42, 0.0 }
 0x9f7   :  { %v10024_v48 = vpack.c.bf16 %v11189_v5, %v11190_v35 }
 0x9f9   :  { %3818 = vmatpush1.bf16.msra.mxu0 %v10024_v48 }
 0x9fa   :  { %6831 = vmatprep.subr.bf16.mxu0 %v11233_v7 }
 0x9fc   :  { %3822 = vmatmul.mubr.bf16.vlgmr.msra.gmra.mrb[92].mxu0 %v7298_v44  ;;  %v7341_v44 = vld [vmem:[%s11100_s19 + $0x18] sm:$0xff]  }
 0x9fd   :  { %5731 = vmatprep.mubr.msk.bf16.mxu0 %vm296_vm0, %v7303_v43  ;;  %6832 = vmatpush3.bf16.msra.mxu0 %v7334_v57  ;;  %v7304_v43 = vld [vmem:[%s11099_s3 + $0x20] ss:$8 sps:$4 sm:$0xff]   ;;  %v7309_v57 = vld [vmem:[%s11099_s3 + $0x34] ss:$8 sps:$4 sm:$0xff]  }
 0x9fe   :  { %6833 = vmatprep.subr.bf16.mxu0 %v11233_v7 }
 0xa01   :  { %6834 = vmatpush3.bf16.msra.mxu0 %v7335_v28  ;;  %v7354_v28 = vld [vmem:[%s11101_s18 + $0x18] sm:$0xff]  }
 0xa02   :  { %6835 = vmatprep.subr.bf16.mxu0 %v11233_v7  ;;  %6762 = vmatpush3.bf16.msra.mxu1 %v7354_v28  ;;  %v7355_v28 = vld [vmem:[%s11101_s18 + $0x20] sm:$0xff]  }
 0xa03   :  { %6763 = vmatprep.subr.bf16.mxu1 %v11233_v7 }
 0xa04   :  { %3830 = vmatmul.mubr.bf16.gmra.mrb[96].mxu0 %v7301_v49  ;;  %v7346_v49 = vld [vmem:[%s11100_s19 + $0x28] sm:$0xff]  }
 0xa05   :  { %5732 = vmatprep.mubr.msk.bf16.mxu0 %vm296_vm0, %v7306_v12  ;;  %6836 = vmatpush3.bf16.msra.mxu0 %v7339_v10  ;;  %v7307_v12 = vld [vmem:[%s11099_s3 + $0x30] ss:$8 sps:$4 sm:$0xff]   ;;  %v7312_v10 = vld [vmem:[%s11099_s3 + $0x44] ss:$8 sps:$4 sm:$0xff]  }
 0xa06   :  { %6837 = vmatprep.subr.bf16.mxu0 %v11233_v7  ;;  %6764 = vmatpush3.bf16.msra.mxu1 %v7355_v28  ;;  %v7357_v28 = vld [vmem:[%s11101_s18 + $0x30] sm:$0xff]  }
 0xa07   :  { %6765 = vmatprep.subr.bf16.mxu1 %v11233_v7 }
 0xa09   :  { %6838 = vmatpush3.bf16.msra.mxu0 %v7341_v44  ;;  %v7350_v44 = vld [vmem:[%s11100_s19 + $0x30] sm:$0xff]  }
 0xa0a   :  { %6839 = vmatprep.subr.bf16.mxu0 %v11233_v7 }
 0xa0c   :  { %3838 = vmatmul.mubr.bf16.gmra.mrb[100].mxu0 %v7304_v43  ;;  %v7352_v43 = vld [vmem:[%s11100_s19 + $0x38] sm:$0xff]  }
 0xa0d   :  { %5733 = vmatprep.mubr.msk.bf16.mxu0 %vm296_vm0, %v7309_v57  ;;  %6840 = vmatpush3.bf16.msra.mxu0 %v7345_v25  ;;  %v7310_v57 = vld [vmem:[%s11099_s3 + $0x40] ss:$8 sps:$4 sm:$0xff]   ;;  %v7315_v25 = vld [vmem:[%s11099_s3 + $0x54] ss:$8 sps:$4 sm:$0xff]  }
 0xa0e   :  { %6841 = vmatprep.subr.bf16.mxu0 %v11233_v7 }
 0xa11   :  { %6842 = vmatpush3.bf16.msra.mxu0 %v7346_v49  ;;  %v7313_v49 = vld [vmem:[%s11099_s3 + $0x50] ss:$8 sps:$4 sm:$0xff]  }
 0xa12   :  { %6843 = vmatprep.subr.bf16.mxu0 %v11233_v7 }
 0xa14   :  { %3846 = vmatmul.mubr.bf16.gmra.mrb[104].mxu0 %v7307_v12  ;;  %v7318_v12 = vld [vmem:[%s11099_s3 + $0x64] ss:$8 sps:$4 sm:$0xff]  }
 0xa15   :  { %5734 = vmatprep.mubr.msk.bf16.mxu0 %vm296_vm0, %v7312_v10  ;;  %6844 = vmatpush3.bf16.msra.mxu0 %v7350_v44  ;;  %v7356_v10 = vld [vmem:[%s11101_s18 + $0x28] sm:$0xff]  }
 0xa16   :  { %6845 = vmatprep.subr.bf16.mxu0 %v11233_v7  ;;  %6766 = vmatpush3.bf16.msra.mxu1 %v7356_v10  ;;  %v7316_v44 = vld [vmem:[%s11099_s3 + $0x60] ss:$8 sps:$4 sm:$0xff]   ;;  %v7325_v10 = vld [vmem:[%s11099_s3 + $0x90] ss:$8 sps:$4 sm:$0xff]  }
 0xa17   :  { %6767 = vmatprep.subr.bf16.mxu1 %v11233_v7 }
 0xa19   :  { %6846 = vmatpush3.bf16.msra.mxu0 %v7352_v43  ;;  %v7321_v43 = vld [vmem:[%s11099_s3 + $0x74] ss:$8 sps:$4 sm:$0xff]  }
 0xa1a   :  { %6907 = vmatprep.subr.bf16.mxu0 %v11233_v7  ;;  %6768 = vmatpush3.bf16.msra.mxu1 %v7357_v28  ;;  %v10164_v28 = vld [vmem:[%s11099_s3 + $0xb0] ss:$8 sps:$4 sm:$0xff]  }
 0xa1b   :  { %6769 = vmatprep.subr.bf16.mxu1 %v11233_v7 }
 0xa1c   :  { %3854 = vmatmul.mubr.bf16.gmra.mrb[108].mxu0 %v7310_v57  ;;  %v7319_v57 = vld [vmem:[%s11099_s3 + $0x70] ss:$8 sps:$4 sm:$0xff]  }
 0xa1d   :  { %5735 = vmatprep.mubr.msk.bf16.mxu0 %vm296_vm0, %v7315_v25  ;;  %v7324_v25 = vld [vmem:[%s11099_s3 + $0x84] ss:$8 sps:$4 sm:$0xff]  }
 0xa24   :  { %3862 = vmatmul.mubr.bf16.gmra.mrb[112].mxu0 %v7313_v49  ;;  %v7322_v49 = vld [vmem:[%s11099_s3 + $0x80] ss:$8 sps:$4 sm:$0xff]  }
 0xa25   :  { %5736 = vmatprep.mubr.msk.bf16.mxu0 %vm296_vm0, %v7318_v12  ;;  %v7327_v12 = vld [vmem:[%s11099_s3 + $0x94] ss:$8 sps:$4 sm:$0xff]  }
 0xa2c   :  { %3870 = vmatmul.mubr.bf16.gmra.mrb[116].mxu0 %v7316_v44  ;;  %v7330_v44 = vld [vmem:[%s11099_s3 + $0xa4] ss:$8 sps:$4 sm:$0xff]  }
 0xa2d   :  { %5737 = vmatprep.mubr.msk.bf16.mxu0 %vm296_vm0, %v7321_v43  ;;  %v7358_v43 = vld [vmem:[%s11101_s18 + $0x38] sm:$0xff]  }
 0xa2e   :  { %6770 = vmatpush3.bf16.msra.mxu1 %v7358_v43  ;;  %v10195_v43 = vld [vmem:[%s11099_s3 + $0xe4] ss:$8 sps:$4 sm:$0xff]  }
 0xa2f   :  { %4473 = vmatprep.subr.bf16.mxu1 %v11256_v9 }
 0xa34   :  { %3878 = vmatmul.mubr.bf16.gmra.mrb[120].mxu0 %v7319_v57  ;;  %v7328_v57 = vld [vmem:[%s11099_s3 + $0xa0] ss:$8 sps:$4 sm:$0xff]  }
 0xa35   :  { %5738 = vmatprep.mubr.msk.bf16.mxu0 %vm296_vm0, %v7324_v25  ;;  %v7333_v25 = vld [vmem:[%s11099_s3 + $0xb4] ss:$8 sps:$4 sm:$0xff]  }
 0xa3c   :  { %3886 = vmatmul.mubr.bf16.gmra.mrb[124].mxu0 %v7322_v49  ;;  %v10169_v49 = vld [vmem:[%s11099_s3 + $0xc4] ss:$8 sps:$4 sm:$0xff]  }
 0xa3d   :  { %5739 = vmatprep.mubr.msk.bf16.mxu0 %vm296_vm0, %v7327_v12  ;;  %v10177_v12 = vld [vmem:[%s11099_s3 + $0xc0] ss:$8 sps:$4 sm:$0xff]  }
 0xa44   :  { %3894 = vmatmul.mubr.bf16.gmra.mrb[128].mxu0 %v7325_v10  ;;  %v10182_v10 = vld [vmem:[%s11099_s3 + $0xd4] ss:$8 sps:$4 sm:$0xff]  }
 0xa45   :  { %5740 = vmatprep.mubr.msk.bf16.mxu0 %vm296_vm0, %v7330_v44  ;;  %v10190_v44 = vld [vmem:[%s11099_s3 + $0xd0] ss:$8 sps:$4 sm:$0xff]  }
 0xa4c   :  { %3902 = vmatmul.mubr.bf16.gmra.mrb[132].mxu0 %v7328_v57  ;;  %v10203_v57 = vld [vmem:[%s11099_s3 + $0xe0] ss:$8 sps:$4 sm:$0xff]  }
 0xa4d   :  { %5741 = vmatprep.mubr.msk.bf16.mxu0 %vm296_vm0, %v7333_v25 }
 0xa54   :  { %3910 = vmatmul.mubr.bf16.gmra.mrb[136].mxu0 %v10164_v28 }
 0xa55   :  { %5742 = vmatprep.mubr.msk.bf16.mxu0 %vm296_vm0, %v10169_v49 }
 0xa5c   :  { %3918 = vmatmul.mubr.bf16.gmra.mrb[140].mxu0 %v10177_v12 }
 0xa5d   :  { %5743 = vmatprep.mubr.msk.bf16.mxu0 %vm296_vm0, %v10182_v10 }
 0xa64   :  { %3926 = vmatmul.mubr.bf16.gmra.mrb[144].mxu0 %v10190_v44 }
 0xa65   :  { %5744 = vmatprep.mubr.msk.bf16.mxu0 %vm296_vm0, %v10195_v43 }
 0xa6c   :  { %3934 = vmatmul.mubr.bf16.gmra.mrb[148].mxu0 %v10203_v57 }
 0xa6d   :  { %6847 = vmatprep.mubr.msk.bf16.mxu0 %vm7458_vm1, %v11233_v7 }
 0xa74   :  { %6848 = vmatmul.mubr.bf16.vlgmr.msra.gmra.mrb[152].mxu0 %v9708_v63 }
 0xa75   :  { %6851 = vmatprep.mubr.msk.bf16.mxu0 %vm7458_vm1, %v11233_v7 }
 0xa7c   :  { %6852 = vmatmul.mubr.bf16.gmra.mrb[156].mxu0 %v9734_v46 }
 0xa7d   :  { %6855 = vmatprep.mubr.msk.bf16.mxu0 %vm7458_vm1, %v11233_v7 }
 0xa84   :  { %6856 = vmatmul.mubr.bf16.gmra.mrb[160].mxu0 %v9756_v58 }
 0xa85   :  { %6859 = vmatprep.mubr.msk.bf16.mxu0 %vm7458_vm1, %v11233_v7 }
 0xa8c   :  { %6860 = vmatmul.mubr.bf16.gmra.mrb[164].mxu0 %v9778_v36 }
 0xa8d   :  { %6863 = vmatprep.mubr.msk.bf16.mxu0 %vm7458_vm1, %v11233_v7 }
 0xa94   :  { %6864 = vmatmul.mubr.bf16.gmra.mrb[168].mxu0 %v9800_v1 }
 0xa95   :  { %6867 = vmatprep.mubr.msk.bf16.mxu0 %vm7458_vm1, %v11233_v7 }
 0xa9c   :  { %6868 = vmatmul.mubr.bf16.gmra.mrb[172].mxu0 %v9822_v55 }
 0xa9d   :  { %6871 = vmatprep.mubr.msk.bf16.mxu0 %vm7458_vm1, %v11233_v7 }
 0xaa4   :  { %6872 = vmatmul.mubr.bf16.gmra.mrb[176].mxu0 %v9844_v39 }
 0xaa5   :  { %6875 = vmatprep.mubr.msk.bf16.mxu0 %vm7458_vm1, %v11233_v7 }
 0xaac   :  { %6876 = vmatmul.mubr.bf16.gmra.mrb[180].mxu0 %v9866_v21 }
 0xaad   :  { %6879 = vmatprep.mubr.msk.bf16.mxu0 %vm7458_vm1, %v11233_v7 }
 0xab4   :  { %6880 = vmatmul.mubr.bf16.gmra.mrb[184].mxu0 %v9888_v3 }
 0xab5   :  { %6883 = vmatprep.mubr.msk.bf16.mxu0 %vm7458_vm1, %v11233_v7 }
 0xabc   :  { %6884 = vmatmul.mubr.bf16.gmra.mrb[188].mxu0 %v9910_v24 }
 0xabd   :  { %6887 = vmatprep.mubr.msk.bf16.mxu0 %vm7458_vm1, %v11233_v7 }
 0xac4   :  { %6888 = vmatmul.mubr.bf16.gmra.mrb[192].mxu0 %v9932_v50 }
 0xac5   :  { %6891 = vmatprep.mubr.msk.bf16.mxu0 %vm7458_vm1, %v11233_v7 }
 0xacc   :  { %6892 = vmatmul.mubr.bf16.gmra.mrb[196].mxu0 %v9957_v40 }
 0xacd   :  { %6895 = vmatprep.mubr.msk.bf16.mxu0 %vm7458_vm1, %v11233_v7 }
 0xacf   :  { %v3823_v63 = vpop.f32.mrb[92].mxu0 }
 0xad0   :  { %v3825_v46 = vpop.f32.mrb[93].mxu0 }
 0xad1   :  { %v3826_v58 = vpop.f32.mrb[94].mxu0 }
 0xad2   :  { %v3942_v36 = vpack.c.bf16 %v3826_v58, %v3823_v63  ;;  %v3828_v1 = vpop.f32.mrb[95].mxu0 }
 0xad4   :  { %6772 = vmatmul.mubr.bf16.vlgmr.msra.gmra.mrb[176].mxu1 %v3942_v36  ;;  %6896 = vmatmul.mubr.bf16.gmra.mrb[200].mxu0 %v9980_v20 }
 0xad5   :  { %6775 = vmatprep.mubr.msk.bf16.mxu1 %vm7458_vm1, %v11233_v7  ;;  %6899 = vmatprep.mubr.msk.bf16.mxu0 %vm7458_vm1, %v11233_v7 }
 0xad7   :  { %v3831_v55 = vpop.f32.mrb[96].mxu0 }
 0xad8   :  { %v3833_v39 = vpop.f32.mrb[97].mxu0 }
 0xad9   :  { %v3834_v21 = vpop.f32.mrb[98].mxu0 }
 0xada   :  { %v3943_v3 = vpack.c.bf16 %v3834_v21, %v3831_v55  ;;  %v3836_v24 = vpop.f32.mrb[99].mxu0 }
 0xadc   :  { %6776 = vmatmul.mubr.bf16.gmra.mrb[180].mxu1 %v3943_v3  ;;  %6900 = vmatmul.mubr.bf16.gmra.mrb[204].mxu0 %v10005_v8 }
 0xadd   :  { %6779 = vmatprep.mubr.msk.bf16.mxu1 %vm7458_vm1, %v11233_v7  ;;  %6903 = vmatprep.mubr.msk.bf16.mxu0 %vm7458_vm1, %v11233_v7 }
 0xadf   :  { %v3839_v50 = vpop.f32.mrb[100].mxu0 }
 0xae0   :  { %v3841_v40 = vpop.f32.mrb[101].mxu0 }
 0xae1   :  { %v3842_v20 = vpop.f32.mrb[102].mxu0 }
 0xae2   :  { %v3944_v25 = vpack.c.bf16 %v3842_v20, %v3839_v50  ;;  %v3844_v63 = vpop.f32.mrb[103].mxu0 }
 0xae4   :  { %6780 = vmatmul.mubr.bf16.gmra.mrb[184].mxu1 %v3944_v25  ;;  %6904 = vmatmul.mubr.bf16.gmra.mrb[208].mxu0 %v10024_v48 }
 0xae5   :  { %6783 = vmatprep.mubr.msk.bf16.mxu1 %vm7458_vm1, %v11233_v7  ;;  %6923 = vmatprep.mubr.msk.bf16.mxu0 %vm7458_vm1, %v11233_v7 }
 0xae7   :  { %v3847_v8 = vpop.f32.mrb[104].mxu0 }
 0xae8   :  { %v3849_v46 = vpop.f32.mrb[105].mxu0 }
 0xae9   :  { %v3850_v58 = vpop.f32.mrb[106].mxu0 }
 0xaea   :  { %v3945_v36 = vpack.c.bf16 %v3850_v58, %v3847_v8  ;;  %v3852_v1 = vpop.f32.mrb[107].mxu0 }
 0xaec   :  { %6784 = vmatmul.mubr.bf16.gmra.mrb[188].mxu1 %v3945_v36 }
 0xaed   :  { %6787 = vmatprep.mubr.msk.bf16.mxu1 %vm7458_vm1, %v11233_v7 }
 0xaef   :  { %v3855_v55 = vpop.f32.mrb[108].mxu0 }
 0xaf0   :  { %v3857_v39 = vpop.f32.mrb[109].mxu0 }
 0xaf1   :  { %v3858_v21 = vpop.f32.mrb[110].mxu0 }
 0xaf2   :  { %v3946_v3 = vpack.c.bf16 %v3858_v21, %v3855_v55  ;;  %v3860_v48 = vpop.f32.mrb[111].mxu0 }
 0xaf4   :  { %6788 = vmatmul.mubr.bf16.gmra.mrb[192].mxu1 %v3946_v3 }
 0xaf5   :  { %6791 = vmatprep.mubr.msk.bf16.mxu1 %vm7458_vm1, %v11233_v7 }
 0xaf7   :  { %v3863_v24 = vpop.f32.mrb[112].mxu0 }
 0xaf8   :  { %v3865_v50 = vpop.f32.mrb[113].mxu0 }
 0xaf9   :  { %v3866_v40 = vpop.f32.mrb[114].mxu0 }
 0xafa   :  { %v3947_v20 = vpack.c.bf16 %v3866_v40, %v3863_v24  ;;  %v3868_v25 = vpop.f32.mrb[115].mxu0 }
 0xafc   :  { %6792 = vmatmul.mubr.bf16.gmra.mrb[196].mxu1 %v3947_v20 }
 0xafd   :  { %6795 = vmatprep.mubr.msk.bf16.mxu1 %vm7458_vm1, %v11233_v7 }
 0xaff   :  { %v3871_v63 = vpop.f32.mrb[116].mxu0 }
 0xb00   :  { %v3873_v8 = vpop.f32.mrb[117].mxu0 }
 0xb01   :  { %v3874_v46 = vpop.f32.mrb[118].mxu0 }
 0xb02   :  { %v3948_v58 = vpack.c.bf16 %v3874_v46, %v3871_v63  ;;  %v3876_v36 = vpop.f32.mrb[119].mxu0 }
 0xb04   :  { %6796 = vmatmul.mubr.bf16.gmra.mrb[200].mxu1 %v3948_v58 }
 0xb05   :  { %6799 = vmatprep.mubr.msk.bf16.mxu1 %vm7458_vm1, %v11233_v7 }
 0xb07   :  { %v3879_v1 = vpop.f32.mrb[120].mxu0 }
 0xb08   :  { %v3881_v55 = vpop.f32.mrb[121].mxu0 }
 0xb09   :  { %v3882_v39 = vpop.f32.mrb[122].mxu0 }
 0xb0a   :  { %v3949_v21 = vpack.c.bf16 %v3882_v39, %v3879_v1  ;;  %v3884_v3 = vpop.f32.mrb[123].mxu0 }
 0xb0c   :  { %6800 = vmatmul.mubr.bf16.gmra.mrb[204].mxu1 %v3949_v21 }
 0xb0d   :  { %6803 = vmatprep.mubr.msk.bf16.mxu1 %vm7458_vm1, %v11233_v7 }
 0xb0f   :  { %v3887_v48 = vpop.f32.mrb[124].mxu0 }
 0xb10   :  { %v3889_v24 = vpop.f32.mrb[125].mxu0 }
 0xb11   :  { %v3890_v50 = vpop.f32.mrb[126].mxu0 }
 0xb12   :  { %v3950_v40 = vpack.c.bf16 %v3890_v50, %v3887_v48  ;;  %v3892_v20 = vpop.f32.mrb[127].mxu0 }
 0xb14   :  { %6804 = vmatmul.mubr.bf16.gmra.mrb[208].mxu1 %v3950_v40 }
 0xb15   :  { %6807 = vmatprep.mubr.msk.bf16.mxu1 %vm7458_vm1, %v11233_v7 }
 0xb17   :  { %v3895_v25 = vpop.f32.mrb[128].mxu0 }
 0xb18   :  { %v3897_v63 = vpop.f32.mrb[129].mxu0 }
 0xb19   :  { %v3898_v8 = vpop.f32.mrb[130].mxu0 }
 0xb1a   :  { %v3951_v46 = vpack.c.bf16 %v3898_v8, %v3895_v25  ;;  %v3900_v58 = vpop.f32.mrb[131].mxu0 }
 0xb1c   :  { %6808 = vmatmul.mubr.bf16.gmra.mrb[212].mxu1 %v3951_v46 }
 0xb1d   :  { %6811 = vmatprep.mubr.msk.bf16.mxu1 %vm7458_vm1, %v11233_v7 }
 0xb1f   :  { %v3903_v36 = vpop.f32.mrb[132].mxu0 }
 0xb20   :  { %v3905_v1 = vpop.f32.mrb[133].mxu0 }
 0xb21   :  { %v3906_v55 = vpop.f32.mrb[134].mxu0 }
 0xb22   :  { %v3952_v39 = vpack.c.bf16 %v3906_v55, %v3903_v36  ;;  %v3908_v21 = vpop.f32.mrb[135].mxu0 }
 0xb24   :  { %6812 = vmatmul.mubr.bf16.gmra.mrb[216].mxu1 %v3952_v39 }
 0xb25   :  { %6815 = vmatprep.mubr.msk.bf16.mxu1 %vm7458_vm1, %v11233_v7 }
 0xb27   :  { %v3911_v3 = vpop.f32.mrb[136].mxu0 }
 0xb28   :  { %v3913_v48 = vpop.f32.mrb[137].mxu0 }
 0xb29   :  { %v3914_v24 = vpop.f32.mrb[138].mxu0 }
 0xb2a   :  { %v3953_v50 = vpack.c.bf16 %v3914_v24, %v3911_v3  ;;  %v3916_v40 = vpop.f32.mrb[139].mxu0 }
 0xb2b   :  { %v7433_v40 = vld [vmem:[%s11099_s3 + $0x4] ss:$8 sps:$4 sm:$0xff]  }
 0xb2c   :  { %6816 = vmatmul.mubr.bf16.gmra.mrb[220].mxu1 %v3953_v50 }
 0xb2d   :  { %6819 = vmatprep.mubr.msk.bf16.mxu1 %vm7458_vm1, %v11233_v7 }
 0xb2f   :  { %v3919_v20 = vpop.f32.mrb[140].mxu0 }
 0xb30   :  { %v3921_v25 = vpop.f32.mrb[141].mxu0 }
 0xb31   :  { %v3922_v63 = vpop.f32.mrb[142].mxu0 }
 0xb32   :  { %v3954_v8 = vpack.c.bf16 %v3922_v63, %v3919_v20  ;;  %v3924_v46 = vpop.f32.mrb[143].mxu0 }
 0xb34   :  { %6820 = vmatmul.mubr.bf16.gmra.mrb[224].mxu1 %v3954_v8 }
 0xb35   :  { %6823 = vmatprep.mubr.msk.bf16.mxu1 %vm7458_vm1, %v11233_v7 }
 0xb37   :  { %v3927_v58 = vpop.f32.mrb[144].mxu0 }
 0xb38   :  { %v3929_v36 = vpop.f32.mrb[145].mxu0 }
 0xb39   :  { %v3930_v1 = vpop.f32.mrb[146].mxu0 }
 0xb3a   :  { %v3955_v55 = vpack.c.bf16 %v3930_v1, %v3927_v58  ;;  %v3932_v39 = vpop.f32.mrb[147].mxu0 }
 0xb3c   :  { %6824 = vmatmul.mubr.bf16.gmra.mrb[228].mxu1 %v3955_v55 }
 0xb3d   :  { %6827 = vmatprep.mubr.msk.bf16.mxu1 %vm7458_vm1, %v11233_v7 }
 0xb3f   :  { %v3935_v21 = vpop.f32.mrb[148].mxu0 }
 0xb40   :  { %v3937_v3 = vpop.f32.mrb[149].mxu0 }
 0xb41   :  { %v3938_v48 = vpop.f32.mrb[150].mxu0 }
 0xb42   :  { %v3956_v24 = vpack.c.bf16 %v3938_v48, %v3935_v21  ;;  %v3940_v50 = vpop.f32.mrb[151].mxu0 }
 0xb44   :  { %6828 = vmatmul.mubr.bf16.gmra.mrb[232].mxu1 %v3956_v24 }
 0xb45   :  { %5762 = vmatprep.mubr.msk.bf16.mxu1 %vm296_vm0, %v7433_v40 }
 0xb47   :  { %v4272_v20 = vpop.f32.mrb[152].mxu0 }
 0xb48   :  { %v6849_v25 = vpop.f32.mrb[153].mxu0 }
 0xb49   :  { %v4275_v63 = vpop.f32.mrb[154].mxu0 }
 0xb4a   :  { %v6850_v8 = vpop.f32.mrb[155].mxu0 }
 0xb4f   :  { %v10285_v46 = vpop.f32.mrb[156].mxu0 }
 0xb50   :  { %v6853_v58 = vpop.f32.mrb[157].mxu0 }
 0xb51   :  { %v10287_v36 = vpop.f32.mrb[158].mxu0 }
 0xb52   :  { %v6854_v1 = vpop.f32.mrb[159].mxu0 }
 0xb57   :  { %v10289_v55 = vpop.f32.mrb[160].mxu0 }
 0xb58   :  { %v6857_v39 = vpop.f32.mrb[161].mxu0 }
 0xb59   :  { %v10291_v21 = vpop.f32.mrb[162].mxu0 }
 0xb5a   :  { %v6858_v3 = vpop.f32.mrb[163].mxu0 }
 0xb5f   :  { %v10293_v48 = vpop.f32.mrb[164].mxu0 }
 0xb60   :  { %v6861_v24 = vpop.f32.mrb[165].mxu0 }
 0xb61   :  { %v10295_v50 = vpop.f32.mrb[166].mxu0 }
 0xb62   :  { %v6862_v40 = vpop.f32.mrb[167].mxu0 }
 0xb67   :  { %v10297_v25 = vpop.f32.mrb[168].mxu0 }
 0xb68   :  { %v6865_v8 = vpop.f32.mrb[169].mxu0 }
 0xb69   :  { %v10299_v5 = vpop.f32.mrb[170].mxu0 }
 0xb6a   :  { %v6866_v58 = vpop.f32.mrb[171].mxu0 }
 0xb6f   :  { %v10301_v35 = vpop.f32.mrb[172].mxu0 }
 0xb70   :  { %v6869_v1 = vpop.f32.mrb[173].mxu0 }
 0xb71   :  { %v10303_v34 = vpop.f32.mrb[174].mxu0 }
 0xb72   :  { %v6870_v39 = vpop.f32.mrb[175].mxu0 }
 0xb77   :  { %v10305_v16 = vpop.f32.mrb[176].mxu0 }
 0xb78   :  { %v6873_v3 = vpop.f32.mrb[177].mxu0 }
 0xb79   :  { %v10307_v14 = vpop.f32.mrb[178].mxu0 }
 0xb7a   :  { %v6874_v24 = vpop.f32.mrb[179].mxu0 }
 0xb7f   :  { %v10309_v53 = vpop.f32.mrb[180].mxu0 }
 0xb80   :  { %v6877_v40 = vpop.f32.mrb[181].mxu0 }
 0xb81   :  { %v10311_v0 = vpop.f32.mrb[182].mxu0 }
 0xb82   :  { %v6878_v8 = vpop.f32.mrb[183].mxu0 }
 0xb87   :  { %v10313_v37 = vpop.f32.mrb[184].mxu0 }
 0xb88   :  { %v6881_v58 = vpop.f32.mrb[185].mxu0 }
 0xb89   :  { %v10315_v6 = vpop.f32.mrb[186].mxu0 }
 0xb8a   :  { %v6882_v1 = vpop.f32.mrb[187].mxu0 }
 0xb8b   :  { %v10332_v1 = vld [vmem:[%s11102_s20] ss:$0 sm:$0xff] }
 0xb8f   :  { %v10317_v42 = vpop.f32.mrb[188].mxu0 }
 0xb90   :  { %v6885_v39 = vpop.f32.mrb[189].mxu0 }
 0xb91   :  { %v10319_v54 = vpop.f32.mrb[190].mxu0 }
 0xb92   :  { %v6886_v3 = vpop.f32.mrb[191].mxu0 }
 0xb97   :  { %v10321_v23 = vpop.f32.mrb[192].mxu0 }
 0xb98   :  { %v6889_v24 = vpop.f32.mrb[193].mxu0 }
 0xb99   :  { %v10323_v41 = vpop.f32.mrb[194].mxu0 }
 0xb9a   :  { %v6890_v40 = vpop.f32.mrb[195].mxu0 }
 0xb9f   :  { %v10325_v17 = vpop.f32.mrb[196].mxu0 }
 0xba0   :  { %v6893_v8 = vpop.f32.mrb[197].mxu0 }
 0xba1   :  { %v10327_v38 = vpop.f32.mrb[198].mxu0 }
 0xba2   :  { %v6894_v58 = vpop.f32.mrb[199].mxu0 }
 0xba7   :  { %v4071_v56 = vpop.f32.mrb[176].mxu1  ;;  %v10334_v39 = vpop.f32.mrb[200].mxu0 }
 0xba8   :  { %v4273_v3 = vadd.f32 %v4272_v20, %v4071_v56  ;;  %v6773_v45 = vpop.f32.mrb[177].mxu1  ;;  %v6897_v24 = vpop.f32.mrb[201].mxu0 }
 0xba9   :  { %v4074_v52 = vpop.f32.mrb[178].mxu1  ;;  %v10336_v61 = vpop.f32.mrb[202].mxu0 }
 0xbaa   :  { %v4398_v40 = vadd.f32 %v10332_v1, %v4273_v3  ;;  %v4276_v8 = vadd.f32 %v4275_v63, %v4074_v52  ;;  %v6774_v11 = vpop.f32.mrb[179].mxu1  ;;  %v6898_v2 = vpop.f32.mrb[203].mxu0 }
 0xbac   :  { %v4399_v58 = vadd.f32 %v10332_v1, %v4276_v8  ;;  %v4428_v51 = vmax.f32 %v4398_v40, 0.0 }
 0xbae   :  { %v4429_v47 = vmax.f32 %v4399_v58, 0.0 }
 0xbaf   :  { %v4079_v60 = vpop.f32.mrb[180].mxu1  ;;  %v10340_v62 = vpop.f32.mrb[204].mxu0 }
 0xbb0   :  { %v10342_v30 = vpack.c.bf16 %v4429_v47, %v4428_v51  ;;  %v4281_v45 = vadd.f32 %v10285_v46, %v4079_v60  ;;  %v6777_v56 = vpop.f32.mrb[181].mxu1  ;;  %v6901_v20 = vpop.f32.mrb[205].mxu0 }
 0xbb1   :  { %v4082_v24 = vpop.f32.mrb[182].mxu1  ;;  %v10345_v33 = vpop.f32.mrb[206].mxu0 }
 0xbb2   :  { %v4400_v52 = vadd.f32 %v10332_v1, %v4281_v45  ;;  %v4284_v2 = vadd.f32 %v10287_v36, %v4082_v24  ;;  %v6778_v11 = vpop.f32.mrb[183].mxu1  ;;  %v6902_v63 = vpop.f32.mrb[207].mxu0  ;;  %4474 = vmatpush1.bf16.msra.mxu1 %v10342_v30 }
 0xbb3   :  { %4475 = vmatprep.subr.bf16.mxu1 %v11256_v9 }
 0xbb4   :  { %v4401_v47 = vadd.f32 %v10332_v1, %v4284_v2  ;;  %v4430_v51 = vmax.f32 %v4400_v52, 0.0 }
 0xbb6   :  { %v4431_v3 = vmax.f32 %v4401_v47, 0.0 }
 0xbb7   :  { %v4087_v60 = vpop.f32.mrb[184].mxu1  ;;  %v10352_v46 = vpop.f32.mrb[208].mxu0 }
 0xbb8   :  { %v10354_v40 = vpack.c.bf16 %v4431_v3, %v4430_v51  ;;  %v4289_v8 = vadd.f32 %v10289_v55, %v4087_v60  ;;  %v6781_v58 = vpop.f32.mrb[185].mxu1  ;;  %v6905_v45 = vpop.f32.mrb[209].mxu0 }
 0xbb9   :  { %v4090_v36 = vpop.f32.mrb[186].mxu1  ;;  %v10357_v56 = vpop.f32.mrb[210].mxu0 }
 0xbba   :  { %v4402_v20 = vadd.f32 %v10332_v1, %v4289_v8  ;;  %v4292_v24 = vadd.f32 %v10291_v21, %v4090_v36  ;;  %v6782_v11 = vpop.f32.mrb[187].mxu1  ;;  %v6906_v2 = vpop.f32.mrb[211].mxu0  ;;  %4476 = vmatpush1.bf16.msra.mxu1 %v10354_v40 }
 0xbbb   :  { %4477 = vmatprep.subr.bf16.mxu1 %v11256_v9 }
 0xbbc   :  { %v4403_v52 = vadd.f32 %v10332_v1, %v4292_v24  ;;  %v4432_v63 = vmax.f32 %v4402_v20, 0.0 }
 0xbbe   :  { %v4433_v47 = vmax.f32 %v4403_v52, 0.0 }
 0xbbf   :  { %v4095_v55 = vpop.f32.mrb[188].mxu1 }
 0xbc0   :  { %v10364_v51 = vpack.c.bf16 %v4433_v47, %v4432_v63  ;;  %v4297_v3 = vadd.f32 %v10293_v48, %v4095_v55  ;;  %v6785_v60 = vpop.f32.mrb[189].mxu1 }
 0xbc1   :  { %v4098_v58 = vpop.f32.mrb[190].mxu1 }
 0xbc2   :  { %v4404_v8 = vadd.f32 %v10332_v1, %v4297_v3  ;;  %v4300_v21 = vadd.f32 %v10295_v50, %v4098_v58  ;;  %v6786_v45 = vpop.f32.mrb[191].mxu1  ;;  %4478 = vmatpush1.bf16.msra.mxu1 %v10364_v51 }
 0xbc3   :  { %4479 = vmatprep.subr.bf16.mxu1 %v11256_v9 }
 0xbc4   :  { %v4405_v36 = vadd.f32 %v10332_v1, %v4300_v21  ;;  %v4434_v20 = vmax.f32 %v4404_v8, 0.0 }
 0xbc6   :  { %v4435_v24 = vmax.f32 %v4405_v36, 0.0 }
 0xbc7   :  { %v4103_v11 = vpop.f32.mrb[192].mxu1 }
 0xbc8   :  { %v10372_v2 = vpack.c.bf16 %v4435_v24, %v4434_v20  ;;  %v4305_v48 = vadd.f32 %v10297_v25, %v4103_v11  ;;  %v6789_v52 = vpop.f32.mrb[193].mxu1 }
 0xbc9   :  { %v4106_v63 = vpop.f32.mrb[194].mxu1 }
 0xbca   :  { %v4406_v47 = vadd.f32 %v10332_v1, %v4305_v48  ;;  %v4308_v50 = vadd.f32 %v10299_v5, %v4106_v63  ;;  %v6790_v55 = vpop.f32.mrb[195].mxu1  ;;  %4480 = vmatpush1.bf16.msra.mxu1 %v10372_v2 }
 0xbcb   :  { %4481 = vmatprep.subr.bf16.mxu1 %v11256_v9 }
 0xbcc   :  { %v4407_v3 = vadd.f32 %v10332_v1, %v4308_v50  ;;  %v4436_v60 = vmax.f32 %v4406_v47, 0.0 }
 0xbce   :  { %v4437_v58 = vmax.f32 %v4407_v3, 0.0 }
 0xbcf   :  { %v4111_v8 = vpop.f32.mrb[196].mxu1 }
 0xbd0   :  { %v10380_v21 = vpack.c.bf16 %v4437_v58, %v4436_v60  ;;  %v4313_v25 = vadd.f32 %v10301_v35, %v4111_v8  ;;  %v6793_v45 = vpop.f32.mrb[197].mxu1 }
 0xbd1   :  { %v4114_v36 = vpop.f32.mrb[198].mxu1 }
 0xbd2   :  { %v4408_v20 = vadd.f32 %v10332_v1, %v4313_v25  ;;  %v4316_v5 = vadd.f32 %v10303_v34, %v4114_v36  ;;  %v6794_v24 = vpop.f32.mrb[199].mxu1  ;;  %4482 = vmatpush1.bf16.msra.mxu1 %v10380_v21 }
 0xbd3   :  { %4483 = vmatprep.subr.bf16.mxu1 %v11256_v9 }
 0xbd4   :  { %v4409_v11 = vadd.f32 %v10332_v1, %v4316_v5  ;;  %v4438_v48 = vmax.f32 %v4408_v20, 0.0 }
 0xbd6   :  { %v4439_v52 = vmax.f32 %v4409_v11, 0.0 }
 0xbd7   :  { %v4119_v63 = vpop.f32.mrb[200].mxu1 }
 0xbd8   :  { %v10388_v47 = vpack.c.bf16 %v4439_v52, %v4438_v48  ;;  %v4321_v35 = vadd.f32 %v10305_v16, %v4119_v63  ;;  %v6797_v50 = vpop.f32.mrb[201].mxu1 }
 0xbd9   :  { %v4122_v55 = vpop.f32.mrb[202].mxu1 }
 0xbda   :  { %v4410_v3 = vadd.f32 %v10332_v1, %v4321_v35  ;;  %v4324_v34 = vadd.f32 %v10307_v14, %v4122_v55  ;;  %v6798_v60 = vpop.f32.mrb[203].mxu1  ;;  %4484 = vmatpush1.bf16.msra.mxu1 %v10388_v47 }
 0xbdb   :  { %4485 = vmatprep.subr.bf16.mxu1 %v11256_v9 }
 0xbdc   :  { %v4411_v58 = vadd.f32 %v10332_v1, %v4324_v34  ;;  %v4440_v8 = vmax.f32 %v4410_v3, 0.0 }
 0xbde   :  { %v4441_v25 = vmax.f32 %v4411_v58, 0.0 }
 0xbdf   :  { %v4127_v45 = vpop.f32.mrb[204].mxu1 }
 0xbe0   :  { %v10396_v36 = vpack.c.bf16 %v4441_v25, %v4440_v8  ;;  %v4329_v16 = vadd.f32 %v10309_v53, %v4127_v45  ;;  %v6801_v20 = vpop.f32.mrb[205].mxu1 }
 0xbe1   :  { %v4130_v5 = vpop.f32.mrb[206].mxu1 }
 0xbe2   :  { %v4412_v24 = vadd.f32 %v10332_v1, %v4329_v16  ;;  %v4332_v14 = vadd.f32 %v10311_v0, %v4130_v5  ;;  %v6802_v11 = vpop.f32.mrb[207].mxu1  ;;  %4486 = vmatpush1.bf16.msra.mxu1 %v10396_v36 }
 0xbe3   :  { %4487 = vmatprep.subr.bf16.mxu1 %v11256_v9 }
 0xbe4   :  { %v4413_v48 = vadd.f32 %v10332_v1, %v4332_v14  ;;  %v4442_v52 = vmax.f32 %v4412_v24, 0.0 }
 0xbe6   :  { %v4443_v63 = vmax.f32 %v4413_v48, 0.0 }
 0xbe7   :  { %v4135_v35 = vpop.f32.mrb[208].mxu1 }
 0xbe8   :  { %v10404_v50 = vpack.c.bf16 %v4443_v63, %v4442_v52  ;;  %v4337_v53 = vadd.f32 %v10313_v37, %v4135_v35  ;;  %v6805_v55 = vpop.f32.mrb[209].mxu1 }
 0xbe9   :  { %v4138_v3 = vpop.f32.mrb[210].mxu1 }
 0xbea   :  { %v4414_v34 = vadd.f32 %v10332_v1, %v4337_v53  ;;  %v4340_v0 = vadd.f32 %v10315_v6, %v4138_v3  ;;  %v6806_v60 = vpop.f32.mrb[211].mxu1  ;;  %4488 = vmatpush1.bf16.msra.mxu1 %v10404_v50 }
 0xbeb   :  { %4489 = vmatprep.subr.bf16.mxu1 %v11256_v9 }
 0xbec   :  { %v4415_v58 = vadd.f32 %v10332_v1, %v4340_v0  ;;  %v4444_v8 = vmax.f32 %v4414_v34, 0.0 }
 0xbee   :  { %v4445_v25 = vmax.f32 %v4415_v58, 0.0 }
 0xbef   :  { %v4143_v45 = vpop.f32.mrb[212].mxu1 }
 0xbf0   :  { %v10412_v16 = vpack.c.bf16 %v4445_v25, %v4444_v8  ;;  %v4345_v37 = vadd.f32 %v10317_v42, %v4143_v45  ;;  %v6809_v20 = vpop.f32.mrb[213].mxu1 }
 0xbf1   :  { %v4146_v5 = vpop.f32.mrb[214].mxu1 }
 0xbf2   :  { %v4416_v24 = vadd.f32 %v10332_v1, %v4345_v37  ;;  %v4348_v6 = vadd.f32 %v10319_v54, %v4146_v5  ;;  %v6810_v14 = vpop.f32.mrb[215].mxu1  ;;  %4490 = vmatpush1.bf16.msra.mxu1 %v10412_v16 }
 0xbf3   :  { %4491 = vmatprep.subr.bf16.mxu1 %v11256_v9 }
 0xbf4   :  { %v4417_v11 = vadd.f32 %v10332_v1, %v4348_v6  ;;  %v4446_v48 = vmax.f32 %v4416_v24, 0.0 }
 0xbf6   :  { %v4447_v52 = vmax.f32 %v4417_v11, 0.0  ;;  %v7362_v11 = vld [vmem:[%s11104_s21] sm:$0xff]  }
 0xbf7   :  { %v4151_v63 = vpop.f32.mrb[216].mxu1  ;;  %6908 = vmatpush3.bf16.msra.mxu0 %v7362_v11 }
 0xbf8   :  { %v10420_v35 = vpack.c.bf16 %v4447_v52, %v4446_v48  ;;  %v4353_v42 = vadd.f32 %v10321_v23, %v4151_v63  ;;  %v6813_v53 = vpop.f32.mrb[217].mxu1  ;;  %6909 = vmatprep.subr.bf16.mxu0 %v11233_v7 }
 0xbf9   :  { %v4154_v55 = vpop.f32.mrb[218].mxu1 }
 0xbfa   :  { %v4418_v3 = vadd.f32 %v10332_v1, %v4353_v42  ;;  %v4356_v54 = vadd.f32 %v10323_v41, %v4154_v55  ;;  %v6814_v34 = vpop.f32.mrb[219].mxu1  ;;  %4492 = vmatpush1.bf16.msra.mxu1 %v10420_v35 }
 0xbfb   :  { %4493 = vmatprep.subr.bf16.mxu1 %v11256_v9 }
 0xbfc   :  { %v4419_v0 = vadd.f32 %v10332_v1, %v4356_v54  ;;  %v4448_v60 = vmax.f32 %v4418_v3, 0.0 }
 0xbfe   :  { %v4449_v58 = vmax.f32 %v4419_v0, 0.0 }
 0xbff   :  { %v4159_v8 = vpop.f32.mrb[220].mxu1 }
 0xc00   :  { %v10428_v25 = vpack.c.bf16 %v4449_v58, %v4448_v60  ;;  %v4361_v23 = vadd.f32 %v10325_v17, %v4159_v8  ;;  %v6817_v45 = vpop.f32.mrb[221].mxu1 }
 0xc01   :  { %v4162_v37 = vpop.f32.mrb[222].mxu1 }
 0xc02   :  { %v4420_v20 = vadd.f32 %v10332_v1, %v4361_v23  ;;  %v4364_v41 = vadd.f32 %v10327_v38, %v4162_v37  ;;  %v6818_v5 = vpop.f32.mrb[223].mxu1  ;;  %4494 = vmatpush1.bf16.msra.mxu1 %v10428_v25 }
 0xc03   :  { %4495 = vmatprep.subr.bf16.mxu1 %v11256_v9 }
 0xc04   :  { %v4421_v24 = vadd.f32 %v10332_v1, %v4364_v41  ;;  %v4450_v6 = vmax.f32 %v4420_v20, 0.0  ;;  %v7367_v20 = vld [vmem:[%s11104_s21 + $0x8] sm:$0xff]  }
 0xc05   :  { %6910 = vmatpush3.bf16.msra.mxu0 %v7367_v20  ;;  %v7441_v20 = vld [vmem:[%s11099_s3 + $0x44] ss:$8 sps:$4 sm:$0xff]  }
 0xc06   :  { %v4451_v14 = vmax.f32 %v4421_v24, 0.0  ;;  %6911 = vmatprep.subr.bf16.mxu0 %v11233_v7 }
 0xc07   :  { %v4167_v17 = vpop.f32.mrb[224].mxu1 }
 0xc08   :  { %v10439_v48 = vpack.c.bf16 %v4451_v14, %v4450_v6  ;;  %v4369_v52 = vadd.f32 %v10334_v39, %v4167_v17  ;;  %v6821_v63 = vpop.f32.mrb[225].mxu1 }
 0xc09   :  { %v4170_v38 = vpop.f32.mrb[226].mxu1 }
 0xc0a   :  { %v4422_v42 = vadd.f32 %v10332_v1, %v4369_v52  ;;  %v4372_v53 = vadd.f32 %v10336_v61, %v4170_v38  ;;  %v6822_v55 = vpop.f32.mrb[227].mxu1  ;;  %4496 = vmatpush1.bf16.msra.mxu1 %v10439_v48 }
 0xc0b   :  { %4497 = vmatprep.subr.bf16.mxu1 %v11256_v9  ;;  %v7360_v55 = vld [vmem:[%s11103_s22 + $0x8] sm:$0xff]  }
 0xc0c   :  { %v4423_v3 = vadd.f32 %v10332_v1, %v4372_v53  ;;  %v4452_v54 = vmax.f32 %v4422_v42, 0.0 }
 0xc0e   :  { %v4453_v34 = vmax.f32 %v4423_v3, 0.0  ;;  %v7361_v3 = vld [vmem:[%s11103_s22 + $0x10] sm:$0xff]  }
 0xc0f   :  { %v4175_v0 = vpop.f32.mrb[228].mxu1 }
 0xc10   :  { %v10448_v39 = vpack.c.bf16 %v4453_v34, %v4452_v54  ;;  %v4377_v60 = vadd.f32 %v10340_v62, %v4175_v0  ;;  %v6825_v58 = vpop.f32.mrb[229].mxu1  ;;  %v7436_v54 = vld [vmem:[%s11099_s3 + $0x10] ss:$8 sps:$4 sm:$0xff]   ;;  %v7437_v34 = vld [vmem:[%s11099_s3 + $0x24] ss:$8 sps:$4 sm:$0xff]  }
 0xc11   :  { %v4178_v8 = vpop.f32.mrb[230].mxu1  ;;  %v7363_v0 = vld [vmem:[%s11103_s22 + $0x18] sm:$0xff]   ;;  %v7438_v58 = vld [vmem:[%s11099_s3 + $0x20] ss:$8 sps:$4 sm:$0xff]  }
 0xc12   :  { %v4424_v23 = vadd.f32 %v10332_v1, %v4377_v60  ;;  %v4380_v61 = vadd.f32 %v10345_v33, %v4178_v8  ;;  %v6826_v45 = vpop.f32.mrb[231].mxu1  ;;  %4498 = vmatpush1.bf16.msra.mxu1 %v10448_v39  ;;  %v7364_v60 = vld [vmem:[%s11103_s22 + $0x20] sm:$0xff]   ;;  %v7370_v8 = vld [vmem:[%s11104_s21 + $0x18] sm:$0xff]  }
 0xc13   :  { %4499 = vmatprep.subr.bf16.mxu1 %v11256_v9  ;;  %v7366_v45 = vld [vmem:[%s11103_s22 + $0x30] sm:$0xff]  }
 0xc14   :  { %v4425_v37 = vadd.f32 %v10332_v1, %v4380_v61  ;;  %v4454_v41 = vmax.f32 %v4424_v23, 0.0  ;;  %v7439_v23 = vld [vmem:[%s11099_s3 + $0x34] ss:$8 sps:$4 sm:$0xff]   ;;  %v7365_v61 = vld [vmem:[%s11103_s22 + $0x28] sm:$0xff]  }
 0xc16   :  { %v4455_v5 = vmax.f32 %v4425_v37, 0.0  ;;  %v7440_v37 = vld [vmem:[%s11099_s3 + $0x30] ss:$8 sps:$4 sm:$0xff]  }
 0xc17   :  { %v4183_v62 = vpop.f32.mrb[232].mxu1 }
 0xc18   :  { %v10459_v24 = vpack.c.bf16 %v4455_v5, %v4454_v41  ;;  %v4385_v6 = vadd.f32 %v10352_v46, %v4183_v62  ;;  %v6829_v33 = vpop.f32.mrb[233].mxu1  ;;  %v7359_v46 = vld [vmem:[%s11103_s22] sm:$0xff]   ;;  %v7368_v41 = vld [vmem:[%s11103_s22 + $0x38] sm:$0xff]  }
 0xc19   :  { %v4186_v14 = vpop.f32.mrb[234].mxu1  ;;  %v7442_v5 = vld [vmem:[%s11099_s3 + $0x40] ss:$8 sps:$4 sm:$0xff]   ;;  %v7444_v33 = vld [vmem:[%s11099_s3 + $0x50] ss:$8 sps:$4 sm:$0xff]  }
 0xc1a   :  { %v4426_v11 = vadd.f32 %v10332_v1, %v4385_v6  ;;  %v4388_v17 = vadd.f32 %v10357_v56, %v4186_v14  ;;  %v6830_v52 = vpop.f32.mrb[235].mxu1  ;;  %4500 = vmatpush1.bf16.msra.mxu1 %v10459_v24  ;;  %v7434_v56 = vld [vmem:[%s11099_s3] ss:$8 sps:$4 sm:$0xff]   ;;  %v7443_v6 = vld [vmem:[%s11099_s3 + $0x54] ss:$8 sps:$4 sm:$0xff]  }
 0xc1b   :  { %4501 = vmatprep.subr.bf16.mxu1 %v11256_v9  ;;  %v7369_v9 = vld [vmem:[%s11104_s21 + $0x10] sm:$0xff]   ;;  %v7371_v62 = vld [vmem:[%s11104_s21 + $0x20] sm:$0xff]  }
 0xc1c   :  { %v4427_v63 = vadd.f32 %v10332_v1, %v4388_v17  ;;  %v4456_v38 = vmax.f32 %v4426_v11, 0.0  ;;  %v7435_v1 = vld [vmem:[%s11099_s3 + $0x14] ss:$8 sps:$4 sm:$0xff]   ;;  %6912 = vmatpush3.bf16.msra.mxu0 %v7369_v9  ;;  %v7445_v14 = vld [vmem:[%s11099_s3 + $0x64] ss:$8 sps:$4 sm:$0xff]  }
 0xc1d   :  { %6913 = vmatprep.subr.bf16.mxu0 %v11233_v7  ;;  %v7372_v11 = vld [vmem:[%s11104_s21 + $0x28] sm:$0xff]   ;;  %v7447_v52 = vld [vmem:[%s11099_s3 + $0x74] ss:$8 sps:$4 sm:$0xff]   ;;  %v7452_v9 = vld [vmem:[%s11099_s3 + $0x90] ss:$8 sps:$4 sm:$0xff]  }
 0xc1e   :  { %v4457_v42 = vmax.f32 %v4427_v63, 0.0  ;;  %v7446_v17 = vld [vmem:[%s11099_s3 + $0x60] ss:$8 sps:$4 sm:$0xff]   ;;  %v7448_v63 = vld [vmem:[%s11099_s3 + $0x70] ss:$8 sps:$4 sm:$0xff]  }
 0xc20   :  { %v10468_v53 = vpack.c.bf16 %v4457_v42, %v4456_v38  ;;  %6914 = vmatpush3.bf16.msra.mxu0 %v7370_v8  ;;  %v7373_v38 = vld [vmem:[%s11104_s21 + $0x30] sm:$0xff]   ;;  %v7449_v42 = vld [vmem:[%s11099_s3 + $0x84] ss:$8 sps:$4 sm:$0xff]  }
 0xc21   :  { %6915 = vmatprep.subr.bf16.mxu0 %v11233_v7 }
 0xc22   :  { %4502 = vmatpush1.bf16.msra.mxu1 %v10468_v53 }
 0xc23   :  { %6983 = vmatprep.subr.bf16.mxu1 %v11233_v7 }
 0xc24   :  { %6916 = vmatpush3.bf16.msra.mxu0 %v7371_v62 }
 0xc25   :  { %4506 = vmatmul.mubr.bf16.vlgmr.msra.gmra.mrb[236].mxu1 %v7434_v56  ;;  %6917 = vmatprep.subr.bf16.mxu0 %v11233_v7  ;;  %v7451_v56 = vld [vmem:[%s11099_s3 + $0x94] ss:$8 sps:$4 sm:$0xff]  }
 0xc26   :  { %5763 = vmatprep.mubr.msk.bf16.mxu1 %vm296_vm0, %v7435_v1  ;;  %6984 = vmatpush3.bf16.msra.mxu1 %v7359_v46  ;;  %v7450_v46 = vld [vmem:[%s11099_s3 + $0x80] ss:$8 sps:$4 sm:$0xff]   ;;  %v7374_v1 = vld [vmem:[%s11104_s21 + $0x38] sm:$0xff]  }
 0xc27   :  { %6985 = vmatprep.subr.bf16.mxu1 %v11233_v7 }
 0xc28   :  { %6918 = vmatpush3.bf16.msra.mxu0 %v7372_v11 }
 0xc29   :  { %6919 = vmatprep.subr.bf16.mxu0 %v11233_v7 }
 0xc2a   :  { %6986 = vmatpush3.bf16.msra.mxu1 %v7360_v55  ;;  %v7453_v55 = vld [vmem:[%s11099_s3 + $0xa4] ss:$8 sps:$4 sm:$0xff]  }
 0xc2b   :  { %6987 = vmatprep.subr.bf16.mxu1 %v11233_v7 }
 0xc2c   :  { %6920 = vmatpush3.bf16.msra.mxu0 %v7373_v38 }
 0xc2d   :  { %4514 = vmatmul.mubr.bf16.gmra.mrb[240].mxu1 %v7436_v54  ;;  %6921 = vmatprep.subr.bf16.mxu0 %v11233_v7  ;;  %v7455_v54 = vld [vmem:[%s11099_s3 + $0xb4] ss:$8 sps:$4 sm:$0xff]  }
 0xc2e   :  { %5764 = vmatprep.mubr.msk.bf16.mxu1 %vm296_vm0, %v7437_v34  ;;  %6988 = vmatpush3.bf16.msra.mxu1 %v7361_v3  ;;  %v7454_v3 = vld [vmem:[%s11099_s3 + $0xa0] ss:$8 sps:$4 sm:$0xff]  }
 0xc2f   :  { %6989 = vmatprep.subr.bf16.mxu1 %v11233_v7 }
 0xc30   :  { %6922 = vmatpush3.bf16.msra.mxu0 %v7374_v1 }
 0xc31   :  { %7059 = vmatprep.subr.bf16.mxu0 %v11233_v7 }
 0xc32   :  { %6990 = vmatpush3.bf16.msra.mxu1 %v7363_v0 }
 0xc33   :  { %6991 = vmatprep.subr.bf16.mxu1 %v11233_v7 }
 0xc35   :  { %4522 = vmatmul.mubr.bf16.gmra.mrb[244].mxu1 %v7438_v58 }
 0xc36   :  { %5765 = vmatprep.mubr.msk.bf16.mxu1 %vm296_vm0, %v7439_v23  ;;  %6992 = vmatpush3.bf16.msra.mxu1 %v7364_v60 }
 0xc37   :  { %6993 = vmatprep.subr.bf16.mxu1 %v11233_v7 }
 0xc3a   :  { %6994 = vmatpush3.bf16.msra.mxu1 %v7365_v61 }
 0xc3b   :  { %6995 = vmatprep.subr.bf16.mxu1 %v11233_v7 }
 0xc3d   :  { %4530 = vmatmul.mubr.bf16.gmra.mrb[248].mxu1 %v7440_v37 }
 0xc3e   :  { %5766 = vmatprep.mubr.msk.bf16.mxu1 %vm296_vm0, %v7441_v20  ;;  %6996 = vmatpush3.bf16.msra.mxu1 %v7366_v45 }
 0xc3f   :  { %6997 = vmatprep.subr.bf16.mxu1 %v11233_v7 }
 0xc42   :  { %6998 = vmatpush3.bf16.msra.mxu1 %v7368_v41 }
 0xc45   :  { %4538 = vmatmul.mubr.bf16.gmra.mrb[252].mxu1 %v7442_v5 }
 0xc46   :  { %5767 = vmatprep.mubr.msk.bf16.mxu1 %vm296_vm0, %v7443_v6  ;;  %v7379_v6 = vld [vmem:[%s11105_s24 + $0x20] sm:$0xff]  }
 0xc4d   :  { %4546 = vmatmul.mubr.bf16.gmra.mrb[0].mxu1 %v7444_v33 }
 0xc4e   :  { %5768 = vmatprep.mubr.msk.bf16.mxu1 %vm296_vm0, %v7445_v14 }
 0xc55   :  { %4554 = vmatmul.mubr.bf16.gmra.mrb[4].mxu1 %v7446_v17 }
 0xc56   :  { %5769 = vmatprep.mubr.msk.bf16.mxu1 %vm296_vm0, %v7447_v52 }
 0xc5d   :  { %4562 = vmatmul.mubr.bf16.gmra.mrb[8].mxu1 %v7448_v63 }
 0xc5e   :  { %5770 = vmatprep.mubr.msk.bf16.mxu1 %vm296_vm0, %v7449_v42 }
 0xc65   :  { %4570 = vmatmul.mubr.bf16.gmra.mrb[12].mxu1 %v7450_v46 }
 0xc66   :  { %5771 = vmatprep.mubr.msk.bf16.mxu1 %vm296_vm0, %v7451_v56  ;;  %v7380_v56 = vld [vmem:[%s11105_s24 + $0x28] sm:$0xff]  }
 0xc6d   :  { %4578 = vmatmul.mubr.bf16.gmra.mrb[16].mxu1 %v7452_v9 }
 0xc6e   :  { %5772 = vmatprep.mubr.msk.bf16.mxu1 %vm296_vm0, %v7453_v55 }
 0xc75   :  { %4586 = vmatmul.mubr.bf16.gmra.mrb[20].mxu1 %v7454_v3 }
 0xc76   :  { %5773 = vmatprep.mubr.msk.bf16.mxu1 %vm296_vm0, %v7455_v54 }
 0xc7d   :  { %4594 = vmatmul.mubr.bf16.gmra.mrb[24].mxu1 %v10164_v28 }
 0xc7e   :  { %5774 = vmatprep.mubr.msk.bf16.mxu1 %vm296_vm0, %v10169_v49 }
 0xc85   :  { %4602 = vmatmul.mubr.bf16.gmra.mrb[28].mxu1 %v10177_v12 }
 0xc86   :  { %5775 = vmatprep.mubr.msk.bf16.mxu1 %vm296_vm0, %v10182_v10 }
 0xc8d   :  { %4610 = vmatmul.mubr.bf16.gmra.mrb[32].mxu1 %v10190_v44  ;;  %v7375_v44 = vld [vmem:[%s11105_s24] sm:$0xff]  }
 0xc8e   :  { %5776 = vmatprep.mubr.msk.bf16.mxu1 %vm296_vm0, %v10195_v43  ;;  %v7376_v43 = vld [vmem:[%s11105_s24 + $0x8] sm:$0xff]  }
 0xc95   :  { %4618 = vmatmul.mubr.bf16.gmra.mrb[36].mxu1 %v10203_v57 }
 0xc96   :  { %6999 = vmatprep.mubr.msk.bf16.mxu1 %vm7458_vm1, %v11233_v7 }
 0xc9d   :  { %7000 = vmatmul.mubr.bf16.vlgmr.msra.gmra.mrb[40].mxu1 %v10342_v30 }
 0xc9e   :  { %7003 = vmatprep.mubr.msk.bf16.mxu1 %vm7458_vm1, %v11233_v7 }
 0xca5   :  { %7004 = vmatmul.mubr.bf16.gmra.mrb[44].mxu1 %v10354_v40 }
 0xca6   :  { %7007 = vmatprep.mubr.msk.bf16.mxu1 %vm7458_vm1, %v11233_v7 }
 0xcad   :  { %7008 = vmatmul.mubr.bf16.gmra.mrb[48].mxu1 %v10364_v51 }
 0xcae   :  { %7011 = vmatprep.mubr.msk.bf16.mxu1 %vm7458_vm1, %v11233_v7 }
 0xcb5   :  { %7012 = vmatmul.mubr.bf16.gmra.mrb[52].mxu1 %v10372_v2 }
 0xcb6   :  { %7015 = vmatprep.mubr.msk.bf16.mxu1 %vm7458_vm1, %v11233_v7 }
 0xcbd   :  { %7016 = vmatmul.mubr.bf16.gmra.mrb[56].mxu1 %v10380_v21 }
 0xcbe   :  { %7019 = vmatprep.mubr.msk.bf16.mxu1 %vm7458_vm1, %v11233_v7 }
 0xcc5   :  { %7020 = vmatmul.mubr.bf16.gmra.mrb[60].mxu1 %v10388_v47 }
 0xcc6   :  { %7023 = vmatprep.mubr.msk.bf16.mxu1 %vm7458_vm1, %v11233_v7 }
 0xccd   :  { %7024 = vmatmul.mubr.bf16.gmra.mrb[64].mxu1 %v10396_v36 }
 0xcce   :  { %7027 = vmatprep.mubr.msk.bf16.mxu1 %vm7458_vm1, %v11233_v7 }
 0xcd5   :  { %7028 = vmatmul.mubr.bf16.gmra.mrb[68].mxu1 %v10404_v50 }
 0xcd6   :  { %7031 = vmatprep.mubr.msk.bf16.mxu1 %vm7458_vm1, %v11233_v7 }
 0xcdd   :  { %7032 = vmatmul.mubr.bf16.gmra.mrb[72].mxu1 %v10412_v16  ;;  %v7377_v16 = vld [vmem:[%s11105_s24 + $0x10] sm:$0xff]  }
 0xcde   :  { %7035 = vmatprep.mubr.msk.bf16.mxu1 %vm7458_vm1, %v11233_v7 }
 0xce5   :  { %7036 = vmatmul.mubr.bf16.gmra.mrb[76].mxu1 %v10420_v35 }
 0xce6   :  { %7039 = vmatprep.mubr.msk.bf16.mxu1 %vm7458_vm1, %v11233_v7 }
 0xced   :  { %7040 = vmatmul.mubr.bf16.gmra.mrb[80].mxu1 %v10428_v25 }
 0xcee   :  { %7043 = vmatprep.mubr.msk.bf16.mxu1 %vm7458_vm1, %v11233_v7 }
 0xcf5   :  { %7044 = vmatmul.mubr.bf16.gmra.mrb[84].mxu1 %v10439_v48 }
 0xcf6   :  { %7047 = vmatprep.mubr.msk.bf16.mxu1 %vm7458_vm1, %v11233_v7 }
 0xcf8   :  { %v4507_v30 = vpop.f32.mrb[236].mxu1 }
 0xcf9   :  { %v4509_v28 = vpop.f32.mrb[237].mxu1 }
 0xcfa   :  { %v4510_v49 = vpop.f32.mrb[238].mxu1 }
 0xcfb   :  { %v4626_v12 = vpack.c.bf16 %v4510_v49, %v4507_v30  ;;  %v4512_v10 = vpop.f32.mrb[239].mxu1 }
 0xcfd   :  { %6924 = vmatmul.mubr.bf16.vlgmr.msra.gmra.mrb[212].mxu0 %v4626_v12  ;;  %7048 = vmatmul.mubr.bf16.gmra.mrb[88].mxu1 %v10448_v39 }
 0xcfe   :  { %6927 = vmatprep.mubr.msk.bf16.mxu0 %vm7458_vm1, %v11233_v7  ;;  %7051 = vmatprep.mubr.msk.bf16.mxu1 %vm7458_vm1, %v11233_v7 }
 0xcff   :  { %7060 = vmatpush3.bf16.msra.mxu0 %v7375_v44  ;;  %v7381_v44 = vld [vmem:[%s11105_s24 + $0x30] sm:$0xff]  }
 0xd00   :  { %v4515_v57 = vpop.f32.mrb[240].mxu1  ;;  %7061 = vmatprep.subr.bf16.mxu0 %v11233_v7 }
 0xd01   :  { %v4517_v40 = vpop.f32.mrb[241].mxu1 }
 0xd02   :  { %v4518_v51 = vpop.f32.mrb[242].mxu1 }
 0xd03   :  { %v4627_v2 = vpack.c.bf16 %v4518_v51, %v4515_v57  ;;  %v4520_v21 = vpop.f32.mrb[243].mxu1  ;;  %7062 = vmatpush3.bf16.msra.mxu0 %v7376_v43 }
 0xd04   :  { %7063 = vmatprep.subr.bf16.mxu0 %v11233_v7 }
 0xd05   :  { %6928 = vmatmul.mubr.bf16.gmra.mrb[216].mxu0 %v4627_v2  ;;  %7052 = vmatmul.mubr.bf16.gmra.mrb[92].mxu1 %v10459_v24 }
 0xd06   :  { %6931 = vmatprep.mubr.msk.bf16.mxu0 %vm7458_vm1, %v11233_v7  ;;  %7055 = vmatprep.mubr.msk.bf16.mxu1 %vm7458_vm1, %v11233_v7 }
 0xd07   :  { %7064 = vmatpush3.bf16.msra.mxu0 %v7377_v16 }
 0xd08   :  { %v4523_v47 = vpop.f32.mrb[244].mxu1  ;;  %7065 = vmatprep.subr.bf16.mxu0 %v11233_v7 }
 0xd09   :  { %v4525_v36 = vpop.f32.mrb[245].mxu1 }
 0xd0a   :  { %v4526_v50 = vpop.f32.mrb[246].mxu1 }
 0xd0b   :  { %v4628_v35 = vpack.c.bf16 %v4526_v50, %v4523_v47  ;;  %v4528_v25 = vpop.f32.mrb[247].mxu1 }
 0xd0d   :  { %6932 = vmatmul.mubr.bf16.gmra.mrb[220].mxu0 %v4628_v35  ;;  %7056 = vmatmul.mubr.bf16.gmra.mrb[96].mxu1 %v10468_v53  ;;  %v7378_v53 = vld [vmem:[%s11105_s24 + $0x18] sm:$0xff]  }
 0xd0e   :  { %6935 = vmatprep.mubr.msk.bf16.mxu0 %vm7458_vm1, %v11233_v7  ;;  %7066 = vmatpush3.bf16.msra.mxu0 %v7378_v53 }
 0xd0f   :  { %7067 = vmatprep.subr.bf16.mxu0 %v11233_v7 }
 0xd10   :  { %v4531_v48 = vpop.f32.mrb[248].mxu1 }
 0xd11   :  { %v4533_v39 = vpop.f32.mrb[249].mxu1 }
 0xd12   :  { %v4534_v24 = vpop.f32.mrb[250].mxu1  ;;  %7068 = vmatpush3.bf16.msra.mxu0 %v7379_v6  ;;  %v7382_v39 = vld [vmem:[%s11105_s24 + $0x38] sm:$0xff]  }
 0xd13   :  { %v4629_v34 = vpack.c.bf16 %v4534_v24, %v4531_v48  ;;  %v4536_v0 = vpop.f32.mrb[251].mxu1  ;;  %7069 = vmatprep.subr.bf16.mxu0 %v11233_v7 }
 0xd15   :  { %6936 = vmatmul.mubr.bf16.gmra.mrb[224].mxu0 %v4629_v34 }
 0xd16   :  { %6939 = vmatprep.mubr.msk.bf16.mxu0 %vm7458_vm1, %v11233_v7  ;;  %7070 = vmatpush3.bf16.msra.mxu0 %v7380_v56 }
 0xd17   :  { %7071 = vmatprep.subr.bf16.mxu0 %v11233_v7 }
 0xd18   :  { %v4539_v60 = vpop.f32.mrb[252].mxu1 }
 0xd19   :  { %v4541_v58 = vpop.f32.mrb[253].mxu1 }
 0xd1a   :  { %v4542_v8 = vpop.f32.mrb[254].mxu1  ;;  %7072 = vmatpush3.bf16.msra.mxu0 %v7381_v44 }
 0xd1b   :  { %v4630_v23 = vpack.c.bf16 %v4542_v8, %v4539_v60  ;;  %v4544_v61 = vpop.f32.mrb[255].mxu1  ;;  %7073 = vmatprep.subr.bf16.mxu0 %v11233_v7 }
 0xd1d   :  { %6940 = vmatmul.mubr.bf16.gmra.mrb[228].mxu0 %v4630_v23 }
 0xd1e   :  { %6943 = vmatprep.mubr.msk.bf16.mxu0 %vm7458_vm1, %v11233_v7  ;;  %7074 = vmatpush3.bf16.msra.mxu0 %v7382_v39 }
 0xd20   :  { %v4547_v45 = vpop.f32.mrb[0].mxu1 }
 0xd21   :  { %v4549_v37 = vpop.f32.mrb[1].mxu1 }
 0xd22   :  { %v4550_v20 = vpop.f32.mrb[2].mxu1 }
 0xd23   :  { %v4631_v41 = vpack.c.bf16 %v4550_v20, %v4547_v45  ;;  %v4552_v5 = vpop.f32.mrb[3].mxu1 }
 0xd25   :  { %6944 = vmatmul.mubr.bf16.gmra.mrb[232].mxu0 %v4631_v41 }
 0xd26   :  { %6947 = vmatprep.mubr.msk.bf16.mxu0 %vm7458_vm1, %v11233_v7 }
 0xd28   :  { %v4555_v62 = vpop.f32.mrb[4].mxu1 }
 0xd29   :  { %v4557_v33 = vpop.f32.mrb[5].mxu1 }
 0xd2a   :  { %v4558_v14 = vpop.f32.mrb[6].mxu1 }
 0xd2b   :  { %v4632_v11 = vpack.c.bf16 %v4558_v14, %v4555_v62  ;;  %v4560_v17 = vpop.f32.mrb[7].mxu1 }
 0xd2d   :  { %6948 = vmatmul.mubr.bf16.gmra.mrb[236].mxu0 %v4632_v11 }
 0xd2e   :  { %6951 = vmatprep.mubr.msk.bf16.mxu0 %vm7458_vm1, %v11233_v7 }
 0xd30   :  { %v4563_v52 = vpop.f32.mrb[8].mxu1 }
 0xd31   :  { %v4565_v63 = vpop.f32.mrb[9].mxu1 }
 0xd32   :  { %v4566_v38 = vpop.f32.mrb[10].mxu1 }
 0xd33   :  { %v4633_v42 = vpack.c.bf16 %v4566_v38, %v4563_v52  ;;  %v4568_v46 = vpop.f32.mrb[11].mxu1 }
 0xd35   :  { %6952 = vmatmul.mubr.bf16.gmra.mrb[240].mxu0 %v4633_v42 }
 0xd36   :  { %6955 = vmatprep.mubr.msk.bf16.mxu0 %vm7458_vm1, %v11233_v7 }
 0xd38   :  { %v4571_v9 = vpop.f32.mrb[12].mxu1 }
 0xd39   :  { %v4573_v1 = vpop.f32.mrb[13].mxu1 }
 0xd3a   :  { %v4574_v55 = vpop.f32.mrb[14].mxu1 }
 0xd3b   :  { %v4634_v3 = vpack.c.bf16 %v4574_v55, %v4571_v9  ;;  %v4576_v54 = vpop.f32.mrb[15].mxu1 }
 0xd3d   :  { %6956 = vmatmul.mubr.bf16.gmra.mrb[244].mxu0 %v4634_v3 }
 0xd3e   :  { %6959 = vmatprep.mubr.msk.bf16.mxu0 %vm7458_vm1, %v11233_v7 }
 0xd40   :  { %v4579_v30 = vpop.f32.mrb[16].mxu1 }
 0xd41   :  { %v4581_v28 = vpop.f32.mrb[17].mxu1 }
 0xd42   :  { %v4582_v49 = vpop.f32.mrb[18].mxu1 }
 0xd43   :  { %v4635_v12 = vpack.c.bf16 %v4582_v49, %v4579_v30  ;;  %v4584_v10 = vpop.f32.mrb[19].mxu1 }
 0xd45   :  { %6960 = vmatmul.mubr.bf16.gmra.mrb[248].mxu0 %v4635_v12 }
 0xd46   :  { %6963 = vmatprep.mubr.msk.bf16.mxu0 %vm7458_vm1, %v11233_v7 }
 0xd48   :  { %v4587_v43 = vpop.f32.mrb[20].mxu1 }
 0xd49   :  { %v4589_v57 = vpop.f32.mrb[21].mxu1 }
 0xd4a   :  { %v4590_v40 = vpop.f32.mrb[22].mxu1 }
 0xd4b   :  { %v4636_v51 = vpack.c.bf16 %v4590_v40, %v4587_v43  ;;  %v4592_v2 = vpop.f32.mrb[23].mxu1 }
 0xd4d   :  { %6964 = vmatmul.mubr.bf16.gmra.mrb[252].mxu0 %v4636_v51 }
 0xd4e   :  { %6967 = vmatprep.mubr.msk.bf16.mxu0 %vm7458_vm1, %v11233_v7 }
 0xd50   :  { %v4595_v21 = vpop.f32.mrb[24].mxu1 }
 0xd51   :  { %v4597_v47 = vpop.f32.mrb[25].mxu1 }
 0xd52   :  { %v4598_v36 = vpop.f32.mrb[26].mxu1 }
 0xd53   :  { %v4637_v50 = vpack.c.bf16 %v4598_v36, %v4595_v21  ;;  %v4600_v16 = vpop.f32.mrb[27].mxu1 }
 0xd55   :  { %6968 = vmatmul.mubr.bf16.gmra.mrb[0].mxu0 %v4637_v50 }
 0xd56   :  { %6971 = vmatprep.mubr.msk.bf16.mxu0 %vm7458_vm1, %v11233_v7 }
 0xd58   :  { %v4603_v35 = vpop.f32.mrb[28].mxu1 }
 0xd59   :  { %v4605_v25 = vpop.f32.mrb[29].mxu1 }
 0xd5a   :  { %v4606_v48 = vpop.f32.mrb[30].mxu1 }
 0xd5b   :  { %v4638_v24 = vpack.c.bf16 %v4606_v48, %v4603_v35  ;;  %v4608_v34 = vpop.f32.mrb[31].mxu1 }
 0xd5d   :  { %6972 = vmatmul.mubr.bf16.gmra.mrb[4].mxu0 %v4638_v24 }
 0xd5e   :  { %6975 = vmatprep.mubr.msk.bf16.mxu0 %vm7458_vm1, %v11233_v7 }
 0xd60   :  { %v4611_v0 = vpop.f32.mrb[32].mxu1 }
 0xd61   :  { %v4613_v60 = vpop.f32.mrb[33].mxu1 }
 0xd62   :  { %v4614_v58 = vpop.f32.mrb[34].mxu1 }
 0xd63   :  { %v4639_v53 = vpack.c.bf16 %v4614_v58, %v4611_v0  ;;  %v4616_v8 = vpop.f32.mrb[35].mxu1 }
 0xd65   :  { %6976 = vmatmul.mubr.bf16.gmra.mrb[8].mxu0 %v4639_v53 }
 0xd66   :  { %6979 = vmatprep.mubr.msk.bf16.mxu0 %vm7458_vm1, %v11233_v7 }
 0xd68   :  { %v4619_v23 = vpop.f32.mrb[36].mxu1 }
 0xd69   :  { %v4621_v61 = vpop.f32.mrb[37].mxu1 }
 0xd6a   :  { %v4622_v45 = vpop.f32.mrb[38].mxu1 }
 0xd6b   :  { %v4640_v37 = vpack.c.bf16 %v4622_v45, %v4619_v23  ;;  %v4624_v20 = vpop.f32.mrb[39].mxu1 }
 0xd6d   :  { %6980 = vmatmul.mubr.bf16.gmra.mrb[12].mxu0 %v4640_v37  ;;  %v10767_v37 = vld [vmem:[%s11106_s23] ss:$0 sm:$0xff] }
 0xd6e   :  { %7075 = vmatprep.mubr.msk.bf16.mxu0 %vm7458_vm1, %v11233_v7 }
 0xd70   :  { %v4956_v41 = vpop.f32.mrb[40].mxu1 }
 0xd71   :  { %v7001_v5 = vpop.f32.mrb[41].mxu1 }
 0xd72   :  { %v4959_v62 = vpop.f32.mrb[42].mxu1  ;;  %v31_v5 = vstv %s11107_s25 }
 0xd73   :  { %v7002_v6 = vpop.f32.mrb[43].mxu1  ;;  %32 = vst [vmem:[#allocation2] sm:$0x1] %v31_v5 }
 0xd78   :  { %v10720_v33 = vpop.f32.mrb[44].mxu1 }
 0xd79   :  { %v7005_v14 = vpop.f32.mrb[45].mxu1 }
 0xd7a   :  { %v10722_v11 = vpop.f32.mrb[46].mxu1 }
 0xd7b   :  { %v7006_v17 = vpop.f32.mrb[47].mxu1 }
 0xd80   :  { %v10724_v52 = vpop.f32.mrb[48].mxu1 }
 0xd81   :  { %v7009_v63 = vpop.f32.mrb[49].mxu1 }
 0xd82   :  { %v10726_v38 = vpop.f32.mrb[50].mxu1 }
 0xd83   :  { %v7010_v42 = vpop.f32.mrb[51].mxu1 }
 0xd88   :  { %v10728_v46 = vpop.f32.mrb[52].mxu1 }
 0xd89   :  { %v7013_v56 = vpop.f32.mrb[53].mxu1 }
 0xd8a   :  { %v10730_v9 = vpop.f32.mrb[54].mxu1 }
 0xd8b   :  { %v7014_v1 = vpop.f32.mrb[55].mxu1 }
 0xd90   :  { %v10732_v55 = vpop.f32.mrb[56].mxu1 }
 0xd91   :  { %v7017_v3 = vpop.f32.mrb[57].mxu1 }
 0xd92   :  { %v10734_v54 = vpop.f32.mrb[58].mxu1 }
 0xd93   :  { %v7018_v30 = vpop.f32.mrb[59].mxu1 }
 0xd98   :  { %v10736_v28 = vpop.f32.mrb[60].mxu1 }
 0xd99   :  { %v7021_v49 = vpop.f32.mrb[61].mxu1 }
 0xd9a   :  { %v10738_v12 = vpop.f32.mrb[62].mxu1 }
 0xd9b   :  { %v7022_v10 = vpop.f32.mrb[63].mxu1 }
 0xda0   :  { %v10740_v44 = vpop.f32.mrb[64].mxu1 }
 0xda1   :  { %v7025_v43 = vpop.f32.mrb[65].mxu1 }
 0xda2   :  { %v10742_v57 = vpop.f32.mrb[66].mxu1  ;;  %v11322_v43 = vmax.f32 %v9688_v29, 0.0 }
 0xda3   :  { %v7026_v40 = vpop.f32.mrb[67].mxu1 }
 0xda8   :  { %v10744_v51 = vpop.f32.mrb[68].mxu1 }
 0xda9   :  { %v7029_v2 = vpop.f32.mrb[69].mxu1 }
 0xdaa   :  { %v10746_v21 = vpop.f32.mrb[70].mxu1 }
 0xdab   :  { %v7030_v47 = vpop.f32.mrb[71].mxu1 }
 0xdb0   :  { %v10748_v36 = vpop.f32.mrb[72].mxu1 }
 0xdb1   :  { %v7033_v50 = vpop.f32.mrb[73].mxu1 }
 0xdb2   :  { %v10750_v16 = vpop.f32.mrb[74].mxu1  ;;  %v11323_v50 = vmax.f32 %v9694_v18, 0.0 }
 0xdb3   :  { %v7034_v35 = vpop.f32.mrb[75].mxu1 }
 0xdb8   :  { %v10752_v25 = vpop.f32.mrb[76].mxu1 }
 0xdb9   :  { %v7037_v48 = vpop.f32.mrb[77].mxu1 }
 0xdba   :  { %v10754_v39 = vpop.f32.mrb[78].mxu1 }
 0xdbb   :  { %v7038_v24 = vpop.f32.mrb[79].mxu1 }
 0xdc0   :  { %v10756_v34 = vpop.f32.mrb[80].mxu1 }
 0xdc1   :  { %v7041_v0 = vpop.f32.mrb[81].mxu1 }
 0xdc2   :  { %v10758_v60 = vpop.f32.mrb[82].mxu1 }
 0xdc3   :  { %v7042_v58 = vpop.f32.mrb[83].mxu1 }
 0xdc8   :  { %v10760_v53 = vpop.f32.mrb[84].mxu1 }
 0xdc9   :  { %v7045_v8 = vpop.f32.mrb[85].mxu1 }
 0xdca   :  { %v10762_v23 = vpop.f32.mrb[86].mxu1 }
 0xdcb   :  { %v7046_v61 = vpop.f32.mrb[87].mxu1 }
 0xdd0   :  { %v4755_v45 = vpop.f32.mrb[212].mxu0  ;;  %v10769_v20 = vpop.f32.mrb[88].mxu1 }
 0xdd1   :  { %v4957_v6 = vadd.f32 %v4956_v41, %v4755_v45  ;;  %v6925_v14 = vpop.f32.mrb[213].mxu0  ;;  %v7049_v17 = vpop.f32.mrb[89].mxu1 }
 0xdd2   :  { %v4758_v63 = vpop.f32.mrb[214].mxu0  ;;  %v10774_v42 = vpop.f32.mrb[90].mxu1 }
 0xdd3   :  { %v5082_v56 = vadd.f32 %v10767_v37, %v4957_v6  ;;  %v4960_v1 = vadd.f32 %v4959_v62, %v4758_v63  ;;  %v6926_v3 = vpop.f32.mrb[215].mxu0  ;;  %v7050_v30 = vpop.f32.mrb[91].mxu1  ;;  %v11324_v63 = vmax.f32 %v9712_v31, 0.0 }
 0xdd4   :  { %v11325_v30 = vmax.f32 %v9720_v15, 0.0 }
 0xdd5   :  { %v5112_v49 = vmax.f32 %v5082_v56, 0.0  ;;  %v5083_v10 = vadd.f32 %v10767_v37, %v4960_v1 }
 0xdd7   :  { %v5142_v40 = vadd.f32 %v5112_v49, %v11322_v43  ;;  %v5113_v2 = vmax.f32 %v5083_v10, 0.0 }
 0xdd8   :  { %v4763_v47 = vpop.f32.mrb[216].mxu0  ;;  %v10780_v41 = vpop.f32.mrb[92].mxu1 }
 0xdd9   :  { %v5143_v35 = vadd.f32 %v5113_v2, %v11323_v50  ;;  %v4965_v48 = vadd.f32 %v10720_v33, %v4763_v47  ;;  %v6929_v24 = vpop.f32.mrb[217].mxu0  ;;  %v7053_v0 = vpop.f32.mrb[93].mxu1  ;;  %v5172_v8 = vmax.f32 %v5142_v40, 0.0 }
 0xdda   :  { %v4766_v62 = vpop.f32.mrb[218].mxu0  ;;  %v10785_v58 = vpop.f32.mrb[94].mxu1 }
 0xddb   :  { %v5173_v61 = vmax.f32 %v5143_v35, 0.0  ;;  %v5084_v45 = vadd.f32 %v10767_v37, %v4965_v48  ;;  %v4968_v29 = vadd.f32 %v10722_v11, %v4766_v62  ;;  %v6930_v5 = vpop.f32.mrb[219].mxu0  ;;  %v7054_v6 = vpop.f32.mrb[95].mxu1 }
 0xddd   :  { %v5202_v14 = vpack.c.bf16 %v5173_v61, %v5172_v8  ;;  %v5114_v17 = vmax.f32 %v5084_v45, 0.0  ;;  %v5085_v18 = vadd.f32 %v10767_v37, %v4968_v29  ;;  %v11326_v8 = vmax.f32 %v9738_v4, 0.0 }
 0xdde   :  { %v11327_v29 = vmax.f32 %v9744_v22, 0.0 }
 0xddf   :  { %v5144_v33 = vadd.f32 %v5114_v17, %v11324_v63  ;;  %v5115_v56 = vmax.f32 %v5085_v18, 0.0  ;;  %7076 = vmatmul.mubr.bf16.vlgmr.msra.gmra.mrb[16].mxu0 %v5202_v14 }
 0xde0   :  { %v4771_v1 = vpop.f32.mrb[220].mxu0  ;;  %v10792_v3 = vpop.f32.mrb[96].mxu1  ;;  %7079 = vmatprep.mubr.msk.bf16.mxu0 %vm7458_vm1, %v11233_v7 }
 0xde1   :  { %v5145_v11 = vadd.f32 %v5115_v56, %v11325_v30  ;;  %v4973_v49 = vadd.f32 %v10724_v52, %v4771_v1  ;;  %v6933_v10 = vpop.f32.mrb[221].mxu0  ;;  %v7057_v43 = vpop.f32.mrb[97].mxu1  ;;  %v5174_v31 = vmax.f32 %v5144_v33, 0.0 }
 0xde2   :  { %v4774_v40 = vpop.f32.mrb[222].mxu0  ;;  %v10799_v2 = vpop.f32.mrb[98].mxu1 }
 0xde3   :  { %v5175_v47 = vmax.f32 %v5145_v11, 0.0  ;;  %v5086_v50 = vadd.f32 %v10767_v37, %v4973_v49  ;;  %v4976_v35 = vadd.f32 %v10726_v38, %v4774_v40  ;;  %v6934_v48 = vpop.f32.mrb[223].mxu0  ;;  %v7058_v24 = vpop.f32.mrb[99].mxu1  ;;  %v11328_v11 = vmax.f32 %v9760_v32, 0.0 }
 0xde5   :  { %v5203_v0 = vpack.c.bf16 %v5175_v47, %v5174_v31  ;;  %v5116_v62 = vmax.f32 %v5086_v50, 0.0  ;;  %v5087_v15 = vadd.f32 %v10767_v37, %v4976_v35 }
 0xde7   :  { %v5146_v52 = vadd.f32 %v5116_v62, %v11326_v8  ;;  %v5117_v61 = vmax.f32 %v5087_v15, 0.0  ;;  %7080 = vmatmul.mubr.bf16.gmra.mrb[20].mxu0 %v5203_v0  ;;  %v11330_v15 = vmax.f32 %v9782_v27, 0.0 }
 0xde8   :  { %v4779_v45 = vpop.f32.mrb[224].mxu0  ;;  %7083 = vmatprep.mubr.msk.bf16.mxu0 %vm7458_vm1, %v11233_v7 }
 0xde9   :  { %v5147_v5 = vadd.f32 %v5117_v61, %v11327_v29  ;;  %v4981_v38 = vadd.f32 %v10728_v46, %v4779_v45  ;;  %v6937_v6 = vpop.f32.mrb[225].mxu0  ;;  %v5176_v17 = vmax.f32 %v5146_v52, 0.0  ;;  %v11329_v46 = vmax.f32 %v9766_v26, 0.0 }
 0xdea   :  { %v4782_v14 = vpop.f32.mrb[226].mxu0 }
 0xdeb   :  { %v5177_v18 = vmax.f32 %v5147_v5, 0.0  ;;  %v5088_v63 = vadd.f32 %v10767_v37, %v4981_v38  ;;  %v4984_v4 = vadd.f32 %v10730_v9, %v4782_v14  ;;  %v6938_v33 = vpop.f32.mrb[227].mxu0 }
 0xded   :  { %v5204_v56 = vpack.c.bf16 %v5177_v18, %v5176_v17  ;;  %v5118_v1 = vmax.f32 %v5088_v63, 0.0  ;;  %v5089_v30 = vadd.f32 %v10767_v37, %v4984_v4  ;;  %v11332_v4 = vmax.f32 %v9804_v13, 0.0 }
 0xdef   :  { %v5148_v49 = vadd.f32 %v5118_v1, %v11328_v11  ;;  %v5119_v22 = vmax.f32 %v5089_v30, 0.0  ;;  %7084 = vmatmul.mubr.bf16.gmra.mrb[24].mxu0 %v5204_v56 }
 0xdf0   :  { %v4787_v10 = vpop.f32.mrb[228].mxu0  ;;  %7087 = vmatprep.mubr.msk.bf16.mxu0 %vm7458_vm1, %v11233_v7 }
 0xdf1   :  { %v5149_v43 = vadd.f32 %v5119_v22, %v11329_v46  ;;  %v4989_v40 = vadd.f32 %v10732_v55, %v4787_v10  ;;  %v6941_v9 = vpop.f32.mrb[229].mxu0  ;;  %v5178_v47 = vmax.f32 %v5148_v49, 0.0  ;;  %v11331_v55 = vmax.f32 %v9788_v19, 0.0 }
 0xdf2   :  { %v4790_v31 = vpop.f32.mrb[230].mxu0 }
 0xdf3   :  { %v5179_v50 = vmax.f32 %v5149_v43, 0.0  ;;  %v5090_v35 = vadd.f32 %v10767_v37, %v4989_v40  ;;  %v4992_v32 = vadd.f32 %v10734_v54, %v4790_v31  ;;  %v6942_v48 = vpop.f32.mrb[231].mxu0  ;;  %v11334_v31 = vld [vmem:[#allocation20_spill] sm:$0xff] }
 0xdf5   :  { %v5205_v24 = vpack.c.bf16 %v5179_v50, %v5178_v47  ;;  %v5120_v0 = vmax.f32 %v5090_v35, 0.0  ;;  %v5091_v62 = vadd.f32 %v10767_v37, %v4992_v32  ;;  %v11335_v47 = vmax.f32 %v11334_v31, 0.0 }
 0xdf7   :  { %v5150_v8 = vadd.f32 %v5120_v0, %v11330_v15  ;;  %v5121_v26 = vmax.f32 %v5091_v62, 0.0  ;;  %7088 = vmatmul.mubr.bf16.gmra.mrb[28].mxu0 %v5205_v24 }
 0xdf8   :  { %v4795_v52 = vpop.f32.mrb[232].mxu0  ;;  %7091 = vmatprep.mubr.msk.bf16.mxu0 %vm7458_vm1, %v11233_v7 }
 0xdf9   :  { %v5151_v61 = vadd.f32 %v5121_v26, %v11331_v55  ;;  %v4997_v45 = vadd.f32 %v10736_v28, %v4795_v52  ;;  %v6945_v54 = vpop.f32.mrb[233].mxu0  ;;  %v5180_v5 = vmax.f32 %v5150_v8, 0.0  ;;  %v11333_v28 = vmax.f32 %v9810_v59, 0.0 }
 0xdfa   :  { %v4798_v29 = vpop.f32.mrb[234].mxu0  ;;  %v11338_v54 = vld [vmem:[#allocation4_spill] sm:$0xff] }
 0xdfb   :  { %v5181_v38 = vmax.f32 %v5151_v61, 0.0  ;;  %v5092_v6 = vadd.f32 %v10767_v37, %v4997_v45  ;;  %v5000_v27 = vadd.f32 %v10738_v12, %v4798_v29  ;;  %v6946_v14 = vpop.f32.mrb[235].mxu0  ;;  %v11339_v29 = vmax.f32 %v11338_v54, 0.0 }
 0xdfd   :  { %v5206_v17 = vpack.c.bf16 %v5181_v38, %v5180_v5  ;;  %v5122_v18 = vmax.f32 %v5092_v6, 0.0  ;;  %v5093_v63 = vadd.f32 %v10767_v37, %v5000_v27 }
 0xdff   :  { %v5152_v33 = vadd.f32 %v5122_v18, %v11332_v4  ;;  %v5123_v19 = vmax.f32 %v5093_v63, 0.0  ;;  %7092 = vmatmul.mubr.bf16.gmra.mrb[32].mxu0 %v5206_v17 }
 0xe00   :  { %v4803_v56 = vpop.f32.mrb[236].mxu0  ;;  %7095 = vmatprep.mubr.msk.bf16.mxu0 %vm7458_vm1, %v11233_v7 }
 0xe01   :  { %v5153_v1 = vadd.f32 %v5123_v19, %v11333_v28  ;;  %v5005_v30 = vadd.f32 %v10740_v44, %v4803_v56  ;;  %v6949_v12 = vpop.f32.mrb[237].mxu0  ;;  %v5182_v49 = vmax.f32 %v5152_v33, 0.0  ;;  %v11336_v44 = vld [vmem:[#allocation3_spill] sm:$0xff] }
 0xe02   :  { %v4806_v11 = vpop.f32.mrb[238].mxu0  ;;  %v11337_v32 = vmax.f32 %v11336_v44, 0.0  ;;  %v11342_v12 = vld [vmem:[#allocation6_spill] sm:$0xff] }
 0xe03   :  { %v5183_v22 = vmax.f32 %v5153_v1, 0.0  ;;  %v5094_v10 = vadd.f32 %v10767_v37, %v5005_v30  ;;  %v5008_v13 = vadd.f32 %v10742_v57, %v4806_v11  ;;  %v6950_v46 = vpop.f32.mrb[239].mxu0  ;;  %v11343_v11 = vmax.f32 %v11342_v12, 0.0 }
 0xe05   :  { %v5207_v43 = vpack.c.bf16 %v5183_v22, %v5182_v49  ;;  %v5124_v40 = vmax.f32 %v5094_v10, 0.0  ;;  %v5095_v9 = vadd.f32 %v10767_v37, %v5008_v13 }
 0xe07   :  { %v5154_v50 = vadd.f32 %v5124_v40, %v11335_v47  ;;  %v5125_v59 = vmax.f32 %v5095_v9, 0.0  ;;  %7096 = vmatmul.mubr.bf16.gmra.mrb[36].mxu0 %v5207_v43 }
 0xe08   :  { %v4811_v35 = vpop.f32.mrb[240].mxu0  ;;  %7099 = vmatprep.mubr.msk.bf16.mxu0 %vm7458_vm1, %v11233_v7 }
 0xe09   :  { %v5155_v48 = vadd.f32 %v5125_v59, %v11337_v32  ;;  %v5013_v24 = vadd.f32 %v10744_v51, %v4811_v35  ;;  %v6953_v57 = vpop.f32.mrb[241].mxu0  ;;  %v5184_v62 = vmax.f32 %v5154_v50, 0.0  ;;  %v11340_v51 = vld [vmem:[#allocation5_spill] sm:$0xff] }
 0xe0a   :  { %v4814_v0 = vpop.f32.mrb[242].mxu0  ;;  %v11341_v27 = vmax.f32 %v11340_v51, 0.0  ;;  %v11350_v51 = vld [vmem:[#allocation10_spill] sm:$0xff] }
 0xe0b   :  { %v5185_v15 = vmax.f32 %v5155_v48, 0.0  ;;  %v5096_v8 = vadd.f32 %v10767_v37, %v5013_v24  ;;  %v5016_v26 = vadd.f32 %v10746_v21, %v4814_v0  ;;  %v6954_v52 = vpop.f32.mrb[243].mxu0  ;;  %v11346_v48 = vld [vmem:[#allocation8_spill] sm:$0xff] }
 0xe0c   :  { %v11347_v24 = vmax.f32 %v11346_v48, 0.0 }
 0xe0d   :  { %v5208_v55 = vpack.c.bf16 %v5185_v15, %v5184_v62  ;;  %v5126_v61 = vmax.f32 %v5096_v8, 0.0  ;;  %v5097_v45 = vadd.f32 %v10767_v37, %v5016_v26 }
 0xe0f   :  { %v5156_v5 = vadd.f32 %v5126_v61, %v11339_v29  ;;  %v5127_v38 = vmax.f32 %v5097_v45, 0.0  ;;  %7100 = vmatmul.mubr.bf16.gmra.mrb[40].mxu0 %v5208_v55 }
 0xe10   :  { %v4819_v6 = vpop.f32.mrb[244].mxu0  ;;  %7103 = vmatprep.mubr.msk.bf16.mxu0 %vm7458_vm1, %v11233_v7 }
 0xe11   :  { %v5157_v14 = vadd.f32 %v5127_v38, %v11341_v27  ;;  %v5021_v17 = vadd.f32 %v10748_v36, %v4819_v6  ;;  %v6957_v21 = vpop.f32.mrb[245].mxu0  ;;  %v5186_v63 = vmax.f32 %v5156_v5, 0.0  ;;  %v11344_v36 = vld [vmem:[#allocation7_spill] sm:$0xff]  ;;  %v11351_v27 = vmax.f32 %v11350_v51, 0.0 }
 0xe12   :  { %v4822_v18 = vpop.f32.mrb[246].mxu0  ;;  %v11345_v13 = vmax.f32 %v11344_v36, 0.0 }
 0xe13   :  { %v5187_v4 = vmax.f32 %v5157_v14, 0.0  ;;  %v5098_v33 = vadd.f32 %v10767_v37, %v5021_v17  ;;  %v5024_v19 = vadd.f32 %v10750_v16, %v4822_v18  ;;  %v6958_v56 = vpop.f32.mrb[247].mxu0 }
 0xe15   :  { %v5209_v28 = vpack.c.bf16 %v5187_v4, %v5186_v63  ;;  %v5128_v1 = vmax.f32 %v5098_v33, 0.0  ;;  %v5099_v30 = vadd.f32 %v10767_v37, %v5024_v19 }
 0xe17   :  { %v5158_v49 = vadd.f32 %v5128_v1, %v11343_v11  ;;  %v5129_v22 = vmax.f32 %v5099_v30, 0.0  ;;  %7104 = vmatmul.mubr.bf16.gmra.mrb[44].mxu0 %v5209_v28 }
 0xe18   :  { %v4827_v10 = vpop.f32.mrb[248].mxu0  ;;  %7107 = vmatprep.mubr.msk.bf16.mxu0 %vm7458_vm1, %v11233_v7 }
 0xe19   :  { %v5159_v46 = vadd.f32 %v5129_v22, %v11345_v13  ;;  %v5029_v43 = vadd.f32 %v10752_v25, %v4827_v10  ;;  %v6961_v16 = vpop.f32.mrb[249].mxu0  ;;  %v5188_v9 = vmax.f32 %v5158_v49, 0.0  ;;  %v11348_v25 = vld [vmem:[#allocation9_spill] sm:$0xff]  ;;  %v11354_v22 = vld [vmem:[#allocation12_spill] sm:$0xff] }
 0xe1a   :  { %v4830_v40 = vpop.f32.mrb[250].mxu0  ;;  %v11349_v15 = vmax.f32 %v11348_v25, 0.0  ;;  %v11355_v10 = vmax.f32 %v11354_v22, 0.0 }
 0xe1b   :  { %v5189_v31 = vmax.f32 %v5159_v46, 0.0  ;;  %v5100_v47 = vadd.f32 %v10767_v37, %v5029_v43  ;;  %v5032_v50 = vadd.f32 %v10754_v39, %v4830_v40  ;;  %v6962_v59 = vpop.f32.mrb[251].mxu0 }
 0xe1d   :  { %v5210_v35 = vpack.c.bf16 %v5189_v31, %v5188_v9  ;;  %v5130_v44 = vmax.f32 %v5100_v47, 0.0  ;;  %v5101_v32 = vadd.f32 %v10767_v37, %v5032_v50 }
 0xe1f   :  { %v5160_v57 = vadd.f32 %v5130_v44, %v11347_v24  ;;  %v5131_v0 = vmax.f32 %v5101_v32, 0.0  ;;  %7108 = vmatmul.mubr.bf16.gmra.mrb[48].mxu0 %v5210_v35  ;;  %v11358_v24 = vld [vmem:[#allocation14_spill] sm:$0xff] }
 0xe20   :  { %v4835_v62 = vpop.f32.mrb[252].mxu0  ;;  %7111 = vmatprep.mubr.msk.bf16.mxu0 %vm7458_vm1, %v11233_v7 }
 0xe21   :  { %v5161_v8 = vadd.f32 %v5131_v0, %v11349_v15  ;;  %v5037_v26 = vadd.f32 %v10756_v34, %v4835_v62  ;;  %v6965_v39 = vpop.f32.mrb[253].mxu0  ;;  %v5190_v55 = vmax.f32 %v5160_v57, 0.0  ;;  %v11352_v34 = vld [vmem:[#allocation11_spill] sm:$0xff]  ;;  %v11359_v57 = vmax.f32 %v11358_v24, 0.0 }
 0xe22   :  { %v4838_v52 = vpop.f32.mrb[254].mxu0  ;;  %v11353_v18 = vmax.f32 %v11352_v34, 0.0 }
 0xe23   :  { %v5191_v61 = vmax.f32 %v5161_v8, 0.0  ;;  %v5102_v45 = vadd.f32 %v10767_v37, %v5037_v26  ;;  %v5040_v54 = vadd.f32 %v10758_v60, %v4838_v52  ;;  %v6966_v29 = vpop.f32.mrb[255].mxu0 }
 0xe25   :  { %v5211_v5 = vpack.c.bf16 %v5191_v61, %v5190_v55  ;;  %v5132_v38 = vmax.f32 %v5102_v45, 0.0  ;;  %v5103_v6 = vadd.f32 %v10767_v37, %v5040_v54 }
 0xe27   :  { %v5162_v14 = vadd.f32 %v5132_v38, %v11351_v27  ;;  %v5133_v17 = vmax.f32 %v5103_v6, 0.0  ;;  %7112 = vmatmul.mubr.bf16.gmra.mrb[52].mxu0 %v5211_v5  ;;  %v11362_v6 = vld [vmem:[#allocation16_spill] sm:$0xff] }
 0xe28   :  { %v4843_v21 = vpop.f32.mrb[0].mxu0  ;;  %7115 = vmatprep.mubr.msk.bf16.mxu0 %vm7458_vm1, %v11233_v7  ;;  %v11363_v51 = vmax.f32 %v11362_v6, 0.0 }
 0xe29   :  { %v5163_v63 = vadd.f32 %v5133_v17, %v11353_v18  ;;  %v5045_v4 = vadd.f32 %v10760_v53, %v4843_v21  ;;  %v6969_v60 = vpop.f32.mrb[1].mxu0  ;;  %v5192_v19 = vmax.f32 %v5162_v14, 0.0  ;;  %v11356_v53 = vld [vmem:[#allocation13_spill] sm:$0xff] }
 0xe2a   :  { %v4846_v33 = vpop.f32.mrb[2].mxu0  ;;  %v11357_v43 = vmax.f32 %v11356_v53, 0.0 }
 0xe2b   :  { %v5193_v56 = vmax.f32 %v5163_v63, 0.0  ;;  %v5104_v28 = vadd.f32 %v10767_v37, %v5045_v4  ;;  %v5048_v1 = vadd.f32 %v10762_v23, %v4846_v33  ;;  %v6970_v30 = vpop.f32.mrb[3].mxu0 }
 0xe2d   :  { %v5212_v12 = vpack.c.bf16 %v5193_v56, %v5192_v19  ;;  %v5134_v11 = vmax.f32 %v5104_v28, 0.0  ;;  %v5105_v49 = vadd.f32 %v10767_v37, %v5048_v1 }
 0xe2f   :  { %v5164_v36 = vadd.f32 %v5134_v11, %v11355_v10  ;;  %v5135_v13 = vmax.f32 %v5105_v49, 0.0  ;;  %7116 = vmatmul.mubr.bf16.gmra.mrb[56].mxu0 %v5212_v12  ;;  %v11366_v12 = vld [vmem:[#allocation18_spill] sm:$0xff] }
 0xe30   :  { %v4851_v46 = vpop.f32.mrb[4].mxu0  ;;  %7119 = vmatprep.mubr.msk.bf16.mxu0 %vm7458_vm1, %v11233_v7  ;;  %v11367_v11 = vmax.f32 %v11366_v12, 0.0 }
 0xe31   :  { %v5165_v16 = vadd.f32 %v5135_v13, %v11357_v43  ;;  %v5053_v40 = vadd.f32 %v10769_v20, %v4851_v46  ;;  %v6973_v23 = vpop.f32.mrb[5].mxu0  ;;  %v5194_v31 = vmax.f32 %v5164_v36, 0.0  ;;  %v11360_v20 = vld [vmem:[#allocation15_spill] sm:$0xff] }
 0xe32   :  { %v4854_v9 = vpop.f32.mrb[6].mxu0  ;;  %v11361_v15 = vmax.f32 %v11360_v20, 0.0 }
 0xe33   :  { %v5195_v47 = vmax.f32 %v5165_v16, 0.0  ;;  %v5106_v50 = vadd.f32 %v10767_v37, %v5053_v40  ;;  %v5056_v59 = vadd.f32 %v10774_v42, %v4854_v9  ;;  %v6974_v35 = vpop.f32.mrb[7].mxu0 }
 0xe35   :  { %v5213_v44 = vpack.c.bf16 %v5195_v47, %v5194_v31  ;;  %v5136_v32 = vmax.f32 %v5106_v50, 0.0  ;;  %v5107_v48 = vadd.f32 %v10767_v37, %v5056_v59 }
 0xe37   :  { %v5166_v0 = vadd.f32 %v5136_v32, %v11359_v57  ;;  %v5137_v62 = vmax.f32 %v5107_v48, 0.0  ;;  %7120 = vmatmul.mubr.bf16.gmra.mrb[60].mxu0 %v5213_v44 }
 0xe38   :  { %v4859_v25 = vpop.f32.mrb[8].mxu0  ;;  %7123 = vmatprep.mubr.msk.bf16.mxu0 %vm7458_vm1, %v11233_v7 }
 0xe39   :  { %v5167_v8 = vadd.f32 %v5137_v62, %v11361_v15  ;;  %v5061_v26 = vadd.f32 %v10780_v41, %v4859_v25  ;;  %v6977_v42 = vpop.f32.mrb[9].mxu0  ;;  %v5196_v52 = vmax.f32 %v5166_v0, 0.0  ;;  %v11364_v41 = vld [vmem:[#allocation17_spill] sm:$0xff] }
 0xe3a   :  { %v4862_v39 = vpop.f32.mrb[10].mxu0  ;;  %v11365_v21 = vmax.f32 %v11364_v41, 0.0 }
 0xe3b   :  { %v5197_v55 = vmax.f32 %v5167_v8, 0.0  ;;  %v5108_v61 = vadd.f32 %v10767_v37, %v5061_v26  ;;  %v5064_v45 = vadd.f32 %v10785_v58, %v4862_v39  ;;  %v6978_v54 = vpop.f32.mrb[11].mxu0 }
 0xe3d   :  { %v5214_v29 = vpack.c.bf16 %v5197_v55, %v5196_v52  ;;  %v5138_v5 = vmax.f32 %v5108_v61, 0.0  ;;  %v5109_v38 = vadd.f32 %v10767_v37, %v5064_v45 }
 0xe3f   :  { %v5168_v27 = vadd.f32 %v5138_v5, %v11363_v51  ;;  %v5139_v14 = vmax.f32 %v5109_v38, 0.0  ;;  %7124 = vmatmul.mubr.bf16.gmra.mrb[64].mxu0 %v5214_v29 }
 0xe40   :  { %v4867_v17 = vpop.f32.mrb[12].mxu0  ;;  %7127 = vmatprep.mubr.msk.bf16.mxu0 %vm7458_vm1, %v11233_v7 }
 0xe41   :  { %v5169_v34 = vadd.f32 %v5139_v14, %v11365_v21  ;;  %v5069_v18 = vadd.f32 %v10792_v3, %v4867_v17  ;;  %v6981_v58 = vpop.f32.mrb[13].mxu0  ;;  %v5198_v4 = vmax.f32 %v5168_v27, 0.0  ;;  %v11368_v3 = vld [vmem:[#allocation19_spill] sm:$0xff] }
 0xe42   :  { %v4870_v63 = vpop.f32.mrb[14].mxu0  ;;  %v11369_v10 = vmax.f32 %v11368_v3, 0.0 }
 0xe43   :  { %v5199_v60 = vmax.f32 %v5169_v34, 0.0  ;;  %v5110_v33 = vadd.f32 %v10767_v37, %v5069_v18  ;;  %v5072_v19 = vadd.f32 %v10799_v2, %v4870_v63  ;;  %v6982_v56 = vpop.f32.mrb[15].mxu0  ;;  %v10930_v2 = vld [vmem:[#allocation2] ss:$0 sm:$0xff] }
 0xe45   :  { %v5215_v28 = vpack.c.bf16 %v5199_v60, %v5198_v4  ;;  %v5140_v1 = vmax.f32 %v5110_v33, 0.0  ;;  %v5111_v30 = vadd.f32 %v10767_v37, %v5072_v19 }
 0xe47   :  { %v5170_v49 = vadd.f32 %v5140_v1, %v11367_v11  ;;  %v5141_v22 = vmax.f32 %v5111_v30, 0.0  ;;  %7128 = vmatmul.mubr.bf16.gmra.mrb[68].mxu0 %v5215_v28 }
 0xe48   :  { %7131 = vmatprep.mubr.msk.bf16.mxu0 %vm7458_vm1, %v11233_v7 }
 0xe49   :  { %v5171_v36 = vadd.f32 %v5141_v22, %v11369_v10  ;;  %v5200_v13 = vmax.f32 %v5170_v49, 0.0 }
 0xe4b   :  { %v5201_v46 = vmax.f32 %v5171_v36, 0.0 }
 0xe4d   :  { %v5216_v53 = vpack.c.bf16 %v5201_v46, %v5200_v13 }
 0xe4f   :  { %7132 = vmatmul.mubr.bf16.gmra.mrb[72].mxu0 %v5216_v53 }
 0xeb2   :  { %v5322_v43 = vpop.f32.mrb[16].mxu0 }
 0xeb3   :  { %v5323_v37 = vadd.f32 %v10930_v2, %v5322_v43  ;;  %v7077_v16 = vpop.f32.mrb[17].mxu0 }
 0xeb4   :  { %v5325_v40 = vpop.f32.mrb[18].mxu0 }
 0xeb5   :  { %5442 = vst.msk [vmem:[%s11108_s26] sm:$0xff] %vm5441_vm3, %v5323_v37  ;;  %v5326_v7 = vadd.f32 %v10930_v2, %v5325_v40  ;;  %v7078_v23 = vpop.f32.mrb[19].mxu0 }
 0xeb7   :  { %5443 = vst.msk [vmem:[%s11108_s26 + $0x8] sm:$0xff] %vm5441_vm3, %v5326_v7 }
 0xeba   :  { %v5330_v9 = vpop.f32.mrb[20].mxu0 }
 0xebb   :  { %v5331_v31 = vadd.f32 %v10930_v2, %v5330_v9  ;;  %v7081_v47 = vpop.f32.mrb[21].mxu0 }
 0xebc   :  { %v5333_v50 = vpop.f32.mrb[22].mxu0 }
 0xebd   :  { %5444 = vst.msk [vmem:[%s11108_s26 + $0x10] sm:$0xff] %vm5441_vm3, %v5331_v31  ;;  %v5334_v59 = vadd.f32 %v10930_v2, %v5333_v50  ;;  %v7082_v35 = vpop.f32.mrb[23].mxu0 }
 0xebf   :  { %5445 = vst.msk [vmem:[%s11108_s26 + $0x18] sm:$0xff] %vm5441_vm3, %v5334_v59 }
 0xec2   :  { %v5338_v44 = vpop.f32.mrb[24].mxu0 }
 0xec3   :  { %v5339_v32 = vadd.f32 %v10930_v2, %v5338_v44  ;;  %v7085_v48 = vpop.f32.mrb[25].mxu0 }
 0xec4   :  { %v5341_v24 = vpop.f32.mrb[26].mxu0 }
 0xec5   :  { %5446 = vst.msk [vmem:[%s11108_s26 + $0x20] sm:$0xff] %vm5441_vm3, %v5339_v32  ;;  %v5342_v57 = vadd.f32 %v10930_v2, %v5341_v24  ;;  %v7086_v0 = vpop.f32.mrb[27].mxu0 }
 0xec7   :  { %5447 = vst.msk [vmem:[%s11108_s26 + $0x28] sm:$0xff] %vm5441_vm3, %v5342_v57 }
 0xeca   :  { %v5346_v62 = vpop.f32.mrb[28].mxu0 }
 0xecb   :  { %v5347_v25 = vadd.f32 %v10930_v2, %v5346_v62  ;;  %v7089_v20 = vpop.f32.mrb[29].mxu0 }
 0xecc   :  { %v5349_v15 = vpop.f32.mrb[30].mxu0 }
 0xecd   :  { %5448 = vst.msk [vmem:[%s11108_s26 + $0x30] sm:$0xff] %vm5441_vm3, %v5347_v25  ;;  %v5350_v8 = vadd.f32 %v10930_v2, %v5349_v15  ;;  %v7090_v26 = vpop.f32.mrb[31].mxu0 }
 0xecf   :  { %5449 = vst.msk [vmem:[%s11108_s26 + $0x38] sm:$0xff] %vm5441_vm3, %v5350_v8 }
 0xed2   :  { %v5354_v42 = vpop.f32.mrb[32].mxu0 }
 0xed3   :  { %v5355_v39 = vadd.f32 %v10930_v2, %v5354_v42  ;;  %v7093_v52 = vpop.f32.mrb[33].mxu0 }
 0xed4   :  { %v5357_v55 = vpop.f32.mrb[34].mxu0 }
 0xed5   :  { %5450 = vst.msk [vmem:[%s11108_s26 + $0x40] sm:$0xff] %vm5441_vm3, %v5355_v39  ;;  %v5358_v61 = vadd.f32 %v10930_v2, %v5357_v55  ;;  %v7094_v45 = vpop.f32.mrb[35].mxu0 }
 0xed7   :  { %5451 = vst.msk [vmem:[%s11108_s26 + $0x48] sm:$0xff] %vm5441_vm3, %v5358_v61 }
 0xeda   :  { %v5362_v54 = vpop.f32.mrb[36].mxu0 }
 0xedb   :  { %v5363_v29 = vadd.f32 %v10930_v2, %v5362_v54  ;;  %v7097_v5 = vpop.f32.mrb[37].mxu0 }
 0xedc   :  { %v5365_v38 = vpop.f32.mrb[38].mxu0 }
 0xedd   :  { %5452 = vst.msk [vmem:[%s11108_s26 + $0x50] sm:$0xff] %vm5441_vm3, %v5363_v29  ;;  %v5366_v6 = vadd.f32 %v10930_v2, %v5365_v38  ;;  %v7098_v51 = vpop.f32.mrb[39].mxu0 }
 0xedf   :  { %5453 = vst.msk [vmem:[%s11108_s26 + $0x58] sm:$0xff] %vm5441_vm3, %v5366_v6 }
 0xee2   :  { %v5370_v27 = vpop.f32.mrb[40].mxu0 }
 0xee3   :  { %v5371_v14 = vadd.f32 %v10930_v2, %v5370_v27  ;;  %v7101_v17 = vpop.f32.mrb[41].mxu0 }
 0xee4   :  { %v5373_v41 = vpop.f32.mrb[42].mxu0 }
 0xee5   :  { %5454 = vst.msk [vmem:[%s11108_s26 + $0x60] sm:$0xff] %vm5441_vm3, %v5371_v14  ;;  %v5374_v21 = vadd.f32 %v10930_v2, %v5373_v41  ;;  %v7102_v34 = vpop.f32.mrb[43].mxu0 }
 0xee7   :  { %5455 = vst.msk [vmem:[%s11108_s26 + $0x68] sm:$0xff] %vm5441_vm3, %v5374_v21 }
 0xeea   :  { %v5378_v18 = vpop.f32.mrb[44].mxu0 }
 0xeeb   :  { %v5379_v58 = vadd.f32 %v10930_v2, %v5378_v18  ;;  %v7105_v63 = vpop.f32.mrb[45].mxu0 }
 0xeec   :  { %v5381_v4 = vpop.f32.mrb[46].mxu0 }
 0xeed   :  { %5456 = vst.msk [vmem:[%s11108_s26 + $0x70] sm:$0xff] %vm5441_vm3, %v5379_v58  ;;  %v5382_v60 = vadd.f32 %v10930_v2, %v5381_v4  ;;  %v7106_v33 = vpop.f32.mrb[47].mxu0 }
 0xeef   :  { %5457 = vst.msk [vmem:[%s11108_s26 + $0x78] sm:$0xff] %vm5441_vm3, %v5382_v60 }
 0xef2   :  { %v5386_v19 = vpop.f32.mrb[48].mxu0 }
 0xef3   :  { %v5387_v56 = vadd.f32 %v10930_v2, %v5386_v19  ;;  %v7109_v28 = vpop.f32.mrb[49].mxu0 }
 0xef4   :  { %v5389_v1 = vpop.f32.mrb[50].mxu0 }
 0xef5   :  { %5458 = vst.msk [vmem:[%s11108_s26 + $0x80] sm:$0xff] %vm5441_vm3, %v5387_v56  ;;  %v5390_v30 = vadd.f32 %v10930_v2, %v5389_v1  ;;  %v7110_v12 = vpop.f32.mrb[51].mxu0 }
 0xef7   :  { %5459 = vst.msk [vmem:[%s11108_s26 + $0x88] sm:$0xff] %vm5441_vm3, %v5390_v30 }
 0xefa   :  { %v5394_v11 = vpop.f32.mrb[52].mxu0 }
 0xefb   :  { %v5395_v49 = vadd.f32 %v10930_v2, %v5394_v11  ;;  %v7113_v22 = vpop.f32.mrb[53].mxu0 }
 0xefc   :  { %v5397_v3 = vpop.f32.mrb[54].mxu0 }
 0xefd   :  { %5460 = vst.msk [vmem:[%s11108_s26 + $0x90] sm:$0xff] %vm5441_vm3, %v5395_v49  ;;  %v5398_v10 = vadd.f32 %v10930_v2, %v5397_v3  ;;  %v7114_v36 = vpop.f32.mrb[55].mxu0 }
 0xeff   :  { %5461 = vst.msk [vmem:[%s11108_s26 + $0x98] sm:$0xff] %vm5441_vm3, %v5398_v10 }
 0xf02   :  { %v5402_v13 = vpop.f32.mrb[56].mxu0 }
 0xf03   :  { %v5403_v46 = vadd.f32 %v10930_v2, %v5402_v13  ;;  %v7117_v53 = vpop.f32.mrb[57].mxu0 }
 0xf04   :  { %v5405_v43 = vpop.f32.mrb[58].mxu0 }
 0xf05   :  { %5462 = vst.msk [vmem:[%s11108_s26 + $0xa0] sm:$0xff] %vm5441_vm3, %v5403_v46  ;;  %v5406_v37 = vadd.f32 %v10930_v2, %v5405_v43  ;;  %v7118_v16 = vpop.f32.mrb[59].mxu0 }
 0xf07   :  { %5463 = vst.msk [vmem:[%s11108_s26 + $0xa8] sm:$0xff] %vm5441_vm3, %v5406_v37 }
 0xf0a   :  { %v5410_v40 = vpop.f32.mrb[60].mxu0 }
 0xf0b   :  { %v5411_v7 = vadd.f32 %v10930_v2, %v5410_v40  ;;  %v7121_v23 = vpop.f32.mrb[61].mxu0 }
 0xf0c   :  { %v5413_v9 = vpop.f32.mrb[62].mxu0 }
 0xf0d   :  { %5464 = vst.msk [vmem:[%s11108_s26 + $0xb0] sm:$0xff] %vm5441_vm3, %v5411_v7  ;;  %v5414_v31 = vadd.f32 %v10930_v2, %v5413_v9  ;;  %v7122_v47 = vpop.f32.mrb[63].mxu0 }
 0xf0f   :  { %5465 = vst.msk [vmem:[%s11108_s26 + $0xb8] sm:$0xff] %vm5441_vm3, %v5414_v31 }
 0xf12   :  { %v5418_v50 = vpop.f32.mrb[64].mxu0 }
 0xf13   :  { %v5419_v59 = vadd.f32 %v10930_v2, %v5418_v50  ;;  %v7125_v35 = vpop.f32.mrb[65].mxu0 }
 0xf14   :  { %v5421_v44 = vpop.f32.mrb[66].mxu0 }
 0xf15   :  { %5466 = vst.msk [vmem:[%s11108_s26 + $0xc0] sm:$0xff] %vm5441_vm3, %v5419_v59  ;;  %v5422_v32 = vadd.f32 %v10930_v2, %v5421_v44  ;;  %v7126_v48 = vpop.f32.mrb[67].mxu0 }
 0xf17   :  { %5467 = vst.msk [vmem:[%s11108_s26 + $0xc8] sm:$0xff] %vm5441_vm3, %v5422_v32 }
 0xf1a   :  { %v5426_v24 = vpop.f32.mrb[68].mxu0 }
 0xf1b   :  { %v5427_v57 = vadd.f32 %v10930_v2, %v5426_v24  ;;  %v7129_v0 = vpop.f32.mrb[69].mxu0 }
 0xf1c   :  { %v5429_v62 = vpop.f32.mrb[70].mxu0 }
 0xf1d   :  { %5468 = vst.msk [vmem:[%s11108_s26 + $0xd0] sm:$0xff] %vm5441_vm3, %v5427_v57  ;;  %v5430_v25 = vadd.f32 %v10930_v2, %v5429_v62  ;;  %v7130_v20 = vpop.f32.mrb[71].mxu0 }
 0xf1f   :  { %5469 = vst.msk [vmem:[%s11108_s26 + $0xd8] sm:$0xff] %vm5441_vm3, %v5430_v25 }
 0xf22   :  { %v5434_v15 = vpop.f32.mrb[72].mxu0 }
 0xf23   :  { %v5435_v8 = vadd.f32 %v10930_v2, %v5434_v15  ;;  %v7133_v26 = vpop.f32.mrb[73].mxu0 }
 0xf24   :  { %v5437_v42 = vpop.f32.mrb[74].mxu0 }
 0xf25   :  { %5470 = vst.msk [vmem:[%s11108_s26 + $0xe0] sm:$0xff] %vm5441_vm3, %v5435_v8  ;;  %v5438_v39 = vadd.f32 %v10930_v2, %v5437_v42  ;;  %v7134_v52 = vpop.f32.mrb[75].mxu0 }
 0xf27   :  { %5471 = vst.msk [vmem:[%s11108_s26 + $0xe8] sm:$0xff] %vm5441_vm3, %v5438_v39 }

</bundles_post_ra>
